<compile_context>
chip_gen: v7x
topology: tpu7x:2x2x1
jax: 0.10.0
libtpu: 0.0.40
codegen_flags: <defaults>
</compile_context>

<pallas_src>
import jax
import jax.numpy as jnp
from jax.experimental import pallas as pl
from jax.experimental.pallas import tpu as pltpu

D_MODEL = 576       # transformer d_model == MLP input_dim
D_FF = 1024         # transformer feed-forward dim
H1 = 256            # MLP hidden 1
H2 = 128            # MLP hidden 2
NUM_CLASSES = 10
NUM_CLASSES_PAD = 128    # lane-dense padded output width
LN_EPS = 1e-5
BN_EPS = 1e-5

TILE_N_MAX = 1024               # max rows per grid step
VMEM_LIMIT_BYTES = 48 << 20     # > v5e 16 MiB default, < v7x 64 MiB physical


def _cdiv(a, b):
    return -(-a // b)


def _round_up(v, m):
    return _cdiv(v, m) * m


def _choose_tiling(n):
    """Even batch split; >=2 grid steps when possible (megacore on v7x)."""
    n8 = _round_up(n, 8)
    min_steps = 2 if n8 >= 16 else 1
    steps = max(min_steps, _cdiv(n8, TILE_N_MAX))
    tile_n = _round_up(_cdiv(n8, steps), 8)
    padded_n = _round_up(n8, tile_n)
    return tile_n, padded_n


def _ln_normalize(x):
    """Two-pass LayerNorm normalization (no affine): (x - mu) / sqrt(var+eps)."""
    inv_d = 1.0 / x.shape[-1]
    mu = jnp.sum(x, axis=-1, keepdims=True) * inv_d
    d = x - mu
    var = jnp.sum(d * d, axis=-1, keepdims=True) * inv_d
    return d * jax.lax.rsqrt(var + LN_EPS)


def model_kernel(
    x_ref,
    wa_ref, ba_ref,                   # fused attention: x @ (Wv@Wo) + (bv@Wo + bo)
    g1_ref, be1_ref,                  # transformer norm1 affine
    w1_ref, b1_ref, w2_ref, b2_ref,   # transformer FFN
    fw1_ref, fb1_ref,                 # fc1 (+ folded norm2 affine + bn1)
    fw2_ref, fb2_ref,                 # fc2 (+ folded bn2)
    fw3_ref, fb3_ref,                 # fc3 (padded to 128 cols)
    o_ref,
):
    bf16 = jnp.bfloat16
    x = x_ref[...]                                                    # (Tn, 576) f32

    # --- TransformerEncoderLayer (post-norm, seq_len == 1) -------------------
    attn = jnp.dot(x.astype(bf16), wa_ref[...],
                   preferred_element_type=jnp.float32) + ba_ref[...]
    h = _ln_normalize(x + attn) * g1_ref[...] + be1_ref[...]          # norm1 (f32)

    ff = jnp.dot(h.astype(bf16), w1_ref[...],
                 preferred_element_type=jnp.float32) + b1_ref[...]
    ff = jnp.maximum(ff.astype(bf16), 0)                              # ReLU on packed bf16
    ff = jnp.dot(ff, w2_ref[...],
                 preferred_element_type=jnp.float32) + b2_ref[...]
    hn = _ln_normalize(h + ff)                                        # norm2 (affine folded into fc1)

    # --- MLPClassifier (bn + norm2 affine folded, dropout = identity) --------
    z = jnp.dot(hn.astype(bf16), fw1_ref[...],
                preferred_element_type=jnp.float32) + fb1_ref[...]
    z = jnp.maximum(z.astype(bf16), 0)
    z = jnp.dot(z, fw2_ref[...],
                preferred_element_type=jnp.float32) + fb2_ref[...]
    z = jnp.maximum(z.astype(bf16), 0)
    out = jnp.dot(z, fw3_ref[...],
                  preferred_element_type=jnp.float32) + fb3_ref[...]
    o_ref[...] = out.astype(o_ref.dtype)                              # (Tn, 128) f32


def init_params(key):
    """Deterministic params mirroring the PyTorch module (pre-transposed).
    LayerNorm/BatchNorm parameters are randomized so the folds are exercised."""
    def uniform(k, shape, fan_in):
        bound = 1.0 / jnp.sqrt(jnp.float32(fan_in))
        return jax.random.uniform(k, shape, jnp.float32, -bound, bound)

    ks = jax.random.split(key, 26)
    p = {}
    # Self-attention: only the V-projection and out_proj matter for seq_len == 1.
    p["wv"] = uniform(ks[0], (D_MODEL, D_MODEL), D_MODEL)
    p["bv"] = uniform(ks[1], (1, D_MODEL), D_MODEL)
    p["wo"] = uniform(ks[2], (D_MODEL, D_MODEL), D_MODEL)
    p["bo"] = uniform(ks[3], (1, D_MODEL), D_MODEL)
    # LayerNorms (non-trivial affine)
    p["g1"] = jax.random.uniform(ks[4], (1, D_MODEL), jnp.float32, 0.5, 1.5)
    p["be1"] = jax.random.uniform(ks[5], (1, D_MODEL), jnp.float32, -0.5, 0.5)
    p["g2"] = jax.random.uniform(ks[6], (1, D_MODEL), jnp.float32, 0.5, 1.5)
    p["be2"] = jax.random.uniform(ks[7], (1, D_MODEL), jnp.float32, -0.5, 0.5)
    # Transformer FFN
    p["w1"] = uniform(ks[8], (D_MODEL, D_FF), D_MODEL)
    p["b1"] = uniform(ks[9], (1, D_FF), D_MODEL)
    p["w2"] = uniform(ks[10], (D_FF, D_MODEL), D_FF)
    p["b2"] = uniform(ks[11], (1, D_MODEL), D_FF)
    # MLP classifier
    p["fw1"] = uniform(ks[12], (D_MODEL, H1), D_MODEL)
    p["fb1"] = uniform(ks[13], (1, H1), D_MODEL)
    p["fw2"] = uniform(ks[14], (H1, H2), H1)
    p["fb2"] = uniform(ks[15], (1, H2), H1)
    p["fw3"] = uniform(ks[16], (H2, NUM_CLASSES), H2)
    p["fb3"] = uniform(ks[17], (1, NUM_CLASSES), H2)
    # BatchNorm1d (eval mode): affine + running stats (non-trivial).
    p["bn1_gamma"] = jax.random.uniform(ks[18], (1, H1), jnp.float32, 0.5, 1.5)
    p["bn1_beta"] = jax.random.uniform(ks[19], (1, H1), jnp.float32, -0.5, 0.5)
    p["bn1_mean"] = jax.random.uniform(ks[20], (1, H1), jnp.float32, -0.5, 0.5)
    p["bn1_var"] = jax.random.uniform(ks[21], (1, H1), jnp.float32, 0.5, 1.5)
    p["bn2_gamma"] = jax.random.uniform(ks[22], (1, H2), jnp.float32, 0.5, 1.5)
    p["bn2_beta"] = jax.random.uniform(ks[23], (1, H2), jnp.float32, -0.5, 0.5)
    p["bn2_mean"] = jax.random.uniform(ks[24], (1, H2), jnp.float32, -0.5, 0.5)
    p["bn2_var"] = jax.random.uniform(ks[25], (1, H2), jnp.float32, 0.5, 1.5)
    return p


def prepare_params(p):
    """Fold/fuse params once: attention fusion, norm2-affine + BN folding,
    bf16 weights, lane-padded fc3."""
    bf16 = jnp.bfloat16
    pp = {}
    # Fuse the two attention matmuls (exact for seq_len == 1).
    pp["wa"] = (p["wv"] @ p["wo"]).astype(bf16)
    pp["ba"] = p["bv"] @ p["wo"] + p["bo"]
    pp["g1"], pp["be1"] = p["g1"], p["be1"]
    pp["w1"], pp["b1"] = p["w1"].astype(bf16), p["b1"]
    pp["w2"], pp["b2"] = p["w2"].astype(bf16), p["b2"]
    # Fold eval-mode BN1 and norm2's gamma/beta into fc1:
    #   bn1(fc1(hhat*g2 + be2)) = hhat @ (diag(g2) @ (Wfc1*s1)) + (be2 @ (Wfc1*s1) + bfc1*s1 + t1)
    s1 = p["bn1_gamma"] / jnp.sqrt(p["bn1_var"] + BN_EPS)
    t1 = p["bn1_beta"] - p["bn1_mean"] * s1
    w_fc1 = p["fw1"] * s1                                   # (576,256) * (1,256)
    pp["fw1"] = (p["g2"].reshape(-1, 1) * w_fc1).astype(bf16)
    pp["fb1"] = p["be2"] @ w_fc1 + p["fb1"] * s1 + t1
    # Fold eval-mode BN2 into fc2.
    s2 = p["bn2_gamma"] / jnp.sqrt(p["bn2_var"] + BN_EPS)
    t2 = p["bn2_beta"] - p["bn2_mean"] * s2
    pp["fw2"] = (p["fw2"] * s2).astype(bf16)
    pp["fb2"] = p["fb2"] * s2 + t2
    # Lane-dense output: pad fc3 to 128 columns with zeros.
    fw3 = jnp.zeros((H2, NUM_CLASSES_PAD), jnp.float32).at[:, :NUM_CLASSES].set(p["fw3"])
    fb3 = jnp.zeros((1, NUM_CLASSES_PAD), jnp.float32).at[:, :NUM_CLASSES].set(p["fb3"])
    pp["fw3"] = fw3.astype(bf16)
    pp["fb3"] = fb3
    # TODO(synk): optional fp8 wa/w1/w2 path for v7x MXU (kept bf16 for accuracy).
    return pp


_PARAM_ORDER = ("wa", "ba", "g1", "be1", "w1", "b1", "w2", "b2",
                "fw1", "fb1", "fw2", "fb2", "fw3", "fb3")


@jax.jit
def small_transformer_mlp_classifier(x, pp):
    n = x.shape[0]
    tile_n, padded_n = _choose_tiling(n)
    if padded_n != n:
        x = jnp.pad(x, ((0, padded_n - n), (0, 0)))
    grid = (padded_n // tile_n,)

    weights = [pp[k] for k in _PARAM_ORDER]
    # Constant-index (resident), single-buffered blocks for every weight/bias.
    weight_specs = [
        pl.BlockSpec(w.shape, lambda i: (0, 0), pipeline_mode=pl.Buffered(1))
        for w in weights
    ]

    weight_bytes = sum(int(w.size) * w.dtype.itemsize for w in weights)
    flops_per_row = 2 * (D_MODEL * D_MODEL + 2 * D_MODEL * D_FF
                         + D_MODEL * H1 + H1 * H2 + H2 * NUM_CLASSES_PAD)
    cost = pl.CostEstimate(
        flops=padded_n * flops_per_row,
        transcendentals=2 * padded_n,
        bytes_accessed=padded_n * (D_MODEL + NUM_CLASSES_PAD) * 4 + weight_bytes,
    )

    out = pl.pallas_call(
        model_kernel,
        out_shape=jax.ShapeDtypeStruct((padded_n, NUM_CLASSES_PAD), jnp.float32),
        grid=grid,
        in_specs=[pl.BlockSpec((tile_n, D_MODEL), lambda i: (i, 0))] + weight_specs,
        out_specs=pl.BlockSpec((tile_n, NUM_CLASSES_PAD), lambda i: (i, 0)),
        compiler_params=pltpu.CompilerParams(
            dimension_semantics=("parallel",),
            vmem_limit_bytes=VMEM_LIMIT_BYTES),
        cost_estimate=cost,
    )(x, *weights)
    return out[:n, :NUM_CLASSES]


def reference_forward_fused(x, pp):
    """Pure-JAX reference with identical (bf16 matmul / f32 accum, folded) math."""
    bf16 = jnp.bfloat16
    attn = jnp.dot(x.astype(bf16), pp["wa"], preferred_element_type=jnp.float32) + pp["ba"]
    h = _ln_normalize(x + attn) * pp["g1"] + pp["be1"]
    ff = jnp.dot(h.astype(bf16), pp["w1"], preferred_element_type=jnp.float32) + pp["b1"]
    ff = jnp.maximum(ff.astype(bf16), 0)
    ff = jnp.dot(ff, pp["w2"], preferred_element_type=jnp.float32) + pp["b2"]
    hn = _ln_normalize(h + ff)
    z = jnp.dot(hn.astype(bf16), pp["fw1"], preferred_element_type=jnp.float32) + pp["fb1"]
    z = jnp.maximum(z.astype(bf16), 0)
    z = jnp.dot(z, pp["fw2"], preferred_element_type=jnp.float32) + pp["fb2"]
    z = jnp.maximum(z.astype(bf16), 0)
    out = jnp.dot(z, pp["fw3"], preferred_element_type=jnp.float32) + pp["fb3"]
    return out[:, :NUM_CLASSES]


def reference_forward_unfused(x, p):
    """Unfused pure-f32 reference mirroring the PyTorch eval-mode graph."""
    def ln(v, g, b):
        mu = jnp.mean(v, axis=-1, keepdims=True)
        var = jnp.mean((v - mu) ** 2, axis=-1, keepdims=True)
        return (v - mu) / jnp.sqrt(var + LN_EPS) * g + b

    def bn(v, g, b, m, var):
        return (v - m) / jnp.sqrt(var + BN_EPS) * g + b

    # seq_len == 1 self-attention: softmax over a single key == 1.
    attn = (x @ p["wv"] + p["bv"]) @ p["wo"] + p["bo"]
    h = ln(x + attn, p["g1"], p["be1"])
    ff = jnp.maximum(h @ p["w1"] + p["b1"], 0.0) @ p["w2"] + p["b2"]
    h = ln(h + ff, p["g2"], p["be2"])
    z = jnp.maximum(bn(h @ p["fw1"] + p["fb1"],
                       p["bn1_gamma"], p["bn1_beta"], p["bn1_mean"], p["bn1_var"]), 0.0)
    z = jnp.maximum(bn(z @ p["fw2"] + p["fb2"],
                       p["bn2_gamma"], p["bn2_beta"], p["bn2_mean"], p["bn2_var"]), 0.0)
    return z @ p["fw3"] + p["fb3"]


if __name__ == "__main__":
    key = jax.random.PRNGKey(0)
    k_x, k_x2, k_p = jax.random.split(key, 3)
    params = init_params(k_p)
    prepped = prepare_params(params)

    # Small-batch test (single grid step).
    batch = 8
    x = jax.random.normal(k_x, (batch, D_MODEL), jnp.float32)
    out = jax.block_until_ready(small_transformer_mlp_classifier(x, prepped))
    assert out.shape == (batch, NUM_CLASSES)
    ref_fused = reference_forward_fused(x, prepped)
    ref_f32 = reference_forward_unfused(x, params)
    assert jnp.allclose(out, ref_fused, atol=2e-2, rtol=2e-2), "mismatch vs fused reference"
    assert jnp.allclose(out, ref_f32, atol=5e-2, rtol=5e-2), "mismatch vs unfused f32 reference"

    # Uneven batch test (2 grid steps + row padding path).
    batch2 = 200
    x2 = jax.random.normal(k_x2, (batch2, D_MODEL), jnp.float32)
    out2 = jax.block_until_ready(small_transformer_mlp_classifier(x2, prepped))
    assert out2.shape == (batch2, NUM_CLASSES)
    ref2 = reference_forward_unfused(x2, params)
    assert jnp.allclose(out2, ref2, atol=5e-2, rtol=5e-2), "mismatch vs unfused f32 reference (batch 200)"

    print("KERNEL_OK")
</pallas_src>

<mosaic_0001>
module attributes {stable_mosaic.version = 11 : i64} {
  func.func @model_kernel(%arg0: i32, %arg1: memref<8x576xf32, #tpu.memory_space<vmem>>, %arg2: memref<576x576xbf16, #tpu.memory_space<vmem>>, %arg3: memref<1x576xf32, #tpu.memory_space<vmem>>, %arg4: memref<1x576xf32, #tpu.memory_space<vmem>>, %arg5: memref<1x576xf32, #tpu.memory_space<vmem>>, %arg6: memref<576x1024xbf16, #tpu.memory_space<vmem>>, %arg7: memref<1x1024xf32, #tpu.memory_space<vmem>>, %arg8: memref<1024x576xbf16, #tpu.memory_space<vmem>>, %arg9: memref<1x576xf32, #tpu.memory_space<vmem>>, %arg10: memref<576x256xbf16, #tpu.memory_space<vmem>>, %arg11: memref<1x256xf32, #tpu.memory_space<vmem>>, %arg12: memref<256x128xbf16, #tpu.memory_space<vmem>>, %arg13: memref<1x128xf32, #tpu.memory_space<vmem>>, %arg14: memref<128x128xbf16, #tpu.memory_space<vmem>>, %arg15: memref<1x128xf32, #tpu.memory_space<vmem>>, %arg16: memref<8x128xf32, #tpu.memory_space<vmem>>) attributes {dimension_semantics = [#tpu.dimension_semantics<parallel>], iteration_bounds = array<i64: 1>, scalar_prefetch = 0 : i64, scratch_operands = 0 : i64, tpu.core_type = #tpu.core_type<tc>, window_params = [{transform_indices = @transform_0, window_bounds = array<i64: 8, 576>}, {pipeline_mode = #tpu.pipeline_mode<synchronous>, transform_indices = @transform_1, window_bounds = array<i64: 576, 576>}, {pipeline_mode = #tpu.pipeline_mode<synchronous>, transform_indices = @transform_2, window_bounds = array<i64: 1, 576>}, {pipeline_mode = #tpu.pipeline_mode<synchronous>, transform_indices = @transform_3, window_bounds = array<i64: 1, 576>}, {pipeline_mode = #tpu.pipeline_mode<synchronous>, transform_indices = @transform_4, window_bounds = array<i64: 1, 576>}, {pipeline_mode = #tpu.pipeline_mode<synchronous>, transform_indices = @transform_5, window_bounds = array<i64: 576, 1024>}, {pipeline_mode = #tpu.pipeline_mode<synchronous>, transform_indices = @transform_6, window_bounds = array<i64: 1, 1024>}, {pipeline_mode = #tpu.pipeline_mode<synchronous>, transform_indices = @transform_7, window_bounds = array<i64: 1024, 576>}, {pipeline_mode = #tpu.pipeline_mode<synchronous>, transform_indices = @transform_8, window_bounds = array<i64: 1, 576>}, {pipeline_mode = #tpu.pipeline_mode<synchronous>, transform_indices = @transform_9, window_bounds = array<i64: 576, 256>}, {pipeline_mode = #tpu.pipeline_mode<synchronous>, transform_indices = @transform_10, window_bounds = array<i64: 1, 256>}, {pipeline_mode = #tpu.pipeline_mode<synchronous>, transform_indices = @transform_11, window_bounds = array<i64: 256, 128>}, {pipeline_mode = #tpu.pipeline_mode<synchronous>, transform_indices = @transform_12, window_bounds = array<i64: 1, 128>}, {pipeline_mode = #tpu.pipeline_mode<synchronous>, transform_indices = @transform_13, window_bounds = array<i64: 128, 128>}, {pipeline_mode = #tpu.pipeline_mode<synchronous>, transform_indices = @transform_14, window_bounds = array<i64: 1, 128>}, {transform_indices = @transform_15, window_bounds = array<i64: 8, 128>}]} {
    %c0 = arith.constant 0 : index
    %c0_0 = arith.constant 0 : index
    %0 = vector.load %arg1[%c0, %c0_0] : memref<8x576xf32, #tpu.memory_space<vmem>>, vector<8x576xf32>
    %1 = arith.truncf %0 : vector<8x576xf32> to vector<8x576xbf16>
    %c0_1 = arith.constant 0 : index
    %c0_2 = arith.constant 0 : index
    %2 = vector.load %arg2[%c0_1, %c0_2] : memref<576x576xbf16, #tpu.memory_space<vmem>>, vector<576x576xbf16>
    %cst = arith.constant dense<0.000000e+00> : vector<8x576xf32>
    %3 = tpu.matmul %1, %2, %cst {dimension_numbers = #tpu.dot_dimension_numbers<[1], [0], [0], [1], [0, 0, 1, 1], [], []>} : vector<8x576xbf16>, vector<576x576xbf16>, vector<8x576xf32> -> vector<8x576xf32>
    %c0_3 = arith.constant 0 : index
    %c0_4 = arith.constant 0 : index
    %4 = vector.load %arg3[%c0_3, %c0_4] : memref<1x576xf32, #tpu.memory_space<vmem>>, vector<1x576xf32>
    %5 = vector.broadcast %4 : vector<1x576xf32> to vector<8x576xf32>
    %6 = arith.addf %3, %5 : vector<8x576xf32>
    %7 = arith.addf %0, %6 : vector<8x576xf32>
    %cst_5 = arith.constant dense<0.000000e+00> : vector<8xf32>
    %8 = vector.multi_reduction <add>, %7, %cst_5 [1] : vector<8x576xf32> to vector<8xf32>
    %9 = vector.shape_cast %8 : vector<8xf32> to vector<8x1xf32>
    %cst_6 = arith.constant 0.00173611112 : f32
    %10 = vector.broadcast %cst_6 : f32 to vector<8x1xf32>
    %11 = arith.mulf %9, %10 : vector<8x1xf32>
    %12 = vector.broadcast %11 : vector<8x1xf32> to vector<8x576xf32>
    %13 = arith.subf %7, %12 : vector<8x576xf32>
    %14 = arith.mulf %13, %13 : vector<8x576xf32>
    %cst_7 = arith.constant dense<0.000000e+00> : vector<8xf32>
    %15 = vector.multi_reduction <add>, %14, %cst_7 [1] : vector<8x576xf32> to vector<8xf32>
    %16 = vector.shape_cast %15 : vector<8xf32> to vector<8x1xf32>
    %cst_8 = arith.constant 0.00173611112 : f32
    %17 = vector.broadcast %cst_8 : f32 to vector<8x1xf32>
    %18 = arith.mulf %16, %17 : vector<8x1xf32>
    %cst_9 = arith.constant 9.99999974E-6 : f32
    %19 = vector.broadcast %cst_9 : f32 to vector<8x1xf32>
    %20 = arith.addf %18, %19 : vector<8x1xf32>
    %21 = math.rsqrt %20 : vector<8x1xf32>
    %22 = vector.broadcast %21 : vector<8x1xf32> to vector<8x576xf32>
    %23 = arith.mulf %13, %22 : vector<8x576xf32>
    %c0_10 = arith.constant 0 : index
    %c0_11 = arith.constant 0 : index
    %24 = vector.load %arg4[%c0_10, %c0_11] : memref<1x576xf32, #tpu.memory_space<vmem>>, vector<1x576xf32>
    %25 = vector.broadcast %24 : vector<1x576xf32> to vector<8x576xf32>
    %26 = arith.mulf %23, %25 : vector<8x576xf32>
    %c0_12 = arith.constant 0 : index
    %c0_13 = arith.constant 0 : index
    %27 = vector.load %arg5[%c0_12, %c0_13] : memref<1x576xf32, #tpu.memory_space<vmem>>, vector<1x576xf32>
    %28 = vector.broadcast %27 : vector<1x576xf32> to vector<8x576xf32>
    %29 = arith.addf %26, %28 : vector<8x576xf32>
    %30 = arith.truncf %29 : vector<8x576xf32> to vector<8x576xbf16>
    %c0_14 = arith.constant 0 : index
    %c0_15 = arith.constant 0 : index
    %31 = vector.load %arg6[%c0_14, %c0_15] : memref<576x1024xbf16, #tpu.memory_space<vmem>>, vector<576x1024xbf16>
    %cst_16 = arith.constant dense<0.000000e+00> : vector<8x1024xf32>
    %32 = tpu.matmul %30, %31, %cst_16 {dimension_numbers = #tpu.dot_dimension_numbers<[1], [0], [0], [1], [0, 0, 1, 1], [], []>} : vector<8x576xbf16>, vector<576x1024xbf16>, vector<8x1024xf32> -> vector<8x1024xf32>
    %c0_17 = arith.constant 0 : index
    %c0_18 = arith.constant 0 : index
    %33 = vector.load %arg7[%c0_17, %c0_18] : memref<1x1024xf32, #tpu.memory_space<vmem>>, vector<1x1024xf32>
    %34 = vector.broadcast %33 : vector<1x1024xf32> to vector<8x1024xf32>
    %35 = arith.addf %32, %34 : vector<8x1024xf32>
    %36 = arith.truncf %35 : vector<8x1024xf32> to vector<8x1024xbf16>
    %cst_19 = arith.constant 0.000000e+00 : bf16
    %37 = vector.broadcast %cst_19 : bf16 to vector<8x1024xbf16>
    %38 = arith.maximumf %36, %37 : vector<8x1024xbf16>
    %c0_20 = arith.constant 0 : index
    %c0_21 = arith.constant 0 : index
    %39 = vector.load %arg8[%c0_20, %c0_21] : memref<1024x576xbf16, #tpu.memory_space<vmem>>, vector<1024x576xbf16>
    %cst_22 = arith.constant dense<0.000000e+00> : vector<8x576xf32>
    %40 = tpu.matmul %38, %39, %cst_22 {dimension_numbers = #tpu.dot_dimension_numbers<[1], [0], [0], [1], [0, 0, 1, 1], [], []>} : vector<8x1024xbf16>, vector<1024x576xbf16>, vector<8x576xf32> -> vector<8x576xf32>
    %c0_23 = arith.constant 0 : index
    %c0_24 = arith.constant 0 : index
    %41 = vector.load %arg9[%c0_23, %c0_24] : memref<1x576xf32, #tpu.memory_space<vmem>>, vector<1x576xf32>
    %42 = vector.broadcast %41 : vector<1x576xf32> to vector<8x576xf32>
    %43 = arith.addf %40, %42 : vector<8x576xf32>
    %44 = arith.addf %29, %43 : vector<8x576xf32>
    %cst_25 = arith.constant dense<0.000000e+00> : vector<8xf32>
    %45 = vector.multi_reduction <add>, %44, %cst_25 [1] : vector<8x576xf32> to vector<8xf32>
    %46 = vector.shape_cast %45 : vector<8xf32> to vector<8x1xf32>
    %cst_26 = arith.constant 0.00173611112 : f32
    %47 = vector.broadcast %cst_26 : f32 to vector<8x1xf32>
    %48 = arith.mulf %46, %47 : vector<8x1xf32>
    %49 = vector.broadcast %48 : vector<8x1xf32> to vector<8x576xf32>
    %50 = arith.subf %44, %49 : vector<8x576xf32>
    %51 = arith.mulf %50, %50 : vector<8x576xf32>
    %cst_27 = arith.constant dense<0.000000e+00> : vector<8xf32>
    %52 = vector.multi_reduction <add>, %51, %cst_27 [1] : vector<8x576xf32> to vector<8xf32>
    %53 = vector.shape_cast %52 : vector<8xf32> to vector<8x1xf32>
    %cst_28 = arith.constant 0.00173611112 : f32
    %54 = vector.broadcast %cst_28 : f32 to vector<8x1xf32>
    %55 = arith.mulf %53, %54 : vector<8x1xf32>
    %cst_29 = arith.constant 9.99999974E-6 : f32
    %56 = vector.broadcast %cst_29 : f32 to vector<8x1xf32>
    %57 = arith.addf %55, %56 : vector<8x1xf32>
    %58 = math.rsqrt %57 : vector<8x1xf32>
    %59 = vector.broadcast %58 : vector<8x1xf32> to vector<8x576xf32>
    %60 = arith.mulf %50, %59 : vector<8x576xf32>
    %61 = arith.truncf %60 : vector<8x576xf32> to vector<8x576xbf16>
    %c0_30 = arith.constant 0 : index
    %c0_31 = arith.constant 0 : index
    %62 = vector.load %arg10[%c0_30, %c0_31] : memref<576x256xbf16, #tpu.memory_space<vmem>>, vector<576x256xbf16>
    %cst_32 = arith.constant dense<0.000000e+00> : vector<8x256xf32>
    %63 = tpu.matmul %61, %62, %cst_32 {dimension_numbers = #tpu.dot_dimension_numbers<[1], [0], [0], [1], [0, 0, 1, 1], [], []>} : vector<8x576xbf16>, vector<576x256xbf16>, vector<8x256xf32> -> vector<8x256xf32>
    %c0_33 = arith.constant 0 : index
    %c0_34 = arith.constant 0 : index
    %64 = vector.load %arg11[%c0_33, %c0_34] : memref<1x256xf32, #tpu.memory_space<vmem>>, vector<1x256xf32>
    %65 = vector.broadcast %64 : vector<1x256xf32> to vector<8x256xf32>
    %66 = arith.addf %63, %65 : vector<8x256xf32>
    %67 = arith.truncf %66 : vector<8x256xf32> to vector<8x256xbf16>
    %cst_35 = arith.constant 0.000000e+00 : bf16
    %68 = vector.broadcast %cst_35 : bf16 to vector<8x256xbf16>
    %69 = arith.maximumf %67, %68 : vector<8x256xbf16>
    %c0_36 = arith.constant 0 : index
    %c0_37 = arith.constant 0 : index
    %70 = vector.load %arg12[%c0_36, %c0_37] : memref<256x128xbf16, #tpu.memory_space<vmem>>, vector<256x128xbf16>
    %cst_38 = arith.constant dense<0.000000e+00> : vector<8x128xf32>
    %71 = tpu.matmul %69, %70, %cst_38 {dimension_numbers = #tpu.dot_dimension_numbers<[1], [0], [0], [1], [0, 0, 1, 1], [], []>} : vector<8x256xbf16>, vector<256x128xbf16>, vector<8x128xf32> -> vector<8x128xf32>
    %c0_39 = arith.constant 0 : index
    %c0_40 = arith.constant 0 : index
    %72 = vector.load %arg13[%c0_39, %c0_40] : memref<1x128xf32, #tpu.memory_space<vmem>>, vector<1x128xf32>
    %73 = vector.broadcast %72 : vector<1x128xf32> to vector<8x128xf32>
    %74 = arith.addf %71, %73 : vector<8x128xf32>
    %75 = arith.truncf %74 : vector<8x128xf32> to vector<8x128xbf16>
    %cst_41 = arith.constant 0.000000e+00 : bf16
    %76 = vector.broadcast %cst_41 : bf16 to vector<8x128xbf16>
    %77 = arith.maximumf %75, %76 : vector<8x128xbf16>
    %c0_42 = arith.constant 0 : index
    %c0_43 = arith.constant 0 : index
    %78 = vector.load %arg14[%c0_42, %c0_43] : memref<128x128xbf16, #tpu.memory_space<vmem>>, vector<128x128xbf16>
    %cst_44 = arith.constant dense<0.000000e+00> : vector<8x128xf32>
    %79 = tpu.matmul %77, %78, %cst_44 {dimension_numbers = #tpu.dot_dimension_numbers<[1], [0], [0], [1], [0, 0, 1, 1], [], []>} : vector<8x128xbf16>, vector<128x128xbf16>, vector<8x128xf32> -> vector<8x128xf32>
    %c0_45 = arith.constant 0 : index
    %c0_46 = arith.constant 0 : index
    %80 = vector.load %arg15[%c0_45, %c0_46] : memref<1x128xf32, #tpu.memory_space<vmem>>, vector<1x128xf32>
    %81 = vector.broadcast %80 : vector<1x128xf32> to vector<8x128xf32>
    %82 = arith.addf %79, %81 : vector<8x128xf32>
    %c0_47 = arith.constant 0 : index
    %c0_48 = arith.constant 0 : index
    %83 = vector.load %arg16[%c0_47, %c0_48] : memref<8x128xf32, #tpu.memory_space<vmem>>, vector<8x128xf32>
    tpu.vector_store %arg16[%c0_47, %c0_48], %82 {strides = array<i32>} : memref<8x128xf32, #tpu.memory_space<vmem>>, vector<8x128xf32>,
    return
  }
  func.func @transform_0(%arg0: i32) -> (i32, i32) {
    %c0_i32 = arith.constant 0 : i32
    %c0_i32_0 = arith.constant 0 : i32
    return %arg0, %c0_i32 : i32, i32
  }
  func.func @transform_1(%arg0: i32) -> (i32, i32) {
    %c0_i32 = arith.constant 0 : i32
    %c0_i32_0 = arith.constant 0 : i32
    %c0_i32_1 = arith.constant 0 : i32
    return %c0_i32, %c0_i32_0 : i32, i32
  }
  func.func @transform_2(%arg0: i32) -> (i32, i32) {
    %c0_i32 = arith.constant 0 : i32
    %c0_i32_0 = arith.constant 0 : i32
    %c0_i32_1 = arith.constant 0 : i32
    return %c0_i32, %c0_i32_0 : i32, i32
  }
  func.func @transform_3(%arg0: i32) -> (i32, i32) {
    %c0_i32 = arith.constant 0 : i32
    %c0_i32_0 = arith.constant 0 : i32
    %c0_i32_1 = arith.constant 0 : i32
    return %c0_i32, %c0_i32_0 : i32, i32
  }
  func.func @transform_4(%arg0: i32) -> (i32, i32) {
    %c0_i32 = arith.constant 0 : i32
    %c0_i32_0 = arith.constant 0 : i32
    %c0_i32_1 = arith.constant 0 : i32
    return %c0_i32, %c0_i32_0 : i32, i32
  }
  func.func @transform_5(%arg0: i32) -> (i32, i32) {
    %c0_i32 = arith.constant 0 : i32
    %c0_i32_0 = arith.constant 0 : i32
    %c0_i32_1 = arith.constant 0 : i32
    return %c0_i32, %c0_i32_0 : i32, i32
  }
  func.func @transform_6(%arg0: i32) -> (i32, i32) {
    %c0_i32 = arith.constant 0 : i32
    %c0_i32_0 = arith.constant 0 : i32
    %c0_i32_1 = arith.constant 0 : i32
    return %c0_i32, %c0_i32_0 : i32, i32
  }
  func.func @transform_7(%arg0: i32) -> (i32, i32) {
    %c0_i32 = arith.constant 0 : i32
    %c0_i32_0 = arith.constant 0 : i32
    %c0_i32_1 = arith.constant 0 : i32
    return %c0_i32, %c0_i32_0 : i32, i32
  }
  func.func @transform_8(%arg0: i32) -> (i32, i32) {
    %c0_i32 = arith.constant 0 : i32
    %c0_i32_0 = arith.constant 0 : i32
    %c0_i32_1 = arith.constant 0 : i32
    return %c0_i32, %c0_i32_0 : i32, i32
  }
  func.func @transform_9(%arg0: i32) -> (i32, i32) {
    %c0_i32 = arith.constant 0 : i32
    %c0_i32_0 = arith.constant 0 : i32
    %c0_i32_1 = arith.constant 0 : i32
    return %c0_i32, %c0_i32_0 : i32, i32
  }
  func.func @transform_10(%arg0: i32) -> (i32, i32) {
    %c0_i32 = arith.constant 0 : i32
    %c0_i32_0 = arith.constant 0 : i32
    %c0_i32_1 = arith.constant 0 : i32
    return %c0_i32, %c0_i32_0 : i32, i32
  }
  func.func @transform_11(%arg0: i32) -> (i32, i32) {
    %c0_i32 = arith.constant 0 : i32
    %c0_i32_0 = arith.constant 0 : i32
    %c0_i32_1 = arith.constant 0 : i32
    return %c0_i32, %c0_i32_0 : i32, i32
  }
  func.func @transform_12(%arg0: i32) -> (i32, i32) {
    %c0_i32 = arith.constant 0 : i32
    %c0_i32_0 = arith.constant 0 : i32
    %c0_i32_1 = arith.constant 0 : i32
    return %c0_i32, %c0_i32_0 : i32, i32
  }
  func.func @transform_13(%arg0: i32) -> (i32, i32) {
    %c0_i32 = arith.constant 0 : i32
    %c0_i32_0 = arith.constant 0 : i32
    %c0_i32_1 = arith.constant 0 : i32
    return %c0_i32, %c0_i32_0 : i32, i32
  }
  func.func @transform_14(%arg0: i32) -> (i32, i32) {
    %c0_i32 = arith.constant 0 : i32
    %c0_i32_0 = arith.constant 0 : i32
    %c0_i32_1 = arith.constant 0 : i32
    return %c0_i32, %c0_i32_0 : i32, i32
  }
  func.func @transform_15(%arg0: i32) -> (i32, i32) {
    %c0_i32 = arith.constant 0 : i32
    %c0_i32_0 = arith.constant 0 : i32
    return %arg0, %c0_i32 : i32, i32
  }
}

</mosaic_0001>

<bundles_post_ra>
// kernel: small_transformer_mlp_classifier.1
= control target key start
LH: loop header
LB: loop body
LE: loop exit
PB: predicated region body
PF: predicated region fallthrough
CT: control target
= control target key end

     0   :  { %vm1241_vm0 = vcmask 523264   ;;  %vm9497_vm1 = vmmov 0   ;;  %s12612_s0 = inlined_call_operand.vmem [shape: f32[8,576], index: 0, kind: input, shape index: {}]   ;;  %s12613_s1 = inlined_call_operand.vmem [shape: bf16[576,576], index: 1, kind: input, shape index: {}]   ;;  %s12614_s2 = inlined_call_operand.vmem [shape: f32[1,576], index: 2, kind: input, shape index: {}]   ;;  %s12615_s3 = inlined_call_operand.vmem [shape: f32[1,576], index: 3, kind: input, shape index: {}]   ;;  %s12616_s4 = inlined_call_operand.vmem [shape: f32[1,576], index: 4, kind: input, shape index: {}]   ;;  %s12617_s5 = inlined_call_operand.vmem [shape: bf16[576,1024], index: 5, kind: input, shape index: {}]   ;;  %s12618_s6 = inlined_call_operand.vmem [shape: f32[1,1024], index: 6, kind: input, shape index: {}]   ;;  %s12619_s7 = inlined_call_operand.vmem [shape: bf16[1024,576], index: 7, kind: input, shape index: {}]   ;;  %s12620_s8 = inlined_call_operand.vmem [shape: f32[1,576], index: 8, kind: input, shape index: {}]   ;;  %s12621_s9 = inlined_call_operand.vmem [shape: bf16[576,256], index: 9, kind: input, shape index: {}]   ;;  %s12622_s10 = inlined_call_operand.vmem [shape: f32[1,256], index: 10, kind: input, shape index: {}]   ;;  %s12623_s11 = inlined_call_operand.vmem [shape: bf16[256,128], index: 11, kind: input, shape index: {}]   ;;  %s12624_s12 = inlined_call_operand.vmem [shape: f32[1,128], index: 12, kind: input, shape index: {}]   ;;  %s12625_s13 = inlined_call_operand.vmem [shape: bf16[128,128], index: 13, kind: input, shape index: {}]   ;;  %s12626_s14 = inlined_call_operand.vmem [shape: f32[1,128], index: 14, kind: input, shape index: {}]   ;;  %s12627_s15 = inlined_call_operand.hbm [shape: f32[8,128], index: 15, kind: output, shape index: {}]  }
   0x1   :  { %v8630_v0 = vld [vmem:[%s12613_s1 + $0x4] ss:$20 sps:$4 sm:$0xff]   ;;  %v8632_v1 = vld [vmem:[%s12613_s1] ss:$20 sps:$4 sm:$0xff]   ;;  %v8638_v5 = vld [vmem:[%s12613_s1 + $0x28] ss:$20 sps:$4 sm:$0xff]  }
   0x2   :  { %1245 = vmatprep.subr.bf16.mxu0 %v8630_v0  ;;  %v8633_v2 = vld [vmem:[%s12613_s1 + $0x284] ss:$20 sps:$4 sm:$0xff]   ;;  %v8635_v3 = vld [vmem:[%s12613_s1 + $0x280] ss:$20 sps:$4 sm:$0xff]   ;;  %v8641_v7 = vld [vmem:[%s12613_s1 + $0x2a8] ss:$20 sps:$4 sm:$0xff]  }
   0x3   :  { %1246 = vmatpush1.bf16.msra.mxu0 %v8632_v1  ;;  %v8636_v4 = vld [vmem:[%s12613_s1 + $0x2c] ss:$20 sps:$4 sm:$0xff]   ;;  %1286 = vmatprep.subr.bf16.mxu1 %v8633_v2  ;;  %v8642_v8 = vld [vmem:[%s12613_s1 + $0x54] ss:$20 sps:$4 sm:$0xff]   ;;  %v8644_v9 = vld [vmem:[%s12613_s1 + $0x50] ss:$20 sps:$4 sm:$0xff]  }
   0x4   :  { %v8639_v6 = vld [vmem:[%s12613_s1 + $0x2ac] ss:$20 sps:$4 sm:$0xff]   ;;  %1287 = vmatpush1.bf16.msra.mxu1 %v8635_v3  ;;  %1247 = vmatprep.subr.bf16.mxu0 %v8636_v4  ;;  %v8645_v10 = vld [vmem:[%s12613_s1 + $0x2d4] ss:$20 sps:$4 sm:$0xff]   ;;  %v8648_v11 = vld [vmem:[%s12613_s1 + $0x7c] ss:$20 sps:$4 sm:$0xff]  }
   0x5   :  { %1288 = vmatprep.subr.bf16.mxu1 %v8639_v6  ;;  %v8647_v12 = vld [vmem:[%s12613_s1 + $0x2d0] ss:$20 sps:$4 sm:$0xff]   ;;  %v8650_v14 = vld [vmem:[%s12613_s1 + $0x78] ss:$20 sps:$4 sm:$0xff]   ;;  %v8656_v18 = vld [vmem:[%s12613_s1 + $0xa0] ss:$20 sps:$4 sm:$0xff]  }
   0x6   :  { %v8651_v13 = vld [vmem:[%s12613_s1 + $0x2fc] ss:$20 sps:$4 sm:$0xff]   ;;  %v8654_v15 = vld [vmem:[%s12613_s1 + $0xa4] ss:$20 sps:$4 sm:$0xff]   ;;  %v8660_v19 = vld [vmem:[%s12613_s1 + $0xcc] ss:$20 sps:$4 sm:$0xff]  }
   0x7   :  { %1248 = vmatpush1.bf16.msra.mxu0 %v8638_v5  ;;  %v8653_v16 = vld [vmem:[%s12613_s1 + $0x2f8] ss:$20 sps:$4 sm:$0xff]   ;;  %v8659_v20 = vld [vmem:[%s12613_s1 + $0x320] ss:$20 sps:$4 sm:$0xff]   ;;  %v8662_v22 = vld [vmem:[%s12613_s1 + $0xc8] ss:$20 sps:$4 sm:$0xff]  }
   0x8   :  { %1249 = vmatprep.subr.bf16.mxu0 %v8642_v8  ;;  %1289 = vmatpush1.bf16.msra.mxu1 %v8641_v7  ;;  %v8657_v17 = vld [vmem:[%s12613_s1 + $0x324] ss:$20 sps:$4 sm:$0xff]   ;;  %v8663_v21 = vld [vmem:[%s12613_s1 + $0x34c] ss:$20 sps:$4 sm:$0xff]   ;;  %v8666_v23 = vld [vmem:[%s12613_s1 + $0xf4] ss:$20 sps:$4 sm:$0xff]  }
   0x9   :  { %1290 = vmatprep.subr.bf16.mxu1 %v8645_v10  ;;  %v8665_v24 = vld [vmem:[%s12613_s1 + $0x348] ss:$20 sps:$4 sm:$0xff]   ;;  %v8668_v26 = vld [vmem:[%s12613_s1 + $0xf0] ss:$20 sps:$4 sm:$0xff]   ;;  %v8674_v30 = vld [vmem:[%s12613_s1 + $0x118] ss:$20 sps:$4 sm:$0xff]  }
   0xa   :  { %v8669_v25 = vld [vmem:[%s12613_s1 + $0x374] ss:$20 sps:$4 sm:$0xff]   ;;  %v8672_v27 = vld [vmem:[%s12613_s1 + $0x11c] ss:$20 sps:$4 sm:$0xff]   ;;  %v8678_v31 = vld [vmem:[%s12613_s1 + $0x144] ss:$20 sps:$4 sm:$0xff]  }
   0xb   :  { %1250 = vmatpush1.bf16.msra.mxu0 %v8644_v9  ;;  %v8671_v28 = vld [vmem:[%s12613_s1 + $0x370] ss:$20 sps:$4 sm:$0xff]   ;;  %v8677_v32 = vld [vmem:[%s12613_s1 + $0x398] ss:$20 sps:$4 sm:$0xff]   ;;  %v8680_v34 = vld [vmem:[%s12613_s1 + $0x140] ss:$20 sps:$4 sm:$0xff]  }
   0xc   :  { %1251 = vmatprep.subr.bf16.mxu0 %v8648_v11  ;;  %1291 = vmatpush1.bf16.msra.mxu1 %v8647_v12  ;;  %v8675_v29 = vld [vmem:[%s12613_s1 + $0x39c] ss:$20 sps:$4 sm:$0xff]   ;;  %v8681_v33 = vld [vmem:[%s12613_s1 + $0x3c4] ss:$20 sps:$4 sm:$0xff]   ;;  %v8684_v35 = vld [vmem:[%s12613_s1 + $0x16c] ss:$20 sps:$4 sm:$0xff]  }
   0xd   :  { %1292 = vmatprep.subr.bf16.mxu1 %v8651_v13  ;;  %v8683_v36 = vld [vmem:[%s12613_s1 + $0x3c0] ss:$20 sps:$4 sm:$0xff]   ;;  %v8686_v38 = vld [vmem:[%s12613_s1 + $0x168] ss:$20 sps:$4 sm:$0xff]   ;;  %v8692_v42 = vld [vmem:[%s12613_s1 + $0x190] ss:$20 sps:$4 sm:$0xff]  }
   0xe   :  { %v8687_v37 = vld [vmem:[%s12613_s1 + $0x3ec] ss:$20 sps:$4 sm:$0xff]   ;;  %v8690_v39 = vld [vmem:[%s12613_s1 + $0x194] ss:$20 sps:$4 sm:$0xff]   ;;  %v8696_v43 = vld [vmem:[%s12613_s1 + $0x1bc] ss:$20 sps:$4 sm:$0xff]  }
   0xf   :  { %1252 = vmatpush1.bf16.msra.mxu0 %v8650_v14  ;;  %v8689_v40 = vld [vmem:[%s12613_s1 + $0x3e8] ss:$20 sps:$4 sm:$0xff]   ;;  %v8695_v44 = vld [vmem:[%s12613_s1 + $0x410] ss:$20 sps:$4 sm:$0xff]   ;;  %v8698_v47 = vld [vmem:[%s12613_s1 + $0x1b8] ss:$20 sps:$4 sm:$0xff]  }
  0x10   :  { %1253 = vmatprep.subr.bf16.mxu0 %v8654_v15  ;;  %1293 = vmatpush1.bf16.msra.mxu1 %v8653_v16  ;;  %v8693_v41 = vld [vmem:[%s12613_s1 + $0x414] ss:$20 sps:$4 sm:$0xff]   ;;  %v8699_v45 = vld [vmem:[%s12613_s1 + $0x43c] ss:$20 sps:$4 sm:$0xff]   ;;  %v8702_v49 = vld [vmem:[%s12613_s1 + $0x1e4] ss:$20 sps:$4 sm:$0xff]  }
  0x11   :  { %1294 = vmatprep.subr.bf16.mxu1 %v8657_v17  ;;  %v53_v46 = vld [vmem:[%s12612_s0 + $0x8] sm:$0xff]  ;;  %v55_v50 = vld [vmem:[%s12612_s0 + $0x18] sm:$0xff]  ;;  %v8704_v54 = vld [vmem:[%s12613_s1 + $0x1e0] ss:$20 sps:$4 sm:$0xff]   ;;  %v9495_v15 = vmov 0  }
  0x12   :  { %v9723_v48 = vpack.c.bf16 %v53_v46, %v53_v46  ;;  %v8701_v51 = vld [vmem:[%s12613_s1 + $0x438] ss:$20 sps:$4 sm:$0xff]   ;;  %v9735_v52 = vpack.c.bf16 %v55_v50, %v55_v50  ;;  %v8707_v56 = vld [vmem:[%s12613_s1 + $0x460] ss:$20 sps:$4 sm:$0xff]   ;;  %v8710_v58 = vld [vmem:[%s12613_s1 + $0x208] ss:$20 sps:$4 sm:$0xff]  }
  0x13   :  { %1254 = vmatpush1.bf16.msra.mxu0 %v8656_v18  ;;  %v8705_v53 = vld [vmem:[%s12613_s1 + $0x464] ss:$20 sps:$4 sm:$0xff]   ;;  %v8708_v55 = vld [vmem:[%s12613_s1 + $0x20c] ss:$20 sps:$4 sm:$0xff]   ;;  %v8714_v59 = vld [vmem:[%s12613_s1 + $0x234] ss:$20 sps:$4 sm:$0xff]  }
  0x14   :  { %1255 = vmatprep.subr.bf16.mxu0 %v8660_v19  ;;  %1295 = vmatpush1.bf16.msra.mxu1 %v8659_v20  ;;  %v8711_v57 = vld [vmem:[%s12613_s1 + $0x48c] ss:$20 sps:$4 sm:$0xff]   ;;  %v8713_v60 = vld [vmem:[%s12613_s1 + $0x488] ss:$20 sps:$4 sm:$0xff]   ;;  %v8716_v62 = vld [vmem:[%s12613_s1 + $0x230] ss:$20 sps:$4 sm:$0xff]  }
  0x15   :  { %1296 = vmatprep.subr.bf16.mxu1 %v8663_v21  ;;  %1277 = vmatprep.mubr.bf16.mxu0 %v9723_v48  ;;  %v8717_v61 = vld [vmem:[%s12613_s1 + $0x4b4] ss:$20 sps:$4 sm:$0xff]   ;;  %v8720_v63 = vld [vmem:[%s12613_s1 + $0x25c] ss:$20 sps:$4 sm:$0xff]   ;;  %v8722_v1 = vld [vmem:[%s12613_s1 + $0x258] ss:$20 sps:$4 sm:$0xff]  }
  0x16   :  { %1318 = vmatprep.mubr.bf16.mxu1 %v9735_v52  ;;  %v8719_v0 = vld [vmem:[%s12613_s1 + $0x4b0] ss:$20 sps:$4 sm:$0xff]   ;;  %v8725_v5 = vld [vmem:[%s12613_s1 + $0x4d8] ss:$20 sps:$4 sm:$0xff]   ;;  %v8726_v9 = vld [vmem:[%s12613_s1 + $0x500] ss:$20 sps:$4 sm:$0xff]  }
  0x17   :  { %1256 = vmatpush1.bf16.msra.mxu0 %v8662_v22  ;;  %v8723_v2 = vld [vmem:[%s12613_s1 + $0x4dc] ss:$20 sps:$4 sm:$0xff]   ;;  %v52_v3 = vld [vmem:[%s12612_s0] sm:$0xff]  ;;  %v8737_v13 = vld [vmem:[%s12613_s1 + $0x34] ss:$20 sps:$4 sm:$0xff]  }
  0x18   :  { %1257 = vmatprep.subr.bf16.mxu0 %v8666_v23  ;;  %1297 = vmatpush1.bf16.msra.mxu1 %v8665_v24  ;;  %v8728_v4 = vld [vmem:[%s12613_s1 + $0x504] ss:$20 sps:$4 sm:$0xff]   ;;  %v54_v6 = vld [vmem:[%s12612_s0 + $0x10] sm:$0xff]  ;;  %v9792_v7 = vpack.c.bf16 %v52_v3, %v52_v3  ;;  %v8731_v8 = vld [vmem:[%s12613_s1 + $0xc] ss:$20 sps:$4 sm:$0xff]  }
  0x19   :  { %1298 = vmatprep.subr.bf16.mxu1 %v8669_v25  ;;  %v9800_v10 = vpack.c.bf16 %v54_v6, %v54_v6  ;;  %v8734_v11 = vld [vmem:[%s12613_s1 + $0x52c] ss:$20 sps:$4 sm:$0xff]   ;;  %v8729_v12 = vld [vmem:[%s12613_s1 + $0x8] ss:$20 sps:$4 sm:$0xff]   ;;  %v8735_v17 = vld [vmem:[%s12613_s1 + $0x30] ss:$20 sps:$4 sm:$0xff]  }
  0x1a   :  { %v8732_v14 = vld [vmem:[%s12613_s1 + $0x528] ss:$20 sps:$4 sm:$0xff]   ;;  %v8738_v19 = vld [vmem:[%s12613_s1 + $0x550] ss:$20 sps:$4 sm:$0xff]   ;;  %v8741_v21 = vld [vmem:[%s12613_s1 + $0x58] ss:$20 sps:$4 sm:$0xff]  }
  0x1b   :  { %1258 = vmatpush1.bf16.msra.mxu0 %v8668_v26  ;;  %v8740_v16 = vld [vmem:[%s12613_s1 + $0x554] ss:$20 sps:$4 sm:$0xff]   ;;  %v8743_v18 = vld [vmem:[%s12613_s1 + $0x5c] ss:$20 sps:$4 sm:$0xff]   ;;  %v8744_v22 = vld [vmem:[%s12613_s1 + $0x578] ss:$20 sps:$4 sm:$0xff]  }
  0x1c   :  { %1259 = vmatprep.subr.bf16.mxu0 %v8672_v27  ;;  %1299 = vmatpush1.bf16.msra.mxu1 %v8671_v28  ;;  %v8746_v20 = vld [vmem:[%s12613_s1 + $0x57c] ss:$20 sps:$4 sm:$0xff]   ;;  %v8749_v23 = vld [vmem:[%s12613_s1 + $0x84] ss:$20 sps:$4 sm:$0xff]   ;;  %v8752_v25 = vld [vmem:[%s12613_s1 + $0x28c] ss:$20 sps:$4 sm:$0xff]  }
  0x1d   :  { %1300 = vmatprep.subr.bf16.mxu1 %v8675_v29  ;;  %v56_v24 = vld [vmem:[%s12612_s0 + $0x20] sm:$0xff]  ;;  %v8750_v29 = vld [vmem:[%s12613_s1 + $0x288] ss:$20 sps:$4 sm:$0xff]   ;;  %v8810_v6 = vld [vmem:[%s12613_s1 + $0x418] ss:$20 sps:$4 sm:$0xff]  }
  0x1e   :  { %v8747_v26 = vld [vmem:[%s12613_s1 + $0x80] ss:$20 sps:$4 sm:$0xff]   ;;  %v9851_v27 = vpack.c.bf16 %v56_v24, %v56_v24  ;;  %v8836_v24 = vld [vmem:[%s12613_s1 + $0x4bc] ss:$20 sps:$4 sm:$0xff]  }
  0x1f   :  { %1260 = vmatpush1.bf16.msra.mxu0 %v8674_v30  ;;  %v8755_v28 = vld [vmem:[%s12613_s1 + $0xac] ss:$20 sps:$4 sm:$0xff]   ;;  %v8758_v30 = vld [vmem:[%s12613_s1 + $0x2b4] ss:$20 sps:$4 sm:$0xff]  }
  0x20   :  { %1261 = vmatprep.subr.bf16.mxu0 %v8678_v31  ;;  %1301 = vmatpush1.bf16.msra.mxu1 %v8677_v32  ;;  %v8753_v31 = vld [vmem:[%s12613_s1 + $0xa8] ss:$20 sps:$4 sm:$0xff]  }
  0x21   :  { %1302 = vmatprep.subr.bf16.mxu1 %v8681_v33  ;;  %v8761_v32 = vld [vmem:[%s12613_s1 + $0xd4] ss:$20 sps:$4 sm:$0xff]   ;;  %v8756_v33 = vld [vmem:[%s12613_s1 + $0x2b0] ss:$20 sps:$4 sm:$0xff]  }
  0x22   :  { %v8782_v46 = vld [vmem:[%s12613_s1 + $0x354] ss:$20 sps:$4 sm:$0xff]  }
  0x23   :  { %1262 = vmatpush1.bf16.msra.mxu0 %v8680_v34  ;;  %v8764_v34 = vld [vmem:[%s12613_s1 + $0x2dc] ss:$20 sps:$4 sm:$0xff]   ;;  %v8785_v50 = vld [vmem:[%s12613_s1 + $0x174] ss:$20 sps:$4 sm:$0xff]  }
  0x24   :  { %1263 = vmatprep.subr.bf16.mxu0 %v8684_v35  ;;  %1303 = vmatpush1.bf16.msra.mxu1 %v8683_v36  ;;  %v8759_v35 = vld [vmem:[%s12613_s1 + $0xd0] ss:$20 sps:$4 sm:$0xff]   ;;  %v8809_v3 = vld [vmem:[%s12613_s1 + $0x214] ss:$20 sps:$4 sm:$0xff]  }
  0x25   :  { %1304 = vmatprep.subr.bf16.mxu1 %v8687_v37  ;;  %v8767_v36 = vld [vmem:[%s12613_s1 + $0xfc] ss:$20 sps:$4 sm:$0xff]   ;;  %v8762_v37 = vld [vmem:[%s12613_s1 + $0x2d8] ss:$20 sps:$4 sm:$0xff]  }
  0x27   :  { %1264 = vmatpush1.bf16.msra.mxu0 %v8686_v38  ;;  %v8770_v38 = vld [vmem:[%s12613_s1 + $0x304] ss:$20 sps:$4 sm:$0xff]  }
  0x28   :  { %1265 = vmatprep.subr.bf16.mxu0 %v8690_v39  ;;  %1305 = vmatpush1.bf16.msra.mxu1 %v8689_v40  ;;  %v8765_v39 = vld [vmem:[%s12613_s1 + $0xf8] ss:$20 sps:$4 sm:$0xff]  }
  0x29   :  { %1306 = vmatprep.subr.bf16.mxu1 %v8693_v41  ;;  %v8773_v40 = vld [vmem:[%s12613_s1 + $0x124] ss:$20 sps:$4 sm:$0xff]   ;;  %v8768_v41 = vld [vmem:[%s12613_s1 + $0x300] ss:$20 sps:$4 sm:$0xff]  }
  0x2b   :  { %1266 = vmatpush1.bf16.msra.mxu0 %v8692_v42  ;;  %v8776_v42 = vld [vmem:[%s12613_s1 + $0x32c] ss:$20 sps:$4 sm:$0xff]  }
  0x2c   :  { %1267 = vmatprep.subr.bf16.mxu0 %v8696_v43  ;;  %1307 = vmatpush1.bf16.msra.mxu1 %v8695_v44  ;;  %v8771_v43 = vld [vmem:[%s12613_s1 + $0x120] ss:$20 sps:$4 sm:$0xff]  }
  0x2d   :  { %1308 = vmatprep.subr.bf16.mxu1 %v8699_v45  ;;  %v8779_v44 = vld [vmem:[%s12613_s1 + $0x14c] ss:$20 sps:$4 sm:$0xff]   ;;  %v8774_v45 = vld [vmem:[%s12613_s1 + $0x328] ss:$20 sps:$4 sm:$0xff]  }
  0x2f   :  { %1268 = vmatpush1.bf16.msra.mxu0 %v8698_v47  ;;  %v8777_v47 = vld [vmem:[%s12613_s1 + $0x148] ss:$20 sps:$4 sm:$0xff]  }
  0x30   :  { %1269 = vmatprep.subr.bf16.mxu0 %v8702_v49  ;;  %1309 = vmatpush1.bf16.msra.mxu1 %v8701_v51  ;;  %v8780_v49 = vld [vmem:[%s12613_s1 + $0x350] ss:$20 sps:$4 sm:$0xff]  }
  0x31   :  { %1310 = vmatprep.subr.bf16.mxu1 %v8705_v53  ;;  %v8783_v51 = vld [vmem:[%s12613_s1 + $0x170] ss:$20 sps:$4 sm:$0xff]  }
  0x32   :  { %v8788_v53 = vld [vmem:[%s12613_s1 + $0x37c] ss:$20 sps:$4 sm:$0xff]  }
  0x33   :  { %1270 = vmatpush1.bf16.msra.mxu0 %v8704_v54  ;;  %v8786_v54 = vld [vmem:[%s12613_s1 + $0x378] ss:$20 sps:$4 sm:$0xff]  }
  0x34   :  { %1271 = vmatprep.subr.bf16.mxu0 %v8708_v55  ;;  %1311 = vmatpush1.bf16.msra.mxu1 %v8707_v56  ;;  %v8791_v55 = vld [vmem:[%s12613_s1 + $0x19c] ss:$20 sps:$4 sm:$0xff]   ;;  %v8789_v56 = vld [vmem:[%s12613_s1 + $0x198] ss:$20 sps:$4 sm:$0xff]  }
  0x35   :  { %1312 = vmatprep.subr.bf16.mxu1 %v8711_v57  ;;  %v8794_v57 = vld [vmem:[%s12613_s1 + $0x3a4] ss:$20 sps:$4 sm:$0xff]  }
  0x37   :  { %1272 = vmatpush1.bf16.msra.mxu0 %v8710_v58  ;;  %v8792_v58 = vld [vmem:[%s12613_s1 + $0x3a0] ss:$20 sps:$4 sm:$0xff]  }
  0x38   :  { %1273 = vmatprep.subr.bf16.mxu0 %v8714_v59  ;;  %1313 = vmatpush1.bf16.msra.mxu1 %v8713_v60  ;;  %v8797_v59 = vld [vmem:[%s12613_s1 + $0x1c4] ss:$20 sps:$4 sm:$0xff]   ;;  %v8795_v60 = vld [vmem:[%s12613_s1 + $0x1c0] ss:$20 sps:$4 sm:$0xff]  }
  0x39   :  { %1314 = vmatprep.subr.bf16.mxu1 %v8717_v61  ;;  %v8800_v61 = vld [vmem:[%s12613_s1 + $0x3cc] ss:$20 sps:$4 sm:$0xff]  }
  0x3b   :  { %1274 = vmatpush1.bf16.msra.mxu0 %v8716_v62  ;;  %v8798_v62 = vld [vmem:[%s12613_s1 + $0x3c8] ss:$20 sps:$4 sm:$0xff]  }
  0x3c   :  { %1275 = vmatprep.subr.bf16.mxu0 %v8720_v63  ;;  %1315 = vmatpush1.bf16.msra.mxu1 %v8719_v0  ;;  %v8803_v63 = vld [vmem:[%s12613_s1 + $0x1ec] ss:$20 sps:$4 sm:$0xff]   ;;  %v8801_v0 = vld [vmem:[%s12613_s1 + $0x1e8] ss:$20 sps:$4 sm:$0xff]  }
  0x3d   :  { %1316 = vmatprep.subr.bf16.mxu1 %v8723_v2  ;;  %v8804_v2 = vld [vmem:[%s12613_s1 + $0x3f0] ss:$20 sps:$4 sm:$0xff]  }
  0x3f   :  { %1276 = vmatpush1.bf16.msra.mxu0 %v8722_v1  ;;  %v8806_v1 = vld [vmem:[%s12613_s1 + $0x3f4] ss:$20 sps:$4 sm:$0xff]  }
  0x40   :  { %1327 = vmatprep.subr.bf16.mxu0 %v8728_v4  ;;  %1317 = vmatpush1.bf16.msra.mxu1 %v8725_v5  ;;  %v8807_v4 = vld [vmem:[%s12613_s1 + $0x210] ss:$20 sps:$4 sm:$0xff]  }
  0x41   :  { %1368 = vmatprep.subr.bf16.mxu1 %v8731_v8  ;;  %v8812_v5 = vld [vmem:[%s12613_s1 + $0x41c] ss:$20 sps:$4 sm:$0xff]  }
  0x42   :  { %1278 = vmatmul.mubr.bf16.vlgmr.msra.gmra.mrb[0].mxu0 %v9792_v7  ;;  %v8815_v8 = vld [vmem:[%s12613_s1 + $0x23c] ss:$20 sps:$4 sm:$0xff]  }
  0x43   :  { %1328 = vmatpush1.bf16.msra.mxu0 %v8726_v9  ;;  %1359 = vmatprep.mubr.bf16.mxu0 %v9495_v15  ;;  %v8813_v9 = vld [vmem:[%s12613_s1 + $0x238] ss:$20 sps:$4 sm:$0xff]  }
  0x44   :  { %1319 = vmatmul.mubr.bf16.vlgmr.msra.gmra.mrb[0].mxu1 %v9800_v10  ;;  %1329 = vmatprep.subr.bf16.mxu0 %v8734_v11  ;;  %v8818_v11 = vld [vmem:[%s12613_s1 + $0x444] ss:$20 sps:$4 sm:$0xff]  }
  0x45   :  { %1369 = vmatpush1.bf16.msra.mxu1 %v8729_v12  ;;  %1400 = vmatprep.mubr.bf16.mxu1 %v9723_v48  ;;  %v8816_v12 = vld [vmem:[%s12613_s1 + $0x440] ss:$20 sps:$4 sm:$0xff]  }
  0x46   :  { %1370 = vmatprep.subr.bf16.mxu1 %v8737_v13  ;;  %v8821_v13 = vld [vmem:[%s12613_s1 + $0x264] ss:$20 sps:$4 sm:$0xff]  }
  0x47   :  { %1330 = vmatpush1.bf16.msra.mxu0 %v8732_v14  ;;  %v8819_v14 = vld [vmem:[%s12613_s1 + $0x260] ss:$20 sps:$4 sm:$0xff]  }
  0x48   :  { %1331 = vmatprep.subr.bf16.mxu0 %v8740_v16  ;;  %v8824_v16 = vld [vmem:[%s12613_s1 + $0x46c] ss:$20 sps:$4 sm:$0xff]  }
  0x49   :  { %1371 = vmatpush1.bf16.msra.mxu1 %v8735_v17  ;;  %v8822_v17 = vld [vmem:[%s12613_s1 + $0x468] ss:$20 sps:$4 sm:$0xff]  }
  0x4a   :  { %1372 = vmatprep.subr.bf16.mxu1 %v8743_v18  ;;  %v8827_v18 = vld [vmem:[%s12613_s1 + $0x50c] ss:$20 sps:$4 sm:$0xff]  }
  0x4b   :  { %1332 = vmatpush1.bf16.msra.mxu0 %v8738_v19  ;;  %v8825_v19 = vld [vmem:[%s12613_s1 + $0x508] ss:$20 sps:$4 sm:$0xff]  }
  0x4c   :  { %1333 = vmatprep.subr.bf16.mxu0 %v8746_v20  ;;  %v8830_v20 = vld [vmem:[%s12613_s1 + $0x494] ss:$20 sps:$4 sm:$0xff]  }
  0x4d   :  { %1373 = vmatpush1.bf16.msra.mxu1 %v8741_v21  ;;  %v8828_v21 = vld [vmem:[%s12613_s1 + $0x490] ss:$20 sps:$4 sm:$0xff]  }
  0x4e   :  { %1374 = vmatprep.subr.bf16.mxu1 %v8749_v23  ;;  %v8831_v23 = vld [vmem:[%s12613_s1 + $0x530] ss:$20 sps:$4 sm:$0xff]  }
  0x4f   :  { %1334 = vmatpush1.bf16.msra.mxu0 %v8744_v22  ;;  %v8833_v22 = vld [vmem:[%s12613_s1 + $0x534] ss:$20 sps:$4 sm:$0xff]  }
  0x50   :  { %1409 = vmatprep.subr.bf16.mxu0 %v8752_v25  ;;  %v8834_v25 = vld [vmem:[%s12613_s1 + $0x4b8] ss:$20 sps:$4 sm:$0xff]  }
  0x51   :  { %1375 = vmatpush1.bf16.msra.mxu1 %v8747_v26  ;;  %v8839_v26 = vld [vmem:[%s12613_s1 + $0x55c] ss:$20 sps:$4 sm:$0xff]  }
  0x52   :  { %7662 = vmatmul.mubr.msk.bf16.vlgmr.msra.gmra.mrb[4].mxu0 %vm1241_vm0, %v9851_v27  ;;  %1376 = vmatprep.subr.bf16.mxu1 %v8755_v28  ;;  %v8842_v28 = vld [vmem:[%s12613_s1 + $0x4e4] ss:$20 sps:$4 sm:$0xff]  }
  0x53   :  { %1410 = vmatpush1.bf16.msra.mxu0 %v8750_v29  ;;  %1441 = vmatprep.mubr.bf16.mxu0 %v9735_v52  ;;  %v8837_v29 = vld [vmem:[%s12613_s1 + $0x558] ss:$20 sps:$4 sm:$0xff]  }
  0x54   :  { %1411 = vmatprep.subr.bf16.mxu0 %v8758_v30  ;;  %v8845_v30 = vld [vmem:[%s12613_s1 + $0x584] ss:$20 sps:$4 sm:$0xff]  }
  0x55   :  { %1377 = vmatpush1.bf16.msra.mxu1 %v8753_v31  ;;  %v8840_v31 = vld [vmem:[%s12613_s1 + $0x4e0] ss:$20 sps:$4 sm:$0xff]  }
  0x56   :  { %1378 = vmatprep.subr.bf16.mxu1 %v8761_v32  ;;  %v8846_v32 = vld [vmem:[%s12613_s1 + $0x150] ss:$20 sps:$4 sm:$0xff]  }
  0x57   :  { %1412 = vmatpush1.bf16.msra.mxu0 %v8756_v33  ;;  %v8843_v33 = vld [vmem:[%s12613_s1 + $0x580] ss:$20 sps:$4 sm:$0xff]  }
  0x58   :  { %1413 = vmatprep.subr.bf16.mxu0 %v8764_v34  ;;  %v8847_v34 = vld [vmem:[%s12613_s1 + $0x10] ss:$20 sps:$4 sm:$0xff]  }
  0x59   :  { %1379 = vmatpush1.bf16.msra.mxu1 %v8759_v35  ;;  %v8848_v35 = vld [vmem:[%s12613_s1 + $0x178] ss:$20 sps:$4 sm:$0xff]  }
  0x5a   :  { %1380 = vmatprep.subr.bf16.mxu1 %v8767_v36  ;;  %v8849_v36 = vld [vmem:[%s12613_s1 + $0x38] ss:$20 sps:$4 sm:$0xff]  }
  0x5b   :  { %1414 = vmatpush1.bf16.msra.mxu0 %v8762_v37  ;;  %v8850_v37 = vld [vmem:[%s12613_s1 + $0x1a0] ss:$20 sps:$4 sm:$0xff]  }
  0x5c   :  { %1415 = vmatprep.subr.bf16.mxu0 %v8770_v38  ;;  %v8851_v38 = vld [vmem:[%s12613_s1 + $0x60] ss:$20 sps:$4 sm:$0xff]  }
  0x5d   :  { %1381 = vmatpush1.bf16.msra.mxu1 %v8765_v39  ;;  %v8852_v39 = vld [vmem:[%s12613_s1 + $0x1c8] ss:$20 sps:$4 sm:$0xff]  }
  0x5e   :  { %1382 = vmatprep.subr.bf16.mxu1 %v8773_v40  ;;  %v8853_v40 = vld [vmem:[%s12613_s1 + $0x88] ss:$20 sps:$4 sm:$0xff]  }
  0x5f   :  { %1416 = vmatpush1.bf16.msra.mxu0 %v8768_v41  ;;  %v8855_v41 = vld [vmem:[%s12613_s1 + $0xb0] ss:$20 sps:$4 sm:$0xff]  }
  0x60   :  { %1417 = vmatprep.subr.bf16.mxu0 %v8776_v42  ;;  %v8856_v42 = vld [vmem:[%s12613_s1 + $0x218] ss:$20 sps:$4 sm:$0xff]  }
  0x61   :  { %1383 = vmatpush1.bf16.msra.mxu1 %v8771_v43  ;;  %v8857_v43 = vld [vmem:[%s12613_s1 + $0xd8] ss:$20 sps:$4 sm:$0xff]  }
  0x62   :  { %1384 = vmatprep.subr.bf16.mxu1 %v8779_v44  ;;  %v8858_v44 = vld [vmem:[%s12613_s1 + $0x240] ss:$20 sps:$4 sm:$0xff]  }
  0x63   :  { %1418 = vmatpush1.bf16.msra.mxu0 %v8774_v45  ;;  %v8859_v45 = vld [vmem:[%s12613_s1 + $0x100] ss:$20 sps:$4 sm:$0xff]  }
  0x64   :  { %1419 = vmatprep.subr.bf16.mxu0 %v8782_v46  ;;  %v8860_v46 = vld [vmem:[%s12613_s1 + $0x268] ss:$20 sps:$4 sm:$0xff]  }
  0x65   :  { %1385 = vmatpush1.bf16.msra.mxu1 %v8777_v47  ;;  %v8861_v47 = vld [vmem:[%s12613_s1 + $0x128] ss:$20 sps:$4 sm:$0xff]  }
  0x66   :  { %1386 = vmatprep.subr.bf16.mxu1 %v8785_v50  ;;  %v8863_v50 = vld [vmem:[%s12613_s1 + $0x290] ss:$20 sps:$4 sm:$0xff]  }
  0x67   :  { %1420 = vmatpush1.bf16.msra.mxu0 %v8780_v49  ;;  %v8862_v49 = vld [vmem:[%s12613_s1 + $0x3d0] ss:$20 sps:$4 sm:$0xff]  }
  0x68   :  { %1421 = vmatprep.subr.bf16.mxu0 %v8788_v53  ;;  %v8865_v53 = vld [vmem:[%s12613_s1 + $0x2b8] ss:$20 sps:$4 sm:$0xff]  }
  0x69   :  { %1387 = vmatpush1.bf16.msra.mxu1 %v8783_v51  ;;  %v8864_v51 = vld [vmem:[%s12613_s1 + $0x3f8] ss:$20 sps:$4 sm:$0xff]  }
  0x6a   :  { %1388 = vmatprep.subr.bf16.mxu1 %v8791_v55  ;;  %v8867_v55 = vld [vmem:[%s12613_s1 + $0x2e0] ss:$20 sps:$4 sm:$0xff]  }
  0x6b   :  { %1422 = vmatpush1.bf16.msra.mxu0 %v8786_v54  ;;  %v8866_v54 = vld [vmem:[%s12613_s1 + $0x420] ss:$20 sps:$4 sm:$0xff]  }
  0x6c   :  { %1423 = vmatprep.subr.bf16.mxu0 %v8794_v57  ;;  %v8870_v57 = vld [vmem:[%s12613_s1 + $0x470] ss:$20 sps:$4 sm:$0xff]  }
  0x6d   :  { %1389 = vmatpush1.bf16.msra.mxu1 %v8789_v56  ;;  %v8868_v56 = vld [vmem:[%s12613_s1 + $0x448] ss:$20 sps:$4 sm:$0xff]  }
  0x6e   :  { %1390 = vmatprep.subr.bf16.mxu1 %v8797_v59  ;;  %v8873_v59 = vld [vmem:[%s12613_s1 + $0x358] ss:$20 sps:$4 sm:$0xff]  }
  0x6f   :  { %1424 = vmatpush1.bf16.msra.mxu0 %v8792_v58  ;;  %v8872_v58 = vld [vmem:[%s12613_s1 + $0x498] ss:$20 sps:$4 sm:$0xff]  }
  0x70   :  { %1425 = vmatprep.subr.bf16.mxu0 %v8800_v61  ;;  %v8875_v61 = vld [vmem:[%s12613_s1 + $0x380] ss:$20 sps:$4 sm:$0xff]  }
  0x71   :  { %1391 = vmatpush1.bf16.msra.mxu1 %v8795_v60  ;;  %v8874_v60 = vld [vmem:[%s12613_s1 + $0x4c0] ss:$20 sps:$4 sm:$0xff]  }
  0x72   :  { %1392 = vmatprep.subr.bf16.mxu1 %v8803_v63  ;;  %v8877_v63 = vld [vmem:[%s12613_s1 + $0x3a8] ss:$20 sps:$4 sm:$0xff]  }
  0x73   :  { %1426 = vmatpush1.bf16.msra.mxu0 %v8798_v62  ;;  %v8876_v62 = vld [vmem:[%s12613_s1 + $0x4e8] ss:$20 sps:$4 sm:$0xff]  }
  0x74   :  { %1427 = vmatprep.subr.bf16.mxu0 %v8806_v1  ;;  %v9496_v1 = vmov 0.0  }
  0x75   :  { %1393 = vmatpush1.bf16.msra.mxu1 %v8801_v0  ;;  %v8878_v0 = vld [vmem:[%s12613_s1 + $0x510] ss:$20 sps:$4 sm:$0xff]  }
  0x76   :  { %1394 = vmatprep.subr.bf16.mxu1 %v8809_v3  ;;  %v8880_v3 = vld [vmem:[%s12613_s1 + $0x560] ss:$20 sps:$4 sm:$0xff]  }
  0x77   :  { %1428 = vmatpush1.bf16.msra.mxu0 %v8804_v2  ;;  %v8879_v2 = vld [vmem:[%s12613_s1 + $0x538] ss:$20 sps:$4 sm:$0xff]  }
  0x78   :  { %1429 = vmatprep.subr.bf16.mxu0 %v8812_v5 }
  0x79   :  { %1395 = vmatpush1.bf16.msra.mxu1 %v8807_v4  ;;  %v8881_v4 = vld [vmem:[%s12613_s1 + $0x588] ss:$20 sps:$4 sm:$0xff]  }
  0x7a   :  { %1396 = vmatprep.subr.bf16.mxu1 %v8815_v8 }
  0x7b   :  { %1430 = vmatpush1.bf16.msra.mxu0 %v8810_v6  ;;  %v278_v6 = vld [vmem:[%s12614_s2] sm:$0x1f] }
  0x7c   :  { %1431 = vmatprep.subr.bf16.mxu0 %v8818_v11 }
  0x7d   :  { %1397 = vmatpush1.bf16.msra.mxu1 %v8813_v9 }
  0x7e   :  { %1398 = vmatprep.subr.bf16.mxu1 %v8821_v13 }
  0x7f   :  { %1432 = vmatpush1.bf16.msra.mxu0 %v8816_v12 }
  0x80   :  { %1433 = vmatprep.subr.bf16.mxu0 %v8824_v16 }
  0x81   :  { %1399 = vmatpush1.bf16.msra.mxu1 %v8819_v14 }
  0x82   :  { %1450 = vmatprep.subr.bf16.mxu1 %v8827_v18 }
  0x83   :  { %1434 = vmatpush1.bf16.msra.mxu0 %v8822_v17 }
  0x84   :  { %1401 = vmatmul.mubr.bf16.vlgmr.msra.gmra.mrb[4].mxu1 %v9792_v7  ;;  %1435 = vmatprep.subr.bf16.mxu0 %v8830_v20 }
  0x85   :  { %1451 = vmatpush1.bf16.msra.mxu1 %v8825_v19  ;;  %1482 = vmatprep.mubr.bf16.mxu1 %v9495_v15 }
  0x86   :  { %1452 = vmatprep.subr.bf16.mxu1 %v8833_v22 }
  0x87   :  { %1436 = vmatpush1.bf16.msra.mxu0 %v8828_v21 }
  0x88   :  { %1437 = vmatprep.subr.bf16.mxu0 %v8836_v24 }
  0x89   :  { %1453 = vmatpush1.bf16.msra.mxu1 %v8831_v23 }
  0x8a   :  { %1454 = vmatprep.subr.bf16.mxu1 %v8839_v26 }
  0x8b   :  { %1438 = vmatpush1.bf16.msra.mxu0 %v8834_v25 }
  0x8c   :  { %1439 = vmatprep.subr.bf16.mxu0 %v8842_v28 }
  0x8d   :  { %1455 = vmatpush1.bf16.msra.mxu1 %v8837_v29 }
  0x8e   :  { %1456 = vmatprep.subr.bf16.mxu1 %v8845_v30 }
  0x8f   :  { %1440 = vmatpush1.bf16.msra.mxu0 %v8840_v31 }
  0x90   :  { %8376 = vmatprep.subr.bf16.mxu0 %v8846_v32 }
  0x91   :  { %1457 = vmatpush1.bf16.msra.mxu1 %v8843_v33 }
  0x92   :  { %1442 = vmatmul.mubr.bf16.vlgmr.msra.gmra.mrb[8].mxu0 %v9800_v10 }
  0x93   :  { %8377 = vmatpush3.bf16.msra.mxu0 %v8847_v34  ;;  %1523 = vmatprep.mubr.bf16.mxu0 %v9723_v48  ;;  %v8854_v48 = vld [vmem:[%s12613_s1 + $0x1f0] ss:$20 sps:$4 sm:$0xff]  }
  0x94   :  { %7663 = vmatmul.mubr.msk.bf16.vlgmr.msra.gmra.mrb[8].mxu1 %vm1241_vm0, %v9851_v27  ;;  %8378 = vmatprep.subr.bf16.mxu0 %v8848_v35 }
  0x97   :  { %8379 = vmatpush3.bf16.msra.mxu0 %v8849_v36 }
  0x98   :  { %8380 = vmatprep.subr.bf16.mxu0 %v8850_v37 }
  0x9b   :  { %8381 = vmatpush3.bf16.msra.mxu0 %v8851_v38 }
  0x9c   :  { %8382 = vmatprep.subr.bf16.mxu0 %v8852_v39 }
  0x9f   :  { %8383 = vmatpush3.bf16.msra.mxu0 %v8853_v40 }
  0xa0   :  { %8384 = vmatprep.subr.bf16.mxu0 %v8854_v48 }
  0xa3   :  { %8385 = vmatpush3.bf16.msra.mxu0 %v8855_v41 }
  0xa4   :  { %8386 = vmatprep.subr.bf16.mxu0 %v8856_v42 }
  0xa7   :  { %8387 = vmatpush3.bf16.msra.mxu0 %v8857_v43 }
  0xa8   :  { %8388 = vmatprep.subr.bf16.mxu0 %v8858_v44 }
  0xab   :  { %8389 = vmatpush3.bf16.msra.mxu0 %v8859_v45 }
  0xac   :  { %8390 = vmatprep.subr.bf16.mxu0 %v8860_v46 }
  0xaf   :  { %8391 = vmatpush3.bf16.msra.mxu0 %v8861_v47 }
  0xb0   :  { %8398 = vmatprep.subr.bf16.mxu0 %v8862_v49 }
  0xb2   :  { %1524 = vmatmul.mubr.bf16.vlgmr.msra.gmra.mrb[12].mxu0 %v9792_v7  ;;  %v8869_v7 = vld [vmem:[%s12613_s1 + $0x308] ss:$20 sps:$4 sm:$0xff]  }
  0xb3   :  { %8399 = vmatpush3.bf16.msra.mxu0 %v8863_v50  ;;  %1563 = vmatprep.mubr.bf16.mxu0 %v9735_v52  ;;  %v8871_v52 = vld [vmem:[%s12613_s1 + $0x330] ss:$20 sps:$4 sm:$0xff]  }
  0xb4   :  { %8400 = vmatprep.subr.bf16.mxu0 %v8864_v51 }
  0xb7   :  { %8401 = vmatpush3.bf16.msra.mxu0 %v8865_v53 }
  0xb8   :  { %8402 = vmatprep.subr.bf16.mxu0 %v8866_v54 }
  0xbb   :  { %8403 = vmatpush3.bf16.msra.mxu0 %v8867_v55 }
  0xbc   :  { %8404 = vmatprep.subr.bf16.mxu0 %v8868_v56 }
  0xbf   :  { %8405 = vmatpush3.bf16.msra.mxu0 %v8869_v7 }
  0xc0   :  { %8406 = vmatprep.subr.bf16.mxu0 %v8870_v57 }
  0xc3   :  { %8407 = vmatpush3.bf16.msra.mxu0 %v8871_v52 }
  0xc4   :  { %8408 = vmatprep.subr.bf16.mxu0 %v8872_v58 }
  0xc7   :  { %8409 = vmatpush3.bf16.msra.mxu0 %v8873_v59 }
  0xc8   :  { %8410 = vmatprep.subr.bf16.mxu0 %v8874_v60 }
  0xcb   :  { %8411 = vmatpush3.bf16.msra.mxu0 %v8875_v61 }
  0xcc   :  { %8412 = vmatprep.subr.bf16.mxu0 %v8876_v62 }
  0xcf   :  { %8413 = vmatpush3.bf16.msra.mxu0 %v8877_v63 }
  0xd0   :  { %8544 = vmatprep.subr.bf16.mxu0 %v9496_v1 }
  0xd2   :  { %1564 = vmatmul.mubr.bf16.vlgmr.msra.gmra.mrb[16].mxu0 %v9800_v10  ;;  %v280_v10 = vlaneseq }
  0xd3   :  { %8545 = vmatpush3.bf16.msra.mxu0 %v8878_v0  ;;  %8552 = vmatprep.mubr.msk.bf16.mxu0 %vm9497_vm1, %v9496_v1 }
  0xd4   :  { %8546 = vmatprep.subr.bf16.mxu0 %v9496_v1  ;;  %v10170_v5 = vshrl.u32 %v280_v10, 7 }
  0xd6   :  { %v10176_v8 = vsub.s32 0, %v10170_v5  ;;  %v10179_v9 = vsub.s32 1, %v10170_v5 }
  0xd7   :  { %8547 = vmatpush3.bf16.msra.mxu0 %v8879_v2 }
  0xd8   :  { %8548 = vmatprep.subr.bf16.mxu0 %v9496_v1  ;;  %v283_v11 = vrot.slane %v278_v6, %v10176_v8  ;;  %v287_v12 = vrot.slane %v278_v6, %v10179_v9 }
  0xdb   :  { %8549 = vmatpush3.bf16.msra.mxu0 %v8880_v3 }
  0xdc   :  { %8550 = vmatprep.subr.bf16.mxu0 %v9496_v1 }
  0xdf   :  { %8551 = vmatpush3.bf16.msra.mxu0 %v8881_v4 }
  0xe2   :  { %8553 = vmatmul.mubr.msk.bf16.vlgmr.msra.gmra.mrb[20].mxu0 %vm1241_vm0, %v9851_v27 }
 0x115   :  { %v1279_v13 = vpop.f32.mrb[0].mxu0 }
 0x116   :  { %v1280_v14 = vadd.f32 %v1279_v13, %v283_v11  ;;  %v1281_v27 = vpop.f32.mrb[1].mxu0 }
 0x117   :  { %v1282_v16 = vadd.f32 %v1281_v27, %v287_v12  ;;  %v1283_v17 = vpop.f32.mrb[2].mxu0  ;;  %v1320_v18 = vpop.f32.mrb[0].mxu1 }
 0x118   :  { %v1321_v19 = vadd.f32 %v1320_v18, %v1280_v14  ;;  %v1284_v20 = vpop.f32.mrb[3].mxu0  ;;  %v1322_v21 = vpop.f32.mrb[1].mxu1 }
 0x119   :  { %v1323_v22 = vadd.f32 %v1322_v21, %v1282_v16  ;;  %v1324_v23 = vpop.f32.mrb[2].mxu1 }
 0x11a   :  { %v1325_v24 = vpop.f32.mrb[3].mxu1 }
 0x125   :  { %v1361_v25 = vpop.f32.mrb[4].mxu0 }
 0x126   :  { %v1362_v26 = vadd.f32 %v1361_v25, %v1321_v19  ;;  %v1363_v28 = vpop.f32.mrb[5].mxu0 }
 0x127   :  { %v1364_v29 = vadd.f32 %v1363_v28, %v1323_v22  ;;  %v1365_v30 = vpop.f32.mrb[6].mxu0 }
 0x128   :  { %v1366_v31 = vpop.f32.mrb[7].mxu0 }
 0x129   :  { %20 = vsyncpa [#allocation3], 0  ;;  %v10184_v35 = vsub.s32 2, %v10170_v5  ;;  %v10187_v37 = vsub.s32 3, %v10170_v5  ;;  %v10192_v58 = vsub.s32 4, %v10170_v5  ;;  %v9466_v4 = vld [vmem:[%s12612_s0] sm:$0xff] }
 0x12a   :  { %v10198_v10 = vadd.f32 %v9466_v4, %v1362_v26  ;;  %v9467_v11 = vld [vmem:[%s12612_s0 + $0x8] sm:$0xff]  ;;  %v9469_v27 = vld [vmem:[%s12612_s0 + $0x18] sm:$0xff]  ;;  %v9470_v22 = vld [vmem:[%s12612_s0 + $0x20] sm:$0xff] }
 0x12b   :  { %v291_v38 = vrot.slane %v278_v6, %v10184_v35  ;;  %v295_v39 = vrot.slane %v278_v6, %v10187_v37  ;;  %v299_v59 = vrot.slane %v278_v6, %v10192_v58  ;;  %v10203_v12 = vadd.f32 %v9467_v11, %v1364_v29  ;;  %v9468_v6 = vld [vmem:[%s12612_s0 + $0x10] sm:$0xff]  ;;  %v1718_v29 = vld [vmem:[%s12617_s5] sm:$0xff]  ;;  %v1719_v31 = vld [vmem:[%s12617_s5 + $0x8] sm:$0xff] }
 0x12c   :  { %v1722_v30 = vld [vmem:[%s12617_s5 + $0x20] sm:$0xff] }
 0x12d   :  { %v1616_v14 = vadd.f32 %v10203_v12, %v10198_v10 }
 0x157   :  { %v1402_v32 = vpop.f32.mrb[4].mxu1 }
 0x158   :  { %v1404_v33 = vpop.f32.mrb[5].mxu1  ;;  %v1403_v40 = vadd.f32 %v1402_v32, %v291_v38  ;;  %v7665_v32 = vcombine.low %v1718_v29, %v1722_v30  ;;  %v1730_v38 = vld [vmem:[%s12617_s5 + $0x60] sm:$0xff] }
 0x159   :  { %v1406_v34 = vpop.f32.mrb[6].mxu1  ;;  %v1405_v48 = vadd.f32 %v1404_v33, %v295_v39  ;;  %v7666_v33 = vcombine.high %v1718_v29, %v1722_v30 }
 0x15a   :  { %v1407_v36 = vpop.f32.mrb[7].mxu1  ;;  %v1723_v34 = vld [vmem:[%s12617_s5 + $0x28] sm:$0xff] }
 0x15b   :  { %v1726_v36 = vld [vmem:[%s12617_s5 + $0x40] sm:$0xff]  ;;  %v7667_v39 = vcombine.low %v1719_v31, %v1723_v34  ;;  %3491 = vmatprep.subr.bf16.mxu1 %v7666_v33 }
 0x15c   :  { %3492 = vmatpush1.bf16.msra.mxu1 %v7665_v32  ;;  %v1774_v32 = vld [vmem:[%s12617_s5 + $0x1c0] sm:$0xff] }
 0x15d   :  { %v1778_v33 = vld [vmem:[%s12617_s5 + $0x1e0] sm:$0xff] }
 0x165   :  { %v1443_v41 = vpop.f32.mrb[8].mxu0 }
 0x166   :  { %v1444_v42 = vadd.f32 %v1443_v41, %v1403_v40  ;;  %v1445_v43 = vpop.f32.mrb[9].mxu0  ;;  %v7668_v40 = vcombine.high %v1719_v31, %v1723_v34  ;;  %v1727_v41 = vld [vmem:[%s12617_s5 + $0x48] sm:$0xff] }
 0x167   :  { %v1446_v44 = vadd.f32 %v1445_v43, %v1405_v48  ;;  %v1447_v45 = vpop.f32.mrb[10].mxu0  ;;  %v1484_v46 = vpop.f32.mrb[8].mxu1  ;;  %v7674_v48 = vcombine.high %v1726_v36, %v1730_v38  ;;  %v1734_v43 = vld [vmem:[%s12617_s5 + $0x80] sm:$0xff]  ;;  %v1775_v34 = vld [vmem:[%s12617_s5 + $0x1c8] sm:$0xff] }
 0x168   :  { %v1485_v47 = vadd.f32 %v1484_v46, %v1444_v42  ;;  %v1448_v49 = vpop.f32.mrb[11].mxu0  ;;  %v1486_v50 = vpop.f32.mrb[9].mxu1  ;;  %v1731_v42 = vld [vmem:[%s12617_s5 + $0x68] sm:$0xff]  ;;  %v1738_v45 = vld [vmem:[%s12617_s5 + $0xa0] sm:$0xff]  ;;  %3614 = vmatprep.subr.bf16.mxu0 %v7668_v40  ;;  %v7722_v40 = vcombine.high %v1774_v32, %v1778_v33 }
 0x169   :  { %v1487_v51 = vadd.f32 %v1486_v50, %v1446_v44  ;;  %v1488_v53 = vpop.f32.mrb[10].mxu1  ;;  %v7676_v44 = vcombine.high %v1727_v41, %v1731_v42  ;;  %v1735_v46 = vld [vmem:[%s12617_s5 + $0x88] sm:$0xff]  ;;  %v7673_v49 = vcombine.low %v1726_v36, %v1730_v38  ;;  %3615 = vmatpush1.bf16.msra.mxu0 %v7667_v39  ;;  %3493 = vmatprep.subr.bf16.mxu1 %v7674_v48 }
 0x16a   :  { %v1489_v54 = vpop.f32.mrb[11].mxu1  ;;  %v10208_v13 = vadd.f32 %v9468_v6, %v1485_v47  ;;  %v1739_v47 = vld [vmem:[%s12617_s5 + $0xa8] sm:$0xff]  ;;  %v7675_v50 = vcombine.low %v1727_v41, %v1731_v42  ;;  %v1758_v6 = vld [vmem:[%s12617_s5 + $0x140] sm:$0xff] }
 0x16b   :  { %v10215_v16 = vadd.f32 %v9469_v27, %v1487_v51  ;;  %v7682_v51 = vcombine.high %v1734_v43, %v1738_v45  ;;  %3616 = vmatprep.subr.bf16.mxu0 %v7676_v44  ;;  %v7684_v53 = vcombine.high %v1735_v46, %v1739_v47  ;;  %v1742_v54 = vld [vmem:[%s12617_s5 + $0xc0] sm:$0xff]  ;;  %3494 = vmatpush1.bf16.msra.mxu1 %v7673_v49  ;;  %v1759_v27 = vld [vmem:[%s12617_s5 + $0x148] sm:$0xff] }
 0x16c   :  { %v1617_v18 = vadd.f32 %v1616_v14, %v10208_v13  ;;  %v1762_v14 = vld [vmem:[%s12617_s5 + $0x160] sm:$0xff]  ;;  %v1779_v36 = vld [vmem:[%s12617_s5 + $0x1e8] sm:$0xff] }
 0x16d   :  { %3617 = vmatpush1.bf16.msra.mxu0 %v7675_v50  ;;  %3495 = vmatprep.subr.bf16.mxu1 %v7682_v51  ;;  %v7724_v48 = vcombine.high %v1775_v34, %v1779_v36  ;;  %v1782_v41 = vld [vmem:[%s12617_s5 + $0x200] sm:$0xff]  ;;  %v1787_v44 = vld [vmem:[%s12617_s5 + $0x228] sm:$0xff] }
 0x16e   :  { %v1618_v25 = vadd.f32 %v1617_v18, %v10215_v16  ;;  %3618 = vmatprep.subr.bf16.mxu0 %v7684_v53  ;;  %v1786_v42 = vld [vmem:[%s12617_s5 + $0x220] sm:$0xff]  ;;  %v1791_v53 = vld [vmem:[%s12617_s5 + $0x248] sm:$0xff] }
 0x16f   :  { %v1790_v50 = vld [vmem:[%s12617_s5 + $0x240] sm:$0xff] }
 0x170   :  { %v1794_v51 = vld [vmem:[%s12617_s5 + $0x260] sm:$0xff] }
 0x185   :  { %v8392_v55 = vpop.f32.mrb[12].mxu0 }
 0x186   :  { %v8393_v56 = vpop.f32.mrb[13].mxu0 }
 0x187   :  { %v8394_v7 = vadd.f32 %v8393_v56, %v8392_v55  ;;  %v8395_v57 = vpop.f32.mrb[14].mxu0  ;;  %v1746_v55 = vld [vmem:[%s12617_s5 + $0xe0] sm:$0xff]  ;;  %v1743_v56 = vld [vmem:[%s12617_s5 + $0xc8] sm:$0xff] }
 0x188   :  { %v8396_v52 = vpop.f32.mrb[15].mxu0  ;;  %v7681_v57 = vcombine.low %v1734_v43, %v1738_v45  ;;  %v1783_v43 = vld [vmem:[%s12617_s5 + $0x208] sm:$0xff]  ;;  %v7721_v45 = vcombine.low %v1774_v32, %v1778_v33 }
 0x189   :  { %v1526_v62 = vadd.f32 %v8394_v7, %v299_v59  ;;  %v1747_v7 = vld [vmem:[%s12617_s5 + $0xe8] sm:$0xff]  ;;  %v7683_v52 = vcombine.low %v1735_v46, %v1739_v47  ;;  %v7690_v59 = vcombine.high %v1742_v54, %v1746_v55  ;;  %v7723_v46 = vcombine.low %v1775_v34, %v1779_v36  ;;  %v1814_v36 = vld [vmem:[%s12617_s5 + $0x300] sm:$0xff] }
 0x18a   :  { %3496 = vmatpush1.bf16.msra.mxu1 %v7681_v57  ;;  %v7730_v47 = vcombine.high %v1782_v41, %v1786_v42  ;;  %v7732_v49 = vcombine.high %v1783_v43, %v1787_v44 }
 0x18b   :  { %3619 = vmatpush1.bf16.msra.mxu0 %v7683_v52  ;;  %3497 = vmatprep.subr.bf16.mxu1 %v7690_v59  ;;  %v1798_v52 = vld [vmem:[%s12617_s5 + $0x280] sm:$0xff] }
 0x18c   :  { %v1802_v59 = vld [vmem:[%s12617_s5 + $0x2a0] sm:$0xff] }
 0x1a5   :  { %v8414_v60 = vpop.f32.mrb[16].mxu0 }
 0x1a6   :  { %v8415_v61 = vpop.f32.mrb[17].mxu0 }
 0x1a7   :  { %v8416_v63 = vadd.f32 %v8415_v61, %v8414_v60  ;;  %v8417_v0 = vpop.f32.mrb[18].mxu0  ;;  %v7692_v60 = vcombine.high %v1743_v56, %v1747_v7  ;;  %v1750_v61 = vld [vmem:[%s12617_s5 + $0x100] sm:$0xff] }
 0x1a8   :  { %v8418_v2 = vpop.f32.mrb[19].mxu0  ;;  %v1755_v0 = vld [vmem:[%s12617_s5 + $0x128] sm:$0xff] }
 0x1a9   :  { %v1566_v3 = vadd.f32 %v8416_v63, %v1526_v62  ;;  %v1754_v62 = vld [vmem:[%s12617_s5 + $0x120] sm:$0xff]  ;;  %v1751_v63 = vld [vmem:[%s12617_s5 + $0x108] sm:$0xff]  ;;  %v7689_v2 = vcombine.low %v1742_v54, %v1746_v55  ;;  %3620 = vmatprep.subr.bf16.mxu0 %v7692_v60  ;;  %v7729_v55 = vcombine.low %v1782_v41, %v1786_v42 }
 0x1aa   :  { %v7698_v4 = vcombine.high %v1750_v61, %v1754_v62  ;;  %v7700_v11 = vcombine.high %v1751_v63, %v1755_v0  ;;  %v7697_v18 = vcombine.low %v1750_v61, %v1754_v62  ;;  %v1795_v54 = vld [vmem:[%s12617_s5 + $0x268] sm:$0xff]  ;;  %v7737_v62 = vcombine.low %v1790_v50, %v1794_v51  ;;  %v1822_v42 = vld [vmem:[%s12617_s5 + $0x340] sm:$0xff] }
 0x1ab   :  { %3498 = vmatpush1.bf16.msra.mxu1 %v7689_v2  ;;  %v7740_v57 = vcombine.high %v1791_v53, %v1795_v54  ;;  %v1799_v60 = vld [vmem:[%s12617_s5 + $0x288] sm:$0xff] }
 0x1ac   :  { %3499 = vmatprep.subr.bf16.mxu1 %v7698_v4  ;;  %v1803_v61 = vld [vmem:[%s12617_s5 + $0x2a8] sm:$0xff] }
 0x1ad   :  { %v7748_v2 = vcombine.high %v1799_v60, %v1803_v61  ;;  %v7747_v4 = vcombine.low %v1799_v60, %v1803_v61  ;;  %v1819_v41 = vld [vmem:[%s12617_s5 + $0x328] sm:$0xff]  ;;  %v1842_v60 = vld [vmem:[%s12617_s5 + $0x3e0] sm:$0xff] }
 0x1ae   :  { %v1839_v61 = vld [vmem:[%s12617_s5 + $0x3c8] sm:$0xff] }
 0x1af   :  { %3500 = vmatpush1.bf16.msra.mxu1 %v7697_v18 }
 0x1b5   :  { %v1605_v17 = vpop.f32.mrb[20].mxu0 }
 0x1b6   :  { %v1606_v19 = vadd.f32 %v1605_v17, %v1566_v3  ;;  %v8554_v20 = vpop.f32.mrb[21].mxu0  ;;  %v7691_v3 = vcombine.low %v1743_v56, %v1747_v7  ;;  %v1763_v17 = vld [vmem:[%s12617_s5 + $0x168] sm:$0xff]  ;;  %v7731_v56 = vcombine.low %v1783_v43, %v1787_v44  ;;  %v7738_v7 = vcombine.high %v1790_v50, %v1794_v51  ;;  %v1826_v43 = vld [vmem:[%s12617_s5 + $0x360] sm:$0xff] }
 0x1b7   :  { %v1608_v21 = vpop.f32.mrb[22].mxu0  ;;  %v7706_v20 = vcombine.high %v1758_v6, %v1762_v14  ;;  %v7707_v29 = vcombine.low %v1759_v27, %v1763_v17  ;;  %v1830_v51 = vld [vmem:[%s12617_s5 + $0x380] sm:$0xff] }
 0x1b8   :  { %v10221_v23 = vadd.f32 %v9470_v22, %v1606_v19  ;;  %v8555_v24 = vpop.f32.mrb[23].mxu0  ;;  %3621 = vmatpush1.bf16.msra.mxu0 %v7691_v3  ;;  %v7699_v19 = vcombine.low %v1751_v63, %v1755_v0  ;;  %v7708_v21 = vcombine.high %v1759_v27, %v1763_v17  ;;  %v1766_v22 = vld [vmem:[%s12617_s5 + $0x180] sm:$0xff]  ;;  %v7739_v63 = vcombine.low %v1791_v53, %v1795_v54  ;;  %v1831_v54 = vld [vmem:[%s12617_s5 + $0x388] sm:$0xff] }
 0x1b9   :  { %3622 = vmatprep.subr.bf16.mxu0 %v7700_v11  ;;  %v1770_v24 = vld [vmem:[%s12617_s5 + $0x1a0] sm:$0xff]  ;;  %3501 = vmatprep.subr.bf16.mxu1 %v7706_v20  ;;  %v7746_v0 = vcombine.high %v1798_v52, %v1802_v59  ;;  %v7745_v3 = vcombine.low %v1798_v52, %v1802_v59 }
 0x1ba   :  { %v1619_v26 = vsel %vm1241_vm0, %v10221_v23, 0.0  ;;  %v7714_v30 = vcombine.high %v1766_v22, %v1770_v24  ;;  %v7713_v38 = vcombine.low %v1766_v22, %v1770_v24  ;;  %v1834_v53 = vld [vmem:[%s12617_s5 + $0x3a0] sm:$0xff] }
 0x1bb   :  { %v1620_v28 = vadd.f32 %v1619_v26, %v1618_v25  ;;  %v1767_v25 = vld [vmem:[%s12617_s5 + $0x188] sm:$0xff]  ;;  %v1838_v59 = vld [vmem:[%s12617_s5 + $0x3c0] sm:$0xff] }
 0x1bc   :  { %v1771_v26 = vld [vmem:[%s12617_s5 + $0x1a8] sm:$0xff]  ;;  %3623 = vmatpush1.bf16.msra.mxu0 %v7699_v19 }
 0x1bd   :  { %1621 = vadd.xlane.f32.xlu0 %v1620_v28  ;;  %v7705_v28 = vcombine.low %v1758_v6, %v1762_v14  ;;  %3624 = vmatprep.subr.bf16.mxu0 %v7708_v21  ;;  %v7716_v31 = vcombine.high %v1767_v25, %v1771_v26  ;;  %v7715_v39 = vcombine.low %v1767_v25, %v1771_v26  ;;  %v1806_v26 = vld [vmem:[%s12617_s5 + $0x2c0] sm:$0xff] }
 0x1bf   :  { %3502 = vmatpush1.bf16.msra.mxu1 %v7705_v28  ;;  %v1810_v28 = vld [vmem:[%s12617_s5 + $0x2e0] sm:$0xff] }
 0x1c0   :  { %3625 = vmatpush1.bf16.msra.mxu0 %v7707_v29  ;;  %3503 = vmatprep.subr.bf16.mxu1 %v7714_v30  ;;  %v1807_v29 = vld [vmem:[%s12617_s5 + $0x2c8] sm:$0xff]  ;;  %v7754_v30 = vcombine.high %v1806_v26, %v1810_v28  ;;  %v7753_v32 = vcombine.low %v1806_v26, %v1810_v28  ;;  %v1649_v26 = vld [vmem:[%s12615_s3] sm:$0x1f] }
 0x1c1   :  { %3626 = vmatprep.subr.bf16.mxu0 %v7716_v31  ;;  %v1811_v31 = vld [vmem:[%s12617_s5 + $0x2e8] sm:$0xff]  ;;  %v1681_v28 = vld [vmem:[%s12616_s4] sm:$0x1f] }
 0x1c2   :  { %v7755_v33 = vcombine.low %v1807_v29, %v1811_v31  ;;  %v7756_v34 = vcombine.high %v1807_v29, %v1811_v31  ;;  %v1658_v29 = vrot.slane %v1649_v26, %v10179_v9  ;;  %v1666_v31 = vrot.slane %v1649_v26, %v10187_v37 }
 0x1c3   :  { %3504 = vmatpush1.bf16.msra.mxu1 %v7713_v38  ;;  %v1818_v38 = vld [vmem:[%s12617_s5 + $0x320] sm:$0xff] }
 0x1c4   :  { %3627 = vmatpush1.bf16.msra.mxu0 %v7715_v39  ;;  %3505 = vmatprep.subr.bf16.mxu1 %v7722_v40  ;;  %v1815_v39 = vld [vmem:[%s12617_s5 + $0x308] sm:$0xff]  ;;  %v7761_v40 = vcombine.low %v1814_v36, %v1818_v38 }
 0x1c5   :  { %3628 = vmatprep.subr.bf16.mxu0 %v7724_v48  ;;  %v7762_v48 = vcombine.high %v1814_v36, %v1818_v38  ;;  %v7763_v44 = vcombine.low %v1815_v39, %v1819_v41  ;;  %v1686_v36 = vrot.slane %v1681_v28, %v10176_v8  ;;  %v1694_v38 = vrot.slane %v1681_v28, %v10184_v35 }
 0x1c7   :  { %3506 = vmatpush1.bf16.msra.mxu1 %v7721_v45  ;;  %v7764_v45 = vcombine.high %v1815_v39, %v1819_v41  ;;  %v1670_v39 = vrot.slane %v1649_v26, %v10192_v58 }
 0x1c8   :  { %3629 = vmatpush1.bf16.msra.mxu0 %v7723_v46  ;;  %3507 = vmatprep.subr.bf16.mxu1 %v7730_v47  ;;  %v7770_v46 = vcombine.high %v1822_v42, %v1826_v43  ;;  %v1823_v47 = vld [vmem:[%s12617_s5 + $0x348] sm:$0xff] }
 0x1c9   :  { %3630 = vmatprep.subr.bf16.mxu0 %v7732_v49  ;;  %v1827_v49 = vld [vmem:[%s12617_s5 + $0x368] sm:$0xff] }
 0x1ca   :  { %v7772_v50 = vcombine.high %v1823_v47, %v1827_v49 }
 0x1cb   :  { %3508 = vmatpush1.bf16.msra.mxu1 %v7729_v55  ;;  %v1835_v55 = vld [vmem:[%s12617_s5 + $0x3a8] sm:$0xff] }
 0x1cc   :  { %3631 = vmatpush1.bf16.msra.mxu0 %v7731_v56  ;;  %3509 = vmatprep.subr.bf16.mxu1 %v7738_v7  ;;  %v7769_v56 = vcombine.low %v1822_v42, %v1826_v43  ;;  %v7771_v7 = vcombine.low %v1823_v47, %v1827_v49  ;;  %v7780_v52 = vcombine.high %v1831_v54, %v1835_v55 }
 0x1cd   :  { %3632 = vmatprep.subr.bf16.mxu0 %v7740_v57  ;;  %v7778_v57 = vcombine.high %v1830_v51, %v1834_v53  ;;  %v1698_v43 = vrot.slane %v1681_v28, %v10187_v37 }
 0x1cf   :  { %3510 = vmatpush1.bf16.msra.mxu1 %v7737_v62  ;;  %v1843_v62 = vld [vmem:[%s12617_s5 + $0x3e8] sm:$0xff] }
 0x1d0   :  { %3633 = vmatpush1.bf16.msra.mxu0 %v7739_v63  ;;  %3511 = vmatprep.subr.bf16.mxu1 %v7746_v0  ;;  %v7777_v63 = vcombine.low %v1830_v51, %v1834_v53  ;;  %v7779_v0 = vcombine.low %v1831_v54, %v1835_v55  ;;  %v1855_v54 = vld [vmem:[%s12617_s5 + $0x448] sm:$0xff] }
 0x1d1   :  { %3634 = vmatprep.subr.bf16.mxu0 %v7748_v2  ;;  %v7786_v2 = vcombine.high %v1838_v59, %v1842_v60  ;;  %v1859_v55 = vld [vmem:[%s12617_s5 + $0x468] sm:$0xff] }
 0x1d3   :  { %3512 = vmatpush1.bf16.msra.mxu1 %v7745_v3  ;;  %v7788_v3 = vcombine.high %v1839_v61, %v1843_v62 }
 0x1d4   :  { %3635 = vmatpush1.bf16.msra.mxu0 %v7747_v4  ;;  %3513 = vmatprep.subr.bf16.mxu1 %v7754_v30  ;;  %v7785_v4 = vcombine.low %v1838_v59, %v1842_v60  ;;  %v1654_v30 = vrot.slane %v1649_v26, %v10176_v8  ;;  %v7804_v60 = vcombine.high %v1855_v54, %v1859_v55 }
 0x1d5   :  { %3636 = vmatprep.subr.bf16.mxu0 %v7756_v34  ;;  %v1690_v34 = vrot.slane %v1681_v28, %v10179_v9 }
 0x1d7   :  { %3514 = vmatpush1.bf16.msra.mxu1 %v7753_v32  ;;  %v1662_v32 = vrot.slane %v1649_v26, %v10184_v35  ;;  %v1883_v26 = vld [vmem:[%s12617_s5 + $0x528] sm:$0xff] }
 0x1d8   :  { %3637 = vmatpush1.bf16.msra.mxu0 %v7755_v33  ;;  %3515 = vmatprep.subr.bf16.mxu1 %v7762_v48 }
 0x1d9   :  { %3638 = vmatprep.subr.bf16.mxu0 %v7764_v45  ;;  %v1702_v45 = vrot.slane %v1681_v28, %v10192_v58 }
 0x1db   :  { %3516 = vmatpush1.bf16.msra.mxu1 %v7761_v40 }
 0x1dc   :  { %3639 = vmatpush1.bf16.msra.mxu0 %v7763_v44  ;;  %3517 = vmatprep.subr.bf16.mxu1 %v7770_v46 }
 0x1dd   :  { %3640 = vmatprep.subr.bf16.mxu0 %v7772_v50 }
 0x1df   :  { %3518 = vmatpush1.bf16.msra.mxu1 %v7769_v56 }
 0x1e0   :  { %3641 = vmatpush1.bf16.msra.mxu0 %v7771_v7  ;;  %3519 = vmatprep.subr.bf16.mxu1 %v7778_v57 }
 0x1e1   :  { %3642 = vmatprep.subr.bf16.mxu0 %v7780_v52  ;;  %v1862_v52 = vld [vmem:[%s12617_s5 + $0x480] sm:$0xff] }
 0x1e3   :  { %3520 = vmatpush1.bf16.msra.mxu1 %v7777_v63  ;;  %v1867_v63 = vld [vmem:[%s12617_s5 + $0x4a8] sm:$0xff] }
 0x1e4   :  { %3643 = vmatpush1.bf16.msra.mxu0 %v7779_v0  ;;  %3521 = vmatprep.subr.bf16.mxu1 %v7786_v2 }
 0x1e5   :  { %3644 = vmatprep.subr.bf16.mxu0 %v7788_v3  ;;  %v7803_v3 = vcombine.low %v1855_v54, %v1859_v55 }
 0x1e7   :  { %3522 = vmatpush1.bf16.msra.mxu1 %v7785_v4 }
 0x24a   :  { %v1622_v11 = vpop.xlane.xlu0 %1621 }
 0x24b   :  { %v1623_v6 = vmul.f32 0.0017361111, %v1622_v11  ;;  %v7787_v11 = vcombine.low %v1839_v61, %v1843_v62  ;;  %v1866_v61 = vld [vmem:[%s12617_s5 + $0x4a0] sm:$0xff]  ;;  %v1863_v62 = vld [vmem:[%s12617_s5 + $0x488] sm:$0xff] }
 0x24c   :  { %v7810_v4 = vcombine.high %v1862_v52, %v1866_v61 }
 0x24d   :  { %v10359_v14 = vsub.f32 %v10198_v10, %v1623_v6  ;;  %v10362_v27 = vsub.f32 %v10203_v12, %v1623_v6  ;;  %v10365_v17 = vsub.f32 %v10208_v13, %v1623_v6  ;;  %v10368_v18 = vsub.f32 %v10221_v23, %v1623_v6  ;;  %3645 = vmatpush1.bf16.msra.mxu0 %v7787_v11 }
 0x24e   :  { %v10371_v19 = vsub.f32 %v10215_v16, %v1623_v6  ;;  %v1846_v6 = vld [vmem:[%s12617_s5 + $0x400] sm:$0xff]  ;;  %v7812_v11 = vcombine.high %v1863_v62, %v1867_v63 }
 0x24f   :  { %v1629_v20 = vmul.f32 %v10359_v14, %v10359_v14  ;;  %v1630_v21 = vmul.f32 %v10362_v27, %v10362_v27  ;;  %v1631_v10 = vmul.f32 %v10365_v17, %v10365_v17  ;;  %v1633_v13 = vmul.f32 %v10368_v18, %v10368_v18 }
 0x250   :  { %v1632_v23 = vmul.f32 %v10371_v19, %v10371_v19 }
 0x251   :  { %v1634_v12 = vadd.f32 %v1630_v21, %v1629_v20  ;;  %v1637_v16 = vsel %vm1241_vm0, %v1633_v13, 0.0  ;;  %v1850_v20 = vld [vmem:[%s12617_s5 + $0x420] sm:$0xff]  ;;  %v1847_v21 = vld [vmem:[%s12617_s5 + $0x408] sm:$0xff] }
 0x252   :  { %v7793_v13 = vcombine.low %v1846_v6, %v1850_v20 }
 0x253   :  { %v1635_v22 = vadd.f32 %v1634_v12, %v1631_v10  ;;  %v7794_v10 = vcombine.high %v1846_v6, %v1850_v20  ;;  %v1851_v12 = vld [vmem:[%s12617_s5 + $0x428] sm:$0xff]  ;;  %v1870_v6 = vld [vmem:[%s12617_s5 + $0x4c0] sm:$0xff] }
 0x254   :  { %v1874_v20 = vld [vmem:[%s12617_s5 + $0x4e0] sm:$0xff] }
 0x255   :  { %v1636_v24 = vadd.f32 %v1635_v22, %v1632_v23  ;;  %v7795_v23 = vcombine.low %v1847_v21, %v1851_v12  ;;  %v7796_v22 = vcombine.high %v1847_v21, %v1851_v12  ;;  %3532 = vmatprep.subr.bf16.mxu1 %v7794_v10  ;;  %v1871_v21 = vld [vmem:[%s12617_s5 + $0x4c8] sm:$0xff]  ;;  %v7809_v12 = vcombine.low %v1862_v52, %v1866_v61  ;;  %v1914_v61 = vld [vmem:[%s12617_s5 + $0x620] sm:$0xff] }
 0x256   :  { %v1875_v10 = vld [vmem:[%s12617_s5 + $0x4e8] sm:$0xff]  ;;  %v7817_v28 = vcombine.low %v1870_v6, %v1874_v20 }
 0x257   :  { %v1638_v25 = vadd.f32 %v1637_v16, %v1636_v24  ;;  %3655 = vmatprep.subr.bf16.mxu0 %v7796_v22  ;;  %v7820_v22 = vcombine.high %v1871_v21, %v1875_v10 }
 0x259   :  { %1639 = vadd.xlane.f32.xlu0 %v1638_v25 }
 0x2e6   :  { %v1640_v24 = vpop.xlane.xlu0 %1639 }
 0x2e7   :  { %v1641_v16 = vmul.f32 0.0017361111, %v1640_v24  ;;  %v1878_v24 = vld [vmem:[%s12617_s5 + $0x500] sm:$0xff] }
 0x2e9   :  { %v1642_v25 = vadd.f32 1e-05, %v1641_v16  ;;  %v1882_v16 = vld [vmem:[%s12617_s5 + $0x520] sm:$0xff] }
 0x2eb   :  { %9462 = vrsqrt.f32 %v1642_v25  ;;  %v1879_v25 = vld [vmem:[%s12617_s5 + $0x508] sm:$0xff] }
 0x2f5   :  { %v9463_v33 = vpop.eup %9462 }
 0x2f6   :  { %v1645_v40 = vmul.f32 %v9463_v33, %v10362_v27  ;;  %v1644_v48 = vmul.f32 %v9463_v33, %v10359_v14  ;;  %v1647_v41 = vmul.f32 %v9463_v33, %v10371_v19  ;;  %v1646_v42 = vmul.f32 %v9463_v33, %v10365_v17  ;;  %v1854_v14 = vld [vmem:[%s12617_s5 + $0x440] sm:$0xff] }
 0x2f7   :  { %v1648_v44 = vmul.f32 %v9463_v33, %v10368_v18  ;;  %v1858_v18 = vld [vmem:[%s12617_s5 + $0x460] sm:$0xff] }
 0x2f8   :  { %v1677_v46 = vmul.f32 %v1658_v29, %v1645_v40  ;;  %v1676_v47 = vmul.f32 %v1654_v30, %v1644_v48  ;;  %v1679_v49 = vmul.f32 %v1666_v31, %v1647_v41  ;;  %v1678_v50 = vmul.f32 %v1662_v32, %v1646_v42  ;;  %v1886_v32 = vld [vmem:[%s12617_s5 + $0x540] sm:$0xff] }
 0x2f9   :  { %v1680_v51 = vmul.f32 %v1670_v39, %v1648_v44  ;;  %v7802_v59 = vcombine.high %v1854_v14, %v1858_v18  ;;  %v7801_v2 = vcombine.low %v1854_v14, %v1858_v18  ;;  %v7819_v29 = vcombine.low %v1871_v21, %v1875_v10  ;;  %v1890_v33 = vld [vmem:[%s12617_s5 + $0x560] sm:$0xff]  ;;  %v1899_v44 = vld [vmem:[%s12617_s5 + $0x5a8] sm:$0xff] }
 0x2fa   :  { %v10477_v53 = vadd.f32 %v1690_v34, %v1677_v46  ;;  %v10479_v27 = vadd.f32 %v1686_v36, %v1676_v47  ;;  %v10484_v17 = vadd.f32 %v1694_v38, %v1678_v50  ;;  %v10486_v19 = vadd.f32 %v1698_v43, %v1679_v49  ;;  %v1887_v34 = vld [vmem:[%s12617_s5 + $0x548] sm:$0xff]  ;;  %v1894_v41 = vld [vmem:[%s12617_s5 + $0x580] sm:$0xff] }
 0x2fb   :  { %v10497_v56 = vadd.f32 %v1702_v45, %v1680_v51  ;;  %v7826_v30 = vcombine.high %v1878_v24, %v1882_v16  ;;  %v7828_v31 = vcombine.high %v1879_v25, %v1883_v26  ;;  %v1891_v36 = vld [vmem:[%s12617_s5 + $0x568] sm:$0xff]  ;;  %v7825_v38 = vcombine.low %v1878_v24, %v1882_v16  ;;  %v1898_v42 = vld [vmem:[%s12617_s5 + $0x5a0] sm:$0xff] }
 0x2fc   :  { %v10501_v7 = vpack.c.bf16 %v10477_v53, %v10477_v53  ;;  %v10505_v57 = vpack.c.bf16 %v10479_v27, %v10479_v27  ;;  %v10525_v0 = vpack.c.bf16 %v10486_v19, %v10486_v19  ;;  %v7827_v39 = vcombine.low %v1879_v25, %v1883_v26  ;;  %v1895_v43 = vld [vmem:[%s12617_s5 + $0x588] sm:$0xff]  ;;  %v1902_v50 = vld [vmem:[%s12617_s5 + $0x5c0] sm:$0xff] }
 0x2fd   :  { %v7834_v40 = vcombine.high %v1886_v32, %v1890_v33  ;;  %v7836_v48 = vcombine.high %v1887_v34, %v1891_v36  ;;  %v7833_v45 = vcombine.low %v1886_v32, %v1890_v33  ;;  %v7835_v46 = vcombine.low %v1887_v34, %v1891_v36  ;;  %v1906_v51 = vld [vmem:[%s12617_s5 + $0x5e0] sm:$0xff]  ;;  %v1903_v14 = vld [vmem:[%s12617_s5 + $0x5c8] sm:$0xff] }
 0x2fe   :  { %3523 = vmatprep.mubr.bf16.mxu1 %v10501_v7  ;;  %3646 = vmatprep.mubr.bf16.mxu0 %v10501_v7  ;;  %v7842_v47 = vcombine.high %v1894_v41, %v1898_v42  ;;  %v7844_v49 = vcombine.high %v1895_v43, %v1899_v44  ;;  %v1907_v18 = vld [vmem:[%s12617_s5 + $0x5e8] sm:$0xff]  ;;  %v7841_v54 = vcombine.low %v1894_v41, %v1898_v42  ;;  %v1926_v24 = vld [vmem:[%s12617_s5 + $0x680] sm:$0xff] }
 0x2ff   :  { %3524 = vmatmul.mubr.bf16.vlgmr.msra.gmra.mrb[12].mxu1 %v10505_v57  ;;  %3647 = vmatmul.mubr.bf16.vlgmr.msra.gmra.mrb[24].mxu0 %v10505_v57  ;;  %v7843_v55 = vcombine.low %v1895_v43, %v1899_v44  ;;  %v7850_v52 = vcombine.high %v1902_v50, %v1906_v51  ;;  %v1919_v21 = vld [vmem:[%s12617_s5 + $0x648] sm:$0xff]  ;;  %v1930_v16 = vld [vmem:[%s12617_s5 + $0x6a0] sm:$0xff] }
 0x300   :  { %3533 = vmatpush1.bf16.msra.mxu1 %v7793_v13  ;;  %3656 = vmatpush1.bf16.msra.mxu0 %v7795_v23  ;;  %v7811_v13 = vcombine.low %v1863_v62, %v1867_v63  ;;  %v7818_v23 = vcombine.high %v1870_v6, %v1874_v20  ;;  %v1911_v62 = vld [vmem:[%s12617_s5 + $0x608] sm:$0xff]  ;;  %v1918_v6 = vld [vmem:[%s12617_s5 + $0x640] sm:$0xff] }
 0x301   :  { %3564 = vmatprep.mubr.bf16.mxu1 %v10525_v0  ;;  %3687 = vmatprep.mubr.bf16.mxu0 %v10525_v0  ;;  %v1915_v63 = vld [vmem:[%s12617_s5 + $0x628] sm:$0xff]  ;;  %v1922_v20 = vld [vmem:[%s12617_s5 + $0x660] sm:$0xff] }
 0x302   :  { %3534 = vmatprep.subr.bf16.mxu1 %v7802_v59  ;;  %3657 = vmatprep.subr.bf16.mxu0 %v7804_v60  ;;  %v7852_v59 = vcombine.high %v1903_v14, %v1907_v18  ;;  %v1910_v60 = vld [vmem:[%s12617_s5 + $0x600] sm:$0xff]  ;;  %v1923_v10 = vld [vmem:[%s12617_s5 + $0x668] sm:$0xff] }
 0x303   :  { %v1927_v25 = vld [vmem:[%s12617_s5 + $0x688] sm:$0xff]  ;;  %v1934_v32 = vld [vmem:[%s12617_s5 + $0x6c0] sm:$0xff] }
 0x304   :  { %3535 = vmatpush1.bf16.msra.mxu1 %v7801_v2  ;;  %3658 = vmatpush1.bf16.msra.mxu0 %v7803_v3  ;;  %v7849_v2 = vcombine.low %v1902_v50, %v1906_v51  ;;  %v7851_v3 = vcombine.low %v1903_v14, %v1907_v18  ;;  %v1931_v26 = vld [vmem:[%s12617_s5 + $0x6a8] sm:$0xff]  ;;  %v1938_v33 = vld [vmem:[%s12617_s5 + $0x6e0] sm:$0xff] }
 0x305   :  { %3536 = vmatprep.subr.bf16.mxu1 %v7810_v4  ;;  %3659 = vmatprep.subr.bf16.mxu0 %v7812_v11  ;;  %v7858_v4 = vcombine.high %v1910_v60, %v1914_v61  ;;  %v7860_v11 = vcombine.high %v1911_v62, %v1915_v63  ;;  %v1935_v34 = vld [vmem:[%s12617_s5 + $0x6c8] sm:$0xff]  ;;  %v1942_v41 = vld [vmem:[%s12617_s5 + $0x700] sm:$0xff] }
 0x306   :  { %v1939_v36 = vld [vmem:[%s12617_s5 + $0x6e8] sm:$0xff]  ;;  %v1946_v42 = vld [vmem:[%s12617_s5 + $0x720] sm:$0xff] }
 0x307   :  { %v1943_v43 = vld [vmem:[%s12617_s5 + $0x708] sm:$0xff]  ;;  %v1950_v50 = vld [vmem:[%s12617_s5 + $0x740] sm:$0xff] }
 0x308   :  { %3537 = vmatpush1.bf16.msra.mxu1 %v7809_v12  ;;  %3660 = vmatpush1.bf16.msra.mxu0 %v7811_v13  ;;  %v7857_v12 = vcombine.low %v1910_v60, %v1914_v61  ;;  %v7859_v13 = vcombine.low %v1911_v62, %v1915_v63  ;;  %v1947_v44 = vld [vmem:[%s12617_s5 + $0x728] sm:$0xff]  ;;  %v1954_v51 = vld [vmem:[%s12617_s5 + $0x760] sm:$0xff] }
 0x309   :  { %3538 = vmatprep.subr.bf16.mxu1 %v7818_v23  ;;  %3661 = vmatprep.subr.bf16.mxu0 %v7820_v22  ;;  %v7866_v23 = vcombine.high %v1918_v6, %v1922_v20  ;;  %v7868_v22 = vcombine.high %v1919_v21, %v1923_v10  ;;  %v1951_v14 = vld [vmem:[%s12617_s5 + $0x748] sm:$0xff]  ;;  %v1958_v60 = vld [vmem:[%s12617_s5 + $0x780] sm:$0xff] }
 0x30a   :  { %v1955_v18 = vld [vmem:[%s12617_s5 + $0x768] sm:$0xff]  ;;  %v1962_v61 = vld [vmem:[%s12617_s5 + $0x7a0] sm:$0xff] }
 0x30b   :  { %v1959_v62 = vld [vmem:[%s12617_s5 + $0x788] sm:$0xff] }
 0x30c   :  { %3539 = vmatpush1.bf16.msra.mxu1 %v7817_v28  ;;  %3662 = vmatpush1.bf16.msra.mxu0 %v7819_v29  ;;  %v7865_v28 = vcombine.low %v1918_v6, %v1922_v20  ;;  %v7867_v29 = vcombine.low %v1919_v21, %v1923_v10  ;;  %v1963_v63 = vld [vmem:[%s12617_s5 + $0x7a8] sm:$0xff]  ;;  %v1966_v6 = vld [vmem:[%s12617_s5 + $0x7c0] sm:$0xff] }
 0x30d   :  { %3540 = vmatprep.subr.bf16.mxu1 %v7826_v30  ;;  %3663 = vmatprep.subr.bf16.mxu0 %v7828_v31  ;;  %v7874_v30 = vcombine.high %v1926_v24, %v1930_v16  ;;  %v7876_v31 = vcombine.high %v1927_v25, %v1931_v26  ;;  %v1970_v20 = vld [vmem:[%s12617_s5 + $0x7e0] sm:$0xff]  ;;  %v1967_v21 = vld [vmem:[%s12617_s5 + $0x7c8] sm:$0xff] }
 0x30e   :  { %v1971_v10 = vld [vmem:[%s12617_s5 + $0x7e8] sm:$0xff] }
 0x310   :  { %3541 = vmatpush1.bf16.msra.mxu1 %v7825_v38  ;;  %3664 = vmatpush1.bf16.msra.mxu0 %v7827_v39  ;;  %v7873_v38 = vcombine.low %v1926_v24, %v1930_v16  ;;  %v7875_v39 = vcombine.low %v1927_v25, %v1931_v26  ;;  %v1974_v24 = vld [vmem:[%s12617_s5 + $0x800] sm:$0xff]  ;;  %v1975_v25 = vld [vmem:[%s12617_s5 + $0x808] sm:$0xff] }
 0x311   :  { %3542 = vmatprep.subr.bf16.mxu1 %v7834_v40  ;;  %3665 = vmatprep.subr.bf16.mxu0 %v7836_v48  ;;  %v7882_v40 = vcombine.high %v1934_v32, %v1938_v33  ;;  %v7884_v48 = vcombine.high %v1935_v34, %v1939_v36  ;;  %v1978_v16 = vld [vmem:[%s12617_s5 + $0x820] sm:$0xff]  ;;  %v1979_v26 = vld [vmem:[%s12617_s5 + $0x828] sm:$0xff] }
 0x314   :  { %3543 = vmatpush1.bf16.msra.mxu1 %v7833_v45  ;;  %3666 = vmatpush1.bf16.msra.mxu0 %v7835_v46  ;;  %v7881_v45 = vcombine.low %v1934_v32, %v1938_v33  ;;  %v7883_v46 = vcombine.low %v1935_v34, %v1939_v36  ;;  %v1982_v32 = vld [vmem:[%s12617_s5 + $0x840] sm:$0xff]  ;;  %v1983_v34 = vld [vmem:[%s12617_s5 + $0x848] sm:$0xff] }
 0x315   :  { %3544 = vmatprep.subr.bf16.mxu1 %v7842_v47  ;;  %3667 = vmatprep.subr.bf16.mxu0 %v7844_v49  ;;  %v7890_v47 = vcombine.high %v1942_v41, %v1946_v42  ;;  %v7892_v49 = vcombine.high %v1943_v43, %v1947_v44  ;;  %v1986_v33 = vld [vmem:[%s12617_s5 + $0x860] sm:$0xff]  ;;  %v1987_v36 = vld [vmem:[%s12617_s5 + $0x868] sm:$0xff] }
 0x318   :  { %3545 = vmatpush1.bf16.msra.mxu1 %v7841_v54  ;;  %3668 = vmatpush1.bf16.msra.mxu0 %v7843_v55  ;;  %v7889_v54 = vcombine.low %v1942_v41, %v1946_v42  ;;  %v7891_v55 = vcombine.low %v1943_v43, %v1947_v44  ;;  %v7932_v41 = vcombine.high %v1983_v34, %v1987_v36  ;;  %v1990_v42 = vld [vmem:[%s12617_s5 + $0x880] sm:$0xff]  ;;  %v1991_v44 = vld [vmem:[%s12617_s5 + $0x888] sm:$0xff] }
 0x319   :  { %3546 = vmatprep.subr.bf16.mxu1 %v7850_v52  ;;  %3669 = vmatprep.subr.bf16.mxu0 %v7852_v59  ;;  %v7898_v52 = vcombine.high %v1950_v50, %v1954_v51  ;;  %v7900_v59 = vcombine.high %v1951_v14, %v1955_v18  ;;  %v1994_v43 = vld [vmem:[%s12617_s5 + $0x8a0] sm:$0xff] }
 0x31c   :  { %3547 = vmatpush1.bf16.msra.mxu1 %v7849_v2  ;;  %3670 = vmatpush1.bf16.msra.mxu0 %v7851_v3  ;;  %v7897_v2 = vcombine.low %v1950_v50, %v1954_v51  ;;  %v7899_v3 = vcombine.low %v1951_v14, %v1955_v18  ;;  %v1998_v51 = vld [vmem:[%s12617_s5 + $0x8c0] sm:$0xff]  ;;  %v1999_v18 = vld [vmem:[%s12617_s5 + $0x8c8] sm:$0xff] }
 0x31d   :  { %3548 = vmatprep.subr.bf16.mxu1 %v7858_v4  ;;  %3671 = vmatprep.subr.bf16.mxu0 %v7860_v11  ;;  %v7906_v4 = vcombine.high %v1958_v60, %v1962_v61  ;;  %v7908_v11 = vcombine.high %v1959_v62, %v1963_v63  ;;  %v2002_v14 = vld [vmem:[%s12617_s5 + $0x8e0] sm:$0xff] }
 0x320   :  { %3549 = vmatpush1.bf16.msra.mxu1 %v7857_v12  ;;  %3672 = vmatpush1.bf16.msra.mxu0 %v7859_v13  ;;  %v7905_v12 = vcombine.low %v1958_v60, %v1962_v61  ;;  %v7907_v13 = vcombine.low %v1959_v62, %v1963_v63  ;;  %v1720_v61 = vld [vmem:[%s12617_s5 + $0x10] sm:$0xff]  ;;  %v1721_v63 = vld [vmem:[%s12617_s5 + $0x18] sm:$0xff] }
 0x321   :  { %3550 = vmatprep.subr.bf16.mxu1 %v7866_v23  ;;  %3673 = vmatprep.subr.bf16.mxu0 %v7868_v22  ;;  %v7914_v23 = vcombine.high %v1966_v6, %v1970_v20  ;;  %v7916_v22 = vcombine.high %v1967_v21, %v1971_v10  ;;  %v1724_v62 = vld [vmem:[%s12617_s5 + $0x30] sm:$0xff] }
 0x324   :  { %3551 = vmatpush1.bf16.msra.mxu1 %v7865_v28  ;;  %3674 = vmatpush1.bf16.msra.mxu0 %v7867_v29  ;;  %v7913_v28 = vcombine.low %v1966_v6, %v1970_v20  ;;  %v7915_v29 = vcombine.low %v1967_v21, %v1971_v10  ;;  %v1728_v20 = vld [vmem:[%s12617_s5 + $0x50] sm:$0xff]  ;;  %v1729_v10 = vld [vmem:[%s12617_s5 + $0x58] sm:$0xff] }
 0x325   :  { %3552 = vmatprep.subr.bf16.mxu1 %v7874_v30  ;;  %3675 = vmatprep.subr.bf16.mxu0 %v7876_v31  ;;  %v7922_v30 = vcombine.high %v1974_v24, %v1978_v16  ;;  %v7924_v31 = vcombine.high %v1975_v25, %v1979_v26  ;;  %v1732_v21 = vld [vmem:[%s12617_s5 + $0x70] sm:$0xff] }
 0x328   :  { %3553 = vmatpush1.bf16.msra.mxu1 %v7873_v38  ;;  %3676 = vmatpush1.bf16.msra.mxu0 %v7875_v39  ;;  %v7921_v38 = vcombine.low %v1974_v24, %v1978_v16  ;;  %v7923_v39 = vcombine.low %v1975_v25, %v1979_v26  ;;  %v7678_v24 = vcombine.high %v1728_v20, %v1732_v21  ;;  %v1736_v25 = vld [vmem:[%s12617_s5 + $0x90] sm:$0xff] }
 0x329   :  { %3554 = vmatprep.subr.bf16.mxu1 %v7882_v40  ;;  %3677 = vmatprep.subr.bf16.mxu0 %v7884_v48  ;;  %v10711_v40 = vpack.c.bf16 %v10484_v17, %v10484_v17  ;;  %v7930_v48 = vcombine.high %v1982_v32, %v1986_v33  ;;  %v1740_v26 = vld [vmem:[%s12617_s5 + $0xb0] sm:$0xff] }
 0x32c   :  { %3555 = vmatpush1.bf16.msra.mxu1 %v7881_v45  ;;  %3678 = vmatpush1.bf16.msra.mxu0 %v7883_v46  ;;  %v1995_v45 = vld [vmem:[%s12617_s5 + $0x8a8] sm:$0xff]  ;;  %v7929_v46 = vcombine.low %v1982_v32, %v1986_v33  ;;  %v7686_v32 = vcombine.high %v1736_v25, %v1740_v26 }
 0x32d   :  { %3556 = vmatprep.subr.bf16.mxu1 %v7890_v47  ;;  %3679 = vmatprep.subr.bf16.mxu0 %v7892_v49  ;;  %v7931_v47 = vcombine.low %v1983_v34, %v1987_v36  ;;  %v7938_v49 = vcombine.high %v1990_v42, %v1994_v43  ;;  %v7940_v50 = vcombine.high %v1991_v44, %v1995_v45  ;;  %v1744_v34 = vld [vmem:[%s12617_s5 + $0xd0] sm:$0xff] }
 0x32e   :  { %v1748_v36 = vld [vmem:[%s12617_s5 + $0xf0] sm:$0xff] }
 0x330   :  { %3557 = vmatpush1.bf16.msra.mxu1 %v7889_v54  ;;  %3680 = vmatpush1.bf16.msra.mxu0 %v7891_v55  ;;  %v2003_v54 = vld [vmem:[%s12617_s5 + $0x8e8] sm:$0xff]  ;;  %v7937_v55 = vcombine.low %v1990_v42, %v1994_v43  ;;  %v1752_v43 = vld [vmem:[%s12617_s5 + $0x110] sm:$0xff] }
 0x331   :  { %3558 = vmatprep.subr.bf16.mxu1 %v7898_v52  ;;  %3681 = vmatprep.subr.bf16.mxu0 %v7900_v59  ;;  %v7939_v52 = vcombine.low %v1991_v44, %v1995_v45  ;;  %v7946_v59 = vcombine.high %v1998_v51, %v2002_v14  ;;  %v7948_v60 = vcombine.high %v1999_v18, %v2003_v54  ;;  %v1756_v44 = vld [vmem:[%s12617_s5 + $0x130] sm:$0xff]  ;;  %v1753_v45 = vld [vmem:[%s12617_s5 + $0x118] sm:$0xff] }
 0x334   :  { %3559 = vmatpush1.bf16.msra.mxu1 %v7897_v2  ;;  %3682 = vmatpush1.bf16.msra.mxu0 %v7899_v3  ;;  %v1725_v2 = vld [vmem:[%s12617_s5 + $0x38] sm:$0xff]  ;;  %v7945_v3 = vcombine.low %v1998_v51, %v2002_v14  ;;  %v1760_v14 = vld [vmem:[%s12617_s5 + $0x150] sm:$0xff] }
 0x335   :  { %3560 = vmatprep.subr.bf16.mxu1 %v7906_v4  ;;  %3683 = vmatprep.subr.bf16.mxu0 %v7908_v11  ;;  %v7947_v4 = vcombine.low %v1999_v18, %v2003_v54  ;;  %v7670_v11 = vcombine.high %v1720_v61, %v1724_v62  ;;  %v7672_v6 = vcombine.high %v1721_v63, %v1725_v2  ;;  %v1764_v18 = vld [vmem:[%s12617_s5 + $0x170] sm:$0xff]  ;;  %v1761_v54 = vld [vmem:[%s12617_s5 + $0x158] sm:$0xff] }
 0x338   :  { %3561 = vmatpush1.bf16.msra.mxu1 %v7905_v12  ;;  %3684 = vmatpush1.bf16.msra.mxu0 %v7907_v13  ;;  %v1733_v12 = vld [vmem:[%s12617_s5 + $0x78] sm:$0xff]  ;;  %v7669_v13 = vcombine.low %v1720_v61, %v1724_v62  ;;  %v1768_v62 = vld [vmem:[%s12617_s5 + $0x190] sm:$0xff] }
 0x339   :  { %3562 = vmatprep.subr.bf16.mxu1 %v7914_v23  ;;  %3685 = vmatprep.subr.bf16.mxu0 %v7916_v22  ;;  %v10767_v23 = vpack.c.bf16 %v10497_v56, %v10497_v56  ;;  %v7671_v22 = vcombine.low %v1721_v63, %v1725_v2  ;;  %v7680_v16 = vcombine.high %v1729_v10, %v1733_v12  ;;  %v1772_v63 = vld [vmem:[%s12617_s5 + $0x1b0] sm:$0xff]  ;;  %v1769_v2 = vld [vmem:[%s12617_s5 + $0x198] sm:$0xff] }
 0x33c   :  { %3563 = vmatpush1.bf16.msra.mxu1 %v7913_v28  ;;  %3686 = vmatpush1.bf16.msra.mxu0 %v7915_v29  ;;  %v1737_v28 = vld [vmem:[%s12617_s5 + $0x98] sm:$0xff] }
 0x33d   :  { %3573 = vmatprep.subr.bf16.mxu1 %v7922_v30  ;;  %3696 = vmatprep.subr.bf16.mxu0 %v7924_v31  ;;  %v1741_v29 = vld [vmem:[%s12617_s5 + $0xb8] sm:$0xff]  ;;  %v7677_v30 = vcombine.low %v1728_v20, %v1732_v21  ;;  %v7679_v31 = vcombine.low %v1729_v10, %v1733_v12  ;;  %v1776_v21 = vld [vmem:[%s12617_s5 + $0x1d0] sm:$0xff] }
 0x33e   :  { %v7688_v33 = vcombine.high %v1737_v28, %v1741_v29  ;;  %v1780_v10 = vld [vmem:[%s12617_s5 + $0x1f0] sm:$0xff]  ;;  %v1777_v12 = vld [vmem:[%s12617_s5 + $0x1d8] sm:$0xff] }
 0x33f   :  { %3565 = vmatmul.mubr.bf16.vlgmr.msra.gmra.mrb[12].mxu1 %v10711_v40  ;;  %3688 = vmatmul.mubr.bf16.vlgmr.msra.gmra.mrb[24].mxu0 %v10711_v40 }
 0x340   :  { %3574 = vmatpush1.bf16.msra.mxu1 %v7921_v38  ;;  %3697 = vmatpush1.bf16.msra.mxu0 %v7923_v39  ;;  %v1745_v38 = vld [vmem:[%s12617_s5 + $0xd8] sm:$0xff]  ;;  %v7685_v39 = vcombine.low %v1736_v25, %v1740_v26  ;;  %v1784_v26 = vld [vmem:[%s12617_s5 + $0x210] sm:$0xff] }
 0x341   :  { %3575 = vmatprep.subr.bf16.mxu1 %v7930_v48  ;;  %3698 = vmatprep.subr.bf16.mxu0 %v7932_v41  ;;  %v7687_v48 = vcombine.low %v1737_v28, %v1741_v29  ;;  %v7694_v41 = vcombine.high %v1744_v34, %v1748_v36  ;;  %v1788_v28 = vld [vmem:[%s12617_s5 + $0x230] sm:$0xff]  ;;  %v1785_v29 = vld [vmem:[%s12617_s5 + $0x218] sm:$0xff] }
 0x342   :  { %3605 = vmatprep.mubr.bf16.mxu1 %v9495_v15  ;;  %3728 = vmatprep.mubr.bf16.mxu0 %v9495_v15 }
 0x344   :  { %3576 = vmatpush1.bf16.msra.mxu1 %v7929_v46  ;;  %3699 = vmatpush1.bf16.msra.mxu0 %v7931_v47  ;;  %v1757_v46 = vld [vmem:[%s12617_s5 + $0x138] sm:$0xff]  ;;  %v7693_v47 = vcombine.low %v1744_v34, %v1748_v36  ;;  %v1792_v36 = vld [vmem:[%s12617_s5 + $0x250] sm:$0xff] }
 0x345   :  { %3577 = vmatprep.subr.bf16.mxu1 %v7938_v49  ;;  %3700 = vmatprep.subr.bf16.mxu0 %v7940_v50  ;;  %v7702_v50 = vcombine.high %v1752_v43, %v1756_v44  ;;  %v7704_v51 = vcombine.high %v1753_v45, %v1757_v46 }
 0x348   :  { %3578 = vmatpush1.bf16.msra.mxu1 %v7937_v55  ;;  %3701 = vmatpush1.bf16.msra.mxu0 %v7939_v52  ;;  %v1765_v55 = vld [vmem:[%s12617_s5 + $0x178] sm:$0xff]  ;;  %v7701_v52 = vcombine.low %v1752_v43, %v1756_v44  ;;  %v1800_v44 = vld [vmem:[%s12617_s5 + $0x290] sm:$0xff] }
 0x349   :  { %3579 = vmatprep.subr.bf16.mxu1 %v7946_v59  ;;  %3702 = vmatprep.subr.bf16.mxu0 %v7948_v60  ;;  %v7703_v59 = vcombine.low %v1753_v45, %v1757_v46  ;;  %v7710_v60 = vcombine.high %v1760_v14, %v1764_v18  ;;  %v7712_v61 = vcombine.high %v1761_v54, %v1765_v55  ;;  %v1804_v45 = vld [vmem:[%s12617_s5 + $0x2b0] sm:$0xff]  ;;  %v1801_v46 = vld [vmem:[%s12617_s5 + $0x298] sm:$0xff] }
 0x34c   :  { %3580 = vmatpush1.bf16.msra.mxu1 %v7945_v3  ;;  %3703 = vmatpush1.bf16.msra.mxu0 %v7947_v4  ;;  %v1773_v3 = vld [vmem:[%s12617_s5 + $0x1b8] sm:$0xff]  ;;  %v7709_v4 = vcombine.low %v1760_v14, %v1764_v18  ;;  %v1808_v18 = vld [vmem:[%s12617_s5 + $0x2d0] sm:$0xff] }
 0x34d   :  { %3737 = vmatprep.subr.bf16.mxu1 %v7670_v11  ;;  %3860 = vmatprep.subr.bf16.mxu0 %v7672_v6  ;;  %v7711_v11 = vcombine.low %v1761_v54, %v1765_v55  ;;  %v7718_v6 = vcombine.high %v1768_v62, %v1772_v63  ;;  %v7720_v20 = vcombine.high %v1769_v2, %v1773_v3  ;;  %v1812_v54 = vld [vmem:[%s12617_s5 + $0x2f0] sm:$0xff]  ;;  %v1809_v55 = vld [vmem:[%s12617_s5 + $0x2d8] sm:$0xff] }
 0x34f   :  { %7953 = vmatmul.mubr.msk.bf16.vlgmr.msra.gmra.mrb[12].mxu1 %vm1241_vm0, %v10767_v23  ;;  %7954 = vmatmul.mubr.msk.bf16.vlgmr.msra.gmra.mrb[24].mxu0 %vm1241_vm0, %v10767_v23 }
 0x350   :  { %3738 = vmatpush1.bf16.msra.mxu1 %v7669_v13  ;;  %3769 = vmatprep.mubr.bf16.mxu1 %v10501_v7  ;;  %v1781_v13 = vld [vmem:[%s12617_s5 + $0x1f8] sm:$0xff] }
 0x351   :  { %3861 = vmatpush1.bf16.msra.mxu0 %v7671_v22  ;;  %3892 = vmatprep.mubr.bf16.mxu0 %v10501_v7  ;;  %v1749_v7 = vld [vmem:[%s12617_s5 + $0xf8] sm:$0xff]  ;;  %v7717_v22 = vcombine.low %v1768_v62, %v1772_v63  ;;  %v7728_v25 = vcombine.high %v1777_v12, %v1781_v13  ;;  %v1816_v63 = vld [vmem:[%s12617_s5 + $0x310] sm:$0xff] }
 0x352   :  { %3739 = vmatprep.subr.bf16.mxu1 %v7678_v24  ;;  %3862 = vmatprep.subr.bf16.mxu0 %v7680_v16  ;;  %v7696_v42 = vcombine.high %v1745_v38, %v1749_v7  ;;  %v7695_v49 = vcombine.low %v1745_v38, %v1749_v7  ;;  %v7719_v24 = vcombine.low %v1769_v2, %v1773_v3  ;;  %v1796_v38 = vld [vmem:[%s12617_s5 + $0x270] sm:$0xff]  ;;  %v1793_v7 = vld [vmem:[%s12617_s5 + $0x258] sm:$0xff] }
 0x353   :  { %v7726_v16 = vcombine.high %v1776_v21, %v1780_v10  ;;  %v1820_v2 = vld [vmem:[%s12617_s5 + $0x330] sm:$0xff]  ;;  %v1817_v3 = vld [vmem:[%s12617_s5 + $0x318] sm:$0xff] }
 0x354   :  { %3740 = vmatpush1.bf16.msra.mxu1 %v7677_v30  ;;  %v1789_v30 = vld [vmem:[%s12617_s5 + $0x238] sm:$0xff] }
 0x355   :  { %3863 = vmatpush1.bf16.msra.mxu0 %v7679_v31  ;;  %3741 = vmatprep.subr.bf16.mxu1 %v7686_v32  ;;  %v7725_v31 = vcombine.low %v1776_v21, %v1780_v10  ;;  %v7727_v32 = vcombine.low %v1777_v12, %v1781_v13  ;;  %v7736_v34 = vcombine.high %v1785_v29, %v1789_v30  ;;  %v1824_v10 = vld [vmem:[%s12617_s5 + $0x350] sm:$0xff]  ;;  %v1825_v13 = vld [vmem:[%s12617_s5 + $0x358] sm:$0xff] }
 0x356   :  { %3864 = vmatprep.subr.bf16.mxu0 %v7688_v33  ;;  %v7734_v33 = vcombine.high %v1784_v26, %v1788_v28  ;;  %v1828_v12 = vld [vmem:[%s12617_s5 + $0x370] sm:$0xff] }
 0x358   :  { %3742 = vmatpush1.bf16.msra.mxu1 %v7685_v39  ;;  %v1797_v39 = vld [vmem:[%s12617_s5 + $0x278] sm:$0xff] }
 0x359   :  { %3865 = vmatpush1.bf16.msra.mxu0 %v7687_v48  ;;  %3743 = vmatprep.subr.bf16.mxu1 %v7694_v41  ;;  %v7733_v48 = vcombine.low %v1784_v26, %v1788_v28  ;;  %v7735_v41 = vcombine.low %v1785_v29, %v1789_v30  ;;  %v7744_v43 = vcombine.high %v1793_v7, %v1797_v39  ;;  %v1832_v28 = vld [vmem:[%s12617_s5 + $0x390] sm:$0xff]  ;;  %v1833_v30 = vld [vmem:[%s12617_s5 + $0x398] sm:$0xff] }
 0x35a   :  { %3866 = vmatprep.subr.bf16.mxu0 %v7696_v42  ;;  %v7742_v42 = vcombine.high %v1792_v36, %v1796_v38  ;;  %v1836_v29 = vld [vmem:[%s12617_s5 + $0x3b0] sm:$0xff] }
 0x35c   :  { %3744 = vmatpush1.bf16.msra.mxu1 %v7693_v47  ;;  %v1805_v47 = vld [vmem:[%s12617_s5 + $0x2b8] sm:$0xff] }
 0x35d   :  { %3867 = vmatpush1.bf16.msra.mxu0 %v7695_v49  ;;  %3745 = vmatprep.subr.bf16.mxu1 %v7702_v50  ;;  %v7741_v49 = vcombine.low %v1792_v36, %v1796_v38  ;;  %v7743_v50 = vcombine.low %v1793_v7, %v1797_v39  ;;  %v7752_v14 = vcombine.high %v1801_v46, %v1805_v47  ;;  %v1840_v38 = vld [vmem:[%s12617_s5 + $0x3d0] sm:$0xff]  ;;  %v1841_v39 = vld [vmem:[%s12617_s5 + $0x3d8] sm:$0xff] }
 0x35e   :  { %3868 = vmatprep.subr.bf16.mxu0 %v7704_v51  ;;  %v7750_v51 = vcombine.high %v1800_v44, %v1804_v45  ;;  %v1844_v7 = vld [vmem:[%s12617_s5 + $0x3f0] sm:$0xff] }
 0x360   :  { %3746 = vmatpush1.bf16.msra.mxu1 %v7701_v52  ;;  %v1813_v52 = vld [vmem:[%s12617_s5 + $0x2f8] sm:$0xff] }
 0x361   :  { %3869 = vmatpush1.bf16.msra.mxu0 %v7703_v59  ;;  %3747 = vmatprep.subr.bf16.mxu1 %v7710_v60  ;;  %v7749_v59 = vcombine.low %v1800_v44, %v1804_v45  ;;  %v7751_v60 = vcombine.low %v1801_v46, %v1805_v47  ;;  %v7760_v62 = vcombine.high %v1809_v55, %v1813_v52  ;;  %v1848_v45 = vld [vmem:[%s12617_s5 + $0x410] sm:$0xff]  ;;  %v1849_v47 = vld [vmem:[%s12617_s5 + $0x418] sm:$0xff] }
 0x362   :  { %3870 = vmatprep.subr.bf16.mxu0 %v7712_v61  ;;  %v7758_v61 = vcombine.high %v1808_v18, %v1812_v54  ;;  %v1852_v46 = vld [vmem:[%s12617_s5 + $0x430] sm:$0xff] }
 0x364   :  { %3748 = vmatpush1.bf16.msra.mxu1 %v7709_v4  ;;  %v1821_v4 = vld [vmem:[%s12617_s5 + $0x338] sm:$0xff] }
 0x365   :  { %3871 = vmatpush1.bf16.msra.mxu0 %v7711_v11  ;;  %3749 = vmatprep.subr.bf16.mxu1 %v7718_v6  ;;  %v7757_v11 = vcombine.low %v1808_v18, %v1812_v54  ;;  %v7759_v6 = vcombine.low %v1809_v55, %v1813_v52  ;;  %v7768_v21 = vcombine.high %v1817_v3, %v1821_v4  ;;  %v1856_v54 = vld [vmem:[%s12617_s5 + $0x450] sm:$0xff] }
 0x366   :  { %3872 = vmatprep.subr.bf16.mxu0 %v7720_v20  ;;  %v7766_v20 = vcombine.high %v1816_v63, %v1820_v2  ;;  %v1860_v55 = vld [vmem:[%s12617_s5 + $0x470] sm:$0xff]  ;;  %v7797_v52 = vcombine.low %v1848_v45, %v1852_v46 }
 0x368   :  { %3750 = vmatpush1.bf16.msra.mxu1 %v7717_v22  ;;  %v1829_v22 = vld [vmem:[%s12617_s5 + $0x378] sm:$0xff] }
 0x369   :  { %3873 = vmatpush1.bf16.msra.mxu0 %v7719_v24  ;;  %3751 = vmatprep.subr.bf16.mxu1 %v7726_v16  ;;  %v7765_v24 = vcombine.low %v1816_v63, %v1820_v2  ;;  %v7767_v16 = vcombine.low %v1817_v3, %v1821_v4  ;;  %v7776_v26 = vcombine.high %v1825_v13, %v1829_v22  ;;  %v1864_v63 = vld [vmem:[%s12617_s5 + $0x490] sm:$0xff]  ;;  %v1865_v4 = vld [vmem:[%s12617_s5 + $0x498] sm:$0xff] }
 0x36a   :  { %3874 = vmatprep.subr.bf16.mxu0 %v7728_v25  ;;  %v7774_v25 = vcombine.high %v1824_v10, %v1828_v12  ;;  %v1868_v2 = vld [vmem:[%s12617_s5 + $0x4b0] sm:$0xff] }
 0x36c   :  { %3752 = vmatpush1.bf16.msra.mxu1 %v7725_v31  ;;  %v1837_v31 = vld [vmem:[%s12617_s5 + $0x3b8] sm:$0xff] }
 0x36d   :  { %3875 = vmatpush1.bf16.msra.mxu0 %v7727_v32  ;;  %3753 = vmatprep.subr.bf16.mxu1 %v7734_v33  ;;  %v7773_v32 = vcombine.low %v1824_v10, %v1828_v12  ;;  %v7775_v33 = vcombine.low %v1825_v13, %v1829_v22  ;;  %v7784_v36 = vcombine.high %v1833_v30, %v1837_v31  ;;  %v1872_v12 = vld [vmem:[%s12617_s5 + $0x4d0] sm:$0xff]  ;;  %v1877_v22 = vld [vmem:[%s12617_s5 + $0x4f8] sm:$0xff] }
 0x36e   :  { %3876 = vmatprep.subr.bf16.mxu0 %v7736_v34  ;;  %v7782_v34 = vcombine.high %v1832_v28, %v1836_v29  ;;  %v1876_v13 = vld [vmem:[%s12617_s5 + $0x4f0] sm:$0xff] }
 0x370   :  { %3754 = vmatpush1.bf16.msra.mxu1 %v7733_v48  ;;  %v1845_v48 = vld [vmem:[%s12617_s5 + $0x3f8] sm:$0xff] }
 0x371   :  { %3877 = vmatpush1.bf16.msra.mxu0 %v7735_v41  ;;  %3755 = vmatprep.subr.bf16.mxu1 %v7742_v42  ;;  %v7781_v41 = vcombine.low %v1832_v28, %v1836_v29  ;;  %v7783_v42 = vcombine.low %v1833_v30, %v1837_v31  ;;  %v7792_v44 = vcombine.high %v1841_v39, %v1845_v48  ;;  %v1884_v28 = vld [vmem:[%s12617_s5 + $0x530] sm:$0xff]  ;;  %v1881_v29 = vld [vmem:[%s12617_s5 + $0x518] sm:$0xff] }
 0x372   :  { %3878 = vmatprep.subr.bf16.mxu0 %v7744_v43  ;;  %v7790_v43 = vcombine.high %v1840_v38, %v1844_v7  ;;  %v1885_v30 = vld [vmem:[%s12617_s5 + $0x538] sm:$0xff]  ;;  %v7821_v31 = vcombine.low %v1872_v12, %v1876_v13 }
 0x374   :  { %3756 = vmatpush1.bf16.msra.mxu1 %v7741_v49  ;;  %v1853_v49 = vld [vmem:[%s12617_s5 + $0x438] sm:$0xff] }
 0x375   :  { %3879 = vmatpush1.bf16.msra.mxu0 %v7743_v50  ;;  %3757 = vmatprep.subr.bf16.mxu1 %v7750_v51  ;;  %v7789_v50 = vcombine.low %v1840_v38, %v1844_v7  ;;  %v7791_v51 = vcombine.low %v1841_v39, %v1845_v48  ;;  %v7800_v18 = vcombine.high %v1849_v47, %v1853_v49  ;;  %v1892_v38 = vld [vmem:[%s12617_s5 + $0x570] sm:$0xff]  ;;  %v1889_v7 = vld [vmem:[%s12617_s5 + $0x558] sm:$0xff] }
 0x376   :  { %3880 = vmatprep.subr.bf16.mxu0 %v7752_v14  ;;  %v7798_v14 = vcombine.high %v1848_v45, %v1852_v46  ;;  %v1893_v39 = vld [vmem:[%s12617_s5 + $0x578] sm:$0xff]  ;;  %v1900_v45 = vld [vmem:[%s12617_s5 + $0x5b0] sm:$0xff] }
 0x377   :  { %v1897_v46 = vld [vmem:[%s12617_s5 + $0x598] sm:$0xff] }
 0x378   :  { %3758 = vmatpush1.bf16.msra.mxu1 %v7749_v59  ;;  %v1857_v59 = vld [vmem:[%s12617_s5 + $0x458] sm:$0xff] }
 0x379   :  { %3881 = vmatpush1.bf16.msra.mxu0 %v7751_v60  ;;  %3759 = vmatprep.subr.bf16.mxu1 %v7758_v61  ;;  %v1861_v60 = vld [vmem:[%s12617_s5 + $0x478] sm:$0xff]  ;;  %v7799_v61 = vcombine.low %v1849_v47, %v1853_v49 }
 0x37a   :  { %3882 = vmatprep.subr.bf16.mxu0 %v7760_v62  ;;  %v7806_v62 = vcombine.high %v1856_v54, %v1860_v55  ;;  %v7808_v3 = vcombine.high %v1857_v59, %v1861_v60  ;;  %v1901_v47 = vld [vmem:[%s12617_s5 + $0x5b8] sm:$0xff] }
 0x37c   :  { %3760 = vmatpush1.bf16.msra.mxu1 %v7757_v11  ;;  %v1869_v11 = vld [vmem:[%s12617_s5 + $0x4b8] sm:$0xff] }
 0x37d   :  { %3883 = vmatpush1.bf16.msra.mxu0 %v7759_v6  ;;  %3761 = vmatprep.subr.bf16.mxu1 %v7766_v20  ;;  %v7805_v6 = vcombine.low %v1856_v54, %v1860_v55  ;;  %v7807_v20 = vcombine.low %v1857_v59, %v1861_v60  ;;  %v7816_v10 = vcombine.high %v1865_v4, %v1869_v11  ;;  %v1908_v54 = vld [vmem:[%s12617_s5 + $0x5f0] sm:$0xff]  ;;  %v1905_v55 = vld [vmem:[%s12617_s5 + $0x5d8] sm:$0xff] }
 0x37e   :  { %3884 = vmatprep.subr.bf16.mxu0 %v7768_v21  ;;  %v7814_v21 = vcombine.high %v1864_v63, %v1868_v2  ;;  %v7847_v60 = vcombine.low %v1897_v46, %v1901_v47 }
 0x380   :  { %3762 = vmatpush1.bf16.msra.mxu1 %v7765_v24  ;;  %v7815_v24 = vcombine.low %v1865_v4, %v1869_v11  ;;  %v1917_v4 = vld [vmem:[%s12617_s5 + $0x638] sm:$0xff] }
 0x381   :  { %3885 = vmatpush1.bf16.msra.mxu0 %v7767_v16  ;;  %3763 = vmatprep.subr.bf16.mxu1 %v7774_v25  ;;  %v7822_v16 = vcombine.high %v1872_v12, %v1876_v13  ;;  %v1924_v12 = vld [vmem:[%s12617_s5 + $0x670] sm:$0xff]  ;;  %v1921_v13 = vld [vmem:[%s12617_s5 + $0x658] sm:$0xff] }
 0x382   :  { %3886 = vmatprep.subr.bf16.mxu0 %v7776_v26  ;;  %v1880_v26 = vld [vmem:[%s12617_s5 + $0x510] sm:$0xff] }
 0x383   :  { %v7829_v48 = vcombine.low %v1880_v26, %v1884_v28 }
 0x384   :  { %3764 = vmatpush1.bf16.msra.mxu1 %v7773_v32 }
 0x385   :  { %3887 = vmatpush1.bf16.msra.mxu0 %v7775_v33  ;;  %3765 = vmatprep.subr.bf16.mxu1 %v7782_v34  ;;  %v7830_v33 = vcombine.high %v1880_v26, %v1884_v28  ;;  %v7832_v34 = vcombine.high %v1881_v29, %v1885_v30  ;;  %v1932_v26 = vld [vmem:[%s12617_s5 + $0x6b0] sm:$0xff]  ;;  %v1929_v28 = vld [vmem:[%s12617_s5 + $0x698] sm:$0xff] }
 0x386   :  { %3888 = vmatprep.subr.bf16.mxu0 %v7784_v36  ;;  %v1888_v36 = vld [vmem:[%s12617_s5 + $0x550] sm:$0xff] }
 0x387   :  { %v7837_v49 = vcombine.low %v1888_v36, %v1892_v38 }
 0x388   :  { %3766 = vmatpush1.bf16.msra.mxu1 %v7781_v41  ;;  %v7831_v41 = vcombine.low %v1881_v29, %v1885_v30  ;;  %v1933_v29 = vld [vmem:[%s12617_s5 + $0x6b8] sm:$0xff] }
 0x389   :  { %3889 = vmatpush1.bf16.msra.mxu0 %v7783_v42  ;;  %3767 = vmatprep.subr.bf16.mxu1 %v7790_v43  ;;  %v7838_v42 = vcombine.high %v1888_v36, %v1892_v38  ;;  %v7840_v43 = vcombine.high %v1889_v7, %v1893_v39  ;;  %v1940_v36 = vld [vmem:[%s12617_s5 + $0x6f0] sm:$0xff]  ;;  %v1937_v38 = vld [vmem:[%s12617_s5 + $0x6d8] sm:$0xff] }
 0x38a   :  { %3890 = vmatprep.subr.bf16.mxu0 %v7792_v44  ;;  %v1896_v44 = vld [vmem:[%s12617_s5 + $0x590] sm:$0xff] }
 0x38b   :  { %v7845_v59 = vcombine.low %v1896_v44, %v1900_v45 }
 0x38c   :  { %3768 = vmatpush1.bf16.msra.mxu1 %v7789_v50  ;;  %v7839_v50 = vcombine.low %v1889_v7, %v1893_v39  ;;  %v1941_v7 = vld [vmem:[%s12617_s5 + $0x6f8] sm:$0xff] }
 0x38d   :  { %3891 = vmatpush1.bf16.msra.mxu0 %v7791_v51  ;;  %3778 = vmatprep.subr.bf16.mxu1 %v7798_v14  ;;  %v7846_v51 = vcombine.high %v1896_v44, %v1900_v45  ;;  %v7848_v14 = vcombine.high %v1897_v46, %v1901_v47  ;;  %v1948_v44 = vld [vmem:[%s12617_s5 + $0x730] sm:$0xff]  ;;  %v1945_v45 = vld [vmem:[%s12617_s5 + $0x718] sm:$0xff] }
 0x38e   :  { %3901 = vmatprep.subr.bf16.mxu0 %v7800_v18  ;;  %v1904_v18 = vld [vmem:[%s12617_s5 + $0x5d0] sm:$0xff]  ;;  %v1949_v46 = vld [vmem:[%s12617_s5 + $0x738] sm:$0xff] }
 0x38f   :  { %3770 = vmatmul.mubr.bf16.vlgmr.msra.gmra.mrb[16].mxu1 %v10505_v57  ;;  %v7853_v11 = vcombine.low %v1904_v18, %v1908_v54 }
 0x390   :  { %3893 = vmatmul.mubr.bf16.vlgmr.msra.gmra.mrb[28].mxu0 %v10505_v57  ;;  %3779 = vmatpush1.bf16.msra.mxu1 %v7797_v52  ;;  %v1873_v57 = vld [vmem:[%s12617_s5 + $0x4d8] sm:$0xff] }
 0x391   :  { %3810 = vmatprep.mubr.bf16.mxu1 %v10525_v0  ;;  %3902 = vmatpush1.bf16.msra.mxu0 %v7799_v61  ;;  %v7824_v25 = vcombine.high %v1873_v57, %v1877_v22  ;;  %v7823_v32 = vcombine.low %v1873_v57, %v1877_v22  ;;  %v1909_v52 = vld [vmem:[%s12617_s5 + $0x5f8] sm:$0xff]  ;;  %v7854_v61 = vcombine.high %v1904_v18, %v1908_v54  ;;  %v1956_v18 = vld [vmem:[%s12617_s5 + $0x770] sm:$0xff] }
 0x392   :  { %3933 = vmatprep.mubr.bf16.mxu0 %v10525_v0  ;;  %3780 = vmatprep.subr.bf16.mxu1 %v7806_v62  ;;  %v7813_v0 = vcombine.low %v1864_v63, %v1868_v2  ;;  %v7856_v62 = vcombine.high %v1905_v55, %v1909_v52  ;;  %v1912_v63 = vld [vmem:[%s12617_s5 + $0x610] sm:$0xff]  ;;  %v1925_v57 = vld [vmem:[%s12617_s5 + $0x678] sm:$0xff] }
 0x393   :  { %3903 = vmatprep.subr.bf16.mxu0 %v7808_v3  ;;  %v1916_v2 = vld [vmem:[%s12617_s5 + $0x630] sm:$0xff]  ;;  %v1913_v3 = vld [vmem:[%s12617_s5 + $0x618] sm:$0xff] }
 0x394   :  { %3781 = vmatpush1.bf16.msra.mxu1 %v7805_v6  ;;  %v7855_v6 = vcombine.low %v1905_v55, %v1909_v52  ;;  %v7861_v22 = vcombine.low %v1912_v63, %v1916_v2  ;;  %v1953_v54 = vld [vmem:[%s12617_s5 + $0x758] sm:$0xff] }
 0x395   :  { %3904 = vmatpush1.bf16.msra.mxu0 %v7807_v20  ;;  %3782 = vmatprep.subr.bf16.mxu1 %v7814_v21  ;;  %v7862_v20 = vcombine.high %v1912_v63, %v1916_v2  ;;  %v7864_v21 = vcombine.high %v1913_v3, %v1917_v4  ;;  %v1957_v55 = vld [vmem:[%s12617_s5 + $0x778] sm:$0xff]  ;;  %v1964_v63 = vld [vmem:[%s12617_s5 + $0x7b0] sm:$0xff] }
 0x396   :  { %3905 = vmatprep.subr.bf16.mxu0 %v7816_v10  ;;  %v1920_v10 = vld [vmem:[%s12617_s5 + $0x650] sm:$0xff]  ;;  %v1961_v2 = vld [vmem:[%s12617_s5 + $0x798] sm:$0xff] }
 0x397   :  { %v7869_v30 = vcombine.low %v1920_v10, %v1924_v12 }
 0x398   :  { %3783 = vmatpush1.bf16.msra.mxu1 %v7813_v0  ;;  %v7863_v0 = vcombine.low %v1913_v3, %v1917_v4  ;;  %v1965_v3 = vld [vmem:[%s12617_s5 + $0x7b8] sm:$0xff] }
 0x399   :  { %3906 = vmatpush1.bf16.msra.mxu0 %v7815_v24  ;;  %3784 = vmatprep.subr.bf16.mxu1 %v7822_v16  ;;  %v7870_v24 = vcombine.high %v1920_v10, %v1924_v12  ;;  %v7872_v16 = vcombine.high %v1921_v13, %v1925_v57  ;;  %v1972_v10 = vld [vmem:[%s12617_s5 + $0x7f0] sm:$0xff]  ;;  %v1969_v12 = vld [vmem:[%s12617_s5 + $0x7d8] sm:$0xff] }
 0x39a   :  { %3907 = vmatprep.subr.bf16.mxu0 %v7824_v25  ;;  %v1928_v25 = vld [vmem:[%s12617_s5 + $0x690] sm:$0xff] }
 0x39b   :  { %v7877_v39 = vcombine.low %v1928_v25, %v1932_v26 }
 0x39c   :  { %3785 = vmatpush1.bf16.msra.mxu1 %v7821_v31  ;;  %v7871_v31 = vcombine.low %v1921_v13, %v1925_v57  ;;  %v1973_v13 = vld [vmem:[%s12617_s5 + $0x7f8] sm:$0xff] }
 0x39d   :  { %3908 = vmatpush1.bf16.msra.mxu0 %v7823_v32  ;;  %3786 = vmatprep.subr.bf16.mxu1 %v7830_v33  ;;  %v7878_v32 = vcombine.high %v1928_v25, %v1932_v26  ;;  %v7880_v33 = vcombine.high %v1929_v28, %v1933_v29  ;;  %v1980_v25 = vld [vmem:[%s12617_s5 + $0x830] sm:$0xff]  ;;  %v1977_v26 = vld [vmem:[%s12617_s5 + $0x818] sm:$0xff] }
 0x39e   :  { %3909 = vmatprep.subr.bf16.mxu0 %v7832_v34  ;;  %v1936_v34 = vld [vmem:[%s12617_s5 + $0x6d0] sm:$0xff] }
 0x39f   :  { %v7885_v47 = vcombine.low %v1936_v34, %v1940_v36 }
 0x3a0   :  { %3787 = vmatpush1.bf16.msra.mxu1 %v7829_v48  ;;  %v7879_v48 = vcombine.low %v1929_v28, %v1933_v29  ;;  %v1981_v28 = vld [vmem:[%s12617_s5 + $0x838] sm:$0xff] }
 0x3a1   :  { %3910 = vmatpush1.bf16.msra.mxu0 %v7831_v41  ;;  %3788 = vmatprep.subr.bf16.mxu1 %v7838_v42  ;;  %v7886_v41 = vcombine.high %v1936_v34, %v1940_v36  ;;  %v7888_v42 = vcombine.high %v1937_v38, %v1941_v7  ;;  %v1988_v34 = vld [vmem:[%s12617_s5 + $0x870] sm:$0xff]  ;;  %v1985_v36 = vld [vmem:[%s12617_s5 + $0x858] sm:$0xff] }
 0x3a2   :  { %3911 = vmatprep.subr.bf16.mxu0 %v7840_v43  ;;  %v1944_v43 = vld [vmem:[%s12617_s5 + $0x710] sm:$0xff] }
 0x3a3   :  { %v7893_v52 = vcombine.low %v1944_v43, %v1948_v44 }
 0x3a4   :  { %3789 = vmatpush1.bf16.msra.mxu1 %v7837_v49  ;;  %v7887_v49 = vcombine.low %v1937_v38, %v1941_v7  ;;  %v1989_v38 = vld [vmem:[%s12617_s5 + $0x878] sm:$0xff] }
 0x3a5   :  { %3912 = vmatpush1.bf16.msra.mxu0 %v7839_v50  ;;  %3790 = vmatprep.subr.bf16.mxu1 %v7846_v51  ;;  %v7894_v50 = vcombine.high %v1944_v43, %v1948_v44  ;;  %v7896_v51 = vcombine.high %v1945_v45, %v1949_v46  ;;  %v1996_v43 = vld [vmem:[%s12617_s5 + $0x8b0] sm:$0xff]  ;;  %v1993_v44 = vld [vmem:[%s12617_s5 + $0x898] sm:$0xff] }
 0x3a6   :  { %3913 = vmatprep.subr.bf16.mxu0 %v7848_v14  ;;  %v1952_v14 = vld [vmem:[%s12617_s5 + $0x750] sm:$0xff] }
 0x3a7   :  { %v7901_v4 = vcombine.low %v1952_v14, %v1956_v18 }
 0x3a8   :  { %3791 = vmatpush1.bf16.msra.mxu1 %v7845_v59  ;;  %v7895_v59 = vcombine.low %v1945_v45, %v1949_v46  ;;  %v1997_v45 = vld [vmem:[%s12617_s5 + $0x8b8] sm:$0xff] }
 0x3a9   :  { %3914 = vmatpush1.bf16.msra.mxu0 %v7847_v60  ;;  %3792 = vmatprep.subr.bf16.mxu1 %v7854_v61  ;;  %v7902_v60 = vcombine.high %v1952_v14, %v1956_v18  ;;  %v7904_v61 = vcombine.high %v1953_v54, %v1957_v55  ;;  %v2004_v14 = vld [vmem:[%s12617_s5 + $0x8f0] sm:$0xff]  ;;  %v2005_v18 = vld [vmem:[%s12617_s5 + $0x8f8] sm:$0xff] }
 0x3aa   :  { %3915 = vmatprep.subr.bf16.mxu0 %v7856_v62  ;;  %v1960_v62 = vld [vmem:[%s12617_s5 + $0x790] sm:$0xff] }
 0x3ab   :  { %v7909_v57 = vcombine.low %v1960_v62, %v1964_v63 }
 0x3ac   :  { %3793 = vmatpush1.bf16.msra.mxu1 %v7853_v11  ;;  %v7903_v11 = vcombine.low %v1953_v54, %v1957_v55  ;;  %v7943_v55 = vcombine.low %v1993_v44, %v1997_v45 }
 0x3ad   :  { %3916 = vmatpush1.bf16.msra.mxu0 %v7855_v6  ;;  %3794 = vmatprep.subr.bf16.mxu1 %v7862_v20  ;;  %v7910_v6 = vcombine.high %v1960_v62, %v1964_v63  ;;  %v7912_v20 = vcombine.high %v1961_v2, %v1965_v3  ;;  %v8884_v62 = vld [vmem:[%s12619_s7 + $0x4] ss:$20 sps:$4 sm:$0xff]  }
 0x3ae   :  { %3917 = vmatprep.subr.bf16.mxu0 %v7864_v21  ;;  %v1968_v21 = vld [vmem:[%s12617_s5 + $0x7d0] sm:$0xff]  ;;  %v8887_v63 = vld [vmem:[%s12619_s7 + $0x284] ss:$20 sps:$4 sm:$0xff]  }
 0x3af   :  { %v7917_v29 = vcombine.low %v1968_v21, %v1972_v10 }
 0x3b0   :  { %3795 = vmatpush1.bf16.msra.mxu1 %v7861_v22  ;;  %v7911_v22 = vcombine.low %v1961_v2, %v1965_v3  ;;  %v8882_v2 = vld [vmem:[%s12619_s7] ss:$20 sps:$4 sm:$0xff]  }
 0x3b1   :  { %3918 = vmatpush1.bf16.msra.mxu0 %v7863_v0  ;;  %3796 = vmatprep.subr.bf16.mxu1 %v7870_v24  ;;  %v7918_v0 = vcombine.high %v1968_v21, %v1972_v10  ;;  %v7920_v24 = vcombine.high %v1969_v12, %v1973_v13  ;;  %v8885_v3 = vld [vmem:[%s12619_s7 + $0x280] ss:$20 sps:$4 sm:$0xff]   ;;  %v8894_v10 = vld [vmem:[%s12619_s7 + $0x50] ss:$20 sps:$4 sm:$0xff]  }
 0x3b2   :  { %3919 = vmatprep.subr.bf16.mxu0 %v7872_v16  ;;  %v1976_v16 = vld [vmem:[%s12617_s5 + $0x810] sm:$0xff] }
 0x3b3   :  { %v7925_v7 = vcombine.low %v1976_v16, %v1980_v25  ;;  %v8896_v21 = vld [vmem:[%s12619_s7 + $0x54] ss:$20 sps:$4 sm:$0xff]  }
 0x3b4   :  { %3797 = vmatpush1.bf16.msra.mxu1 %v7869_v30  ;;  %v7919_v30 = vcombine.low %v1969_v12, %v1973_v13  ;;  %v8897_v12 = vld [vmem:[%s12619_s7 + $0x2d0] ss:$20 sps:$4 sm:$0xff]  }
 0x3b5   :  { %3920 = vmatpush1.bf16.msra.mxu0 %v7871_v31  ;;  %3798 = vmatprep.subr.bf16.mxu1 %v7878_v32  ;;  %v7926_v31 = vcombine.high %v1976_v16, %v1980_v25  ;;  %v7928_v32 = vcombine.high %v1977_v26, %v1981_v28  ;;  %v8902_v13 = vld [vmem:[%s12619_s7 + $0x7c] ss:$20 sps:$4 sm:$0xff]   ;;  %v8911_v16 = vld [vmem:[%s12619_s7 + $0x324] ss:$20 sps:$4 sm:$0xff]   ;;  %v8906_v25 = vld [vmem:[%s12619_s7 + $0xa0] ss:$20 sps:$4 sm:$0xff]  }
 0x3b6   :  { %3921 = vmatprep.subr.bf16.mxu0 %v7880_v33  ;;  %v1984_v33 = vld [vmem:[%s12617_s5 + $0x850] sm:$0xff] }
 0x3b7   :  { %v7933_v46 = vcombine.low %v1984_v33, %v1988_v34 }
 0x3b8   :  { %3799 = vmatpush1.bf16.msra.mxu1 %v7877_v39  ;;  %v7927_v39 = vcombine.low %v1977_v26, %v1981_v28  ;;  %v8909_v26 = vld [vmem:[%s12619_s7 + $0x320] ss:$20 sps:$4 sm:$0xff]  }
 0x3b9   :  { %3922 = vmatpush1.bf16.msra.mxu0 %v7879_v48  ;;  %3800 = vmatprep.subr.bf16.mxu1 %v7886_v41  ;;  %v7934_v48 = vcombine.high %v1984_v33, %v1988_v34  ;;  %v7936_v41 = vcombine.high %v1985_v36, %v1989_v38  ;;  %v8914_v28 = vld [vmem:[%s12619_s7 + $0xcc] ss:$20 sps:$4 sm:$0xff]   ;;  %v8923_v33 = vld [vmem:[%s12619_s7 + $0x374] ss:$20 sps:$4 sm:$0xff]   ;;  %v8918_v34 = vld [vmem:[%s12619_s7 + $0xf0] ss:$20 sps:$4 sm:$0xff]  }
 0x3ba   :  { %3923 = vmatprep.subr.bf16.mxu0 %v7888_v42  ;;  %v1992_v42 = vld [vmem:[%s12617_s5 + $0x890] sm:$0xff] }
 0x3bb   :  { %v7941_v54 = vcombine.low %v1992_v42, %v1996_v43 }
 0x3bc   :  { %3801 = vmatpush1.bf16.msra.mxu1 %v7885_v47  ;;  %v7935_v47 = vcombine.low %v1985_v36, %v1989_v38  ;;  %v8921_v36 = vld [vmem:[%s12619_s7 + $0x370] ss:$20 sps:$4 sm:$0xff]  }
 0x3bd   :  { %3924 = vmatpush1.bf16.msra.mxu0 %v7887_v49  ;;  %3802 = vmatprep.subr.bf16.mxu1 %v7894_v50  ;;  %v7942_v49 = vcombine.high %v1992_v42, %v1996_v43  ;;  %v7944_v50 = vcombine.high %v1993_v44, %v1997_v45  ;;  %v8926_v38 = vld [vmem:[%s12619_s7 + $0x11c] ss:$20 sps:$4 sm:$0xff]   ;;  %v8935_v42 = vld [vmem:[%s12619_s7 + $0x3c4] ss:$20 sps:$4 sm:$0xff]   ;;  %v8930_v43 = vld [vmem:[%s12619_s7 + $0x140] ss:$20 sps:$4 sm:$0xff]  }
 0x3be   :  { %3925 = vmatprep.subr.bf16.mxu0 %v7896_v51  ;;  %v2000_v51 = vld [vmem:[%s12617_s5 + $0x8d0] sm:$0xff]  ;;  %v8938_v45 = vld [vmem:[%s12619_s7 + $0x16c] ss:$20 sps:$4 sm:$0xff]  }
 0x3bf   :  { %v8933_v44 = vld [vmem:[%s12619_s7 + $0x3c0] ss:$20 sps:$4 sm:$0xff]  }
 0x3c0   :  { %3803 = vmatpush1.bf16.msra.mxu1 %v7893_v52  ;;  %v7950_v52 = vcombine.high %v2000_v51, %v2004_v14 }
 0x3c1   :  { %3926 = vmatpush1.bf16.msra.mxu0 %v7895_v59  ;;  %3804 = vmatprep.subr.bf16.mxu1 %v7902_v60  ;;  %v7949_v60 = vcombine.low %v2000_v51, %v2004_v14  ;;  %v8947_v51 = vld [vmem:[%s12619_s7 + $0x414] ss:$20 sps:$4 sm:$0xff]   ;;  %v8942_v14 = vld [vmem:[%s12619_s7 + $0x190] ss:$20 sps:$4 sm:$0xff]  }
 0x3c2   :  { %3927 = vmatprep.subr.bf16.mxu0 %v7904_v61 }
 0x3c4   :  { %3805 = vmatpush1.bf16.msra.mxu1 %v7901_v4  ;;  %v8890_v4 = vld [vmem:[%s12619_s7 + $0x2c] ss:$20 sps:$4 sm:$0xff]  }
 0x3c5   :  { %3928 = vmatpush1.bf16.msra.mxu0 %v7903_v11  ;;  %3806 = vmatprep.subr.bf16.mxu1 %v7910_v6  ;;  %v8893_v11 = vld [vmem:[%s12619_s7 + $0x2ac] ss:$20 sps:$4 sm:$0xff]   ;;  %v8888_v6 = vld [vmem:[%s12619_s7 + $0x28] ss:$20 sps:$4 sm:$0xff]  }
 0x3c6   :  { %3929 = vmatprep.subr.bf16.mxu0 %v7912_v20  ;;  %v8891_v20 = vld [vmem:[%s12619_s7 + $0x2a8] ss:$20 sps:$4 sm:$0xff]  }
 0x3c8   :  { %3807 = vmatpush1.bf16.msra.mxu1 %v7909_v57  ;;  %v8905_v57 = vld [vmem:[%s12619_s7 + $0x2fc] ss:$20 sps:$4 sm:$0xff]  }
 0x3c9   :  { %3930 = vmatpush1.bf16.msra.mxu0 %v7911_v22  ;;  %3808 = vmatprep.subr.bf16.mxu1 %v7918_v0  ;;  %v8900_v22 = vld [vmem:[%s12619_s7 + $0x78] ss:$20 sps:$4 sm:$0xff]  }
 0x3ca   :  { %3931 = vmatprep.subr.bf16.mxu0 %v7920_v24  ;;  %v8903_v0 = vld [vmem:[%s12619_s7 + $0x2f8] ss:$20 sps:$4 sm:$0xff]  }
 0x3cb   :  { %v8908_v24 = vld [vmem:[%s12619_s7 + $0xa4] ss:$20 sps:$4 sm:$0xff]  }
 0x3cc   :  { %3809 = vmatpush1.bf16.msra.mxu1 %v7917_v29  ;;  %v8917_v29 = vld [vmem:[%s12619_s7 + $0x34c] ss:$20 sps:$4 sm:$0xff]  }
 0x3cd   :  { %3932 = vmatpush1.bf16.msra.mxu0 %v7919_v30  ;;  %3819 = vmatprep.subr.bf16.mxu1 %v7926_v31  ;;  %v8912_v30 = vld [vmem:[%s12619_s7 + $0xc8] ss:$20 sps:$4 sm:$0xff]  }
 0x3ce   :  { %3942 = vmatprep.subr.bf16.mxu0 %v7928_v32  ;;  %v8915_v31 = vld [vmem:[%s12619_s7 + $0x348] ss:$20 sps:$4 sm:$0xff]  }
 0x3cf   :  { %3811 = vmatmul.mubr.bf16.vlgmr.msra.gmra.mrb[16].mxu1 %v10711_v40  ;;  %v8920_v32 = vld [vmem:[%s12619_s7 + $0xf4] ss:$20 sps:$4 sm:$0xff]  }
 0x3d0   :  { %3934 = vmatmul.mubr.bf16.vlgmr.msra.gmra.mrb[28].mxu0 %v10711_v40  ;;  %3820 = vmatpush1.bf16.msra.mxu1 %v7925_v7  ;;  %v2001_v40 = vld [vmem:[%s12617_s5 + $0x8d8] sm:$0xff] }
 0x3d1   :  { %3943 = vmatpush1.bf16.msra.mxu0 %v7927_v39  ;;  %3821 = vmatprep.subr.bf16.mxu1 %v7934_v48  ;;  %v7952_v59 = vcombine.high %v2001_v40, %v2005_v18  ;;  %v7951_v61 = vcombine.low %v2001_v40, %v2005_v18  ;;  %v8929_v7 = vld [vmem:[%s12619_s7 + $0x39c] ss:$20 sps:$4 sm:$0xff]   ;;  %v8924_v39 = vld [vmem:[%s12619_s7 + $0x118] ss:$20 sps:$4 sm:$0xff]  }
 0x3d2   :  { %3944 = vmatprep.subr.bf16.mxu0 %v7936_v41  ;;  %3851 = vmatprep.mubr.bf16.mxu1 %v9495_v15  ;;  %v8927_v48 = vld [vmem:[%s12619_s7 + $0x398] ss:$20 sps:$4 sm:$0xff]   ;;  %v8945_v40 = vld [vmem:[%s12619_s7 + $0x410] ss:$20 sps:$4 sm:$0xff]  }
 0x3d3   :  { %3974 = vmatprep.mubr.bf16.mxu0 %v9495_v15  ;;  %v8932_v41 = vld [vmem:[%s12619_s7 + $0x144] ss:$20 sps:$4 sm:$0xff]   ;;  %v8950_v18 = vld [vmem:[%s12619_s7 + $0x1bc] ss:$20 sps:$4 sm:$0xff]  }
 0x3d4   :  { %3822 = vmatpush1.bf16.msra.mxu1 %v7933_v46  ;;  %v8941_v46 = vld [vmem:[%s12619_s7 + $0x3ec] ss:$20 sps:$4 sm:$0xff]  }
 0x3d5   :  { %3945 = vmatpush1.bf16.msra.mxu0 %v7935_v47  ;;  %3823 = vmatprep.subr.bf16.mxu1 %v7942_v49  ;;  %v8936_v47 = vld [vmem:[%s12619_s7 + $0x168] ss:$20 sps:$4 sm:$0xff]  }
 0x3d6   :  { %3946 = vmatprep.subr.bf16.mxu0 %v7944_v50  ;;  %v8939_v49 = vld [vmem:[%s12619_s7 + $0x3e8] ss:$20 sps:$4 sm:$0xff]  }
 0x3d7   :  { %v8944_v50 = vld [vmem:[%s12619_s7 + $0x194] ss:$20 sps:$4 sm:$0xff]  }
 0x3d8   :  { %3824 = vmatpush1.bf16.msra.mxu1 %v7941_v54  ;;  %v8953_v54 = vld [vmem:[%s12619_s7 + $0x43c] ss:$20 sps:$4 sm:$0xff]  }
 0x3d9   :  { %3947 = vmatpush1.bf16.msra.mxu0 %v7943_v55  ;;  %3825 = vmatprep.subr.bf16.mxu1 %v7950_v52  ;;  %v8948_v55 = vld [vmem:[%s12619_s7 + $0x1b8] ss:$20 sps:$4 sm:$0xff]  }
 0x3da   :  { %3948 = vmatprep.subr.bf16.mxu0 %v7952_v59  ;;  %v8951_v52 = vld [vmem:[%s12619_s7 + $0x438] ss:$20 sps:$4 sm:$0xff]  }
 0x3db   :  { %v8956_v59 = vld [vmem:[%s12619_s7 + $0x1e4] ss:$20 sps:$4 sm:$0xff]  }
 0x3dc   :  { %3826 = vmatpush1.bf16.msra.mxu1 %v7949_v60  ;;  %v8959_v60 = vld [vmem:[%s12619_s7 + $0x464] ss:$20 sps:$4 sm:$0xff]  }
 0x3dd   :  { %3949 = vmatpush1.bf16.msra.mxu0 %v7951_v61  ;;  %6074 = vmatprep.subr.bf16.mxu1 %v8884_v62  ;;  %v8954_v61 = vld [vmem:[%s12619_s7 + $0x1e0] ss:$20 sps:$4 sm:$0xff]  }
 0x3de   :  { %6115 = vmatprep.subr.bf16.mxu0 %v8887_v63  ;;  %v8957_v62 = vld [vmem:[%s12619_s7 + $0x460] ss:$20 sps:$4 sm:$0xff]  }
 0x3df   :  { %7955 = vmatmul.mubr.msk.bf16.vlgmr.msra.gmra.mrb[16].mxu1 %vm1241_vm0, %v10767_v23  ;;  %v8962_v63 = vld [vmem:[%s12619_s7 + $0x20c] ss:$20 sps:$4 sm:$0xff]  }
 0x3e0   :  { %7956 = vmatmul.mubr.msk.bf16.vlgmr.msra.gmra.mrb[28].mxu0 %vm1241_vm0, %v10767_v23  ;;  %6075 = vmatpush1.bf16.msra.mxu1 %v8882_v2  ;;  %v8899_v23 = vld [vmem:[%s12619_s7 + $0x2d4] ss:$20 sps:$4 sm:$0xff]   ;;  %v8965_v2 = vld [vmem:[%s12619_s7 + $0x48c] ss:$20 sps:$4 sm:$0xff]  }
 0x3e1   :  { %6116 = vmatpush1.bf16.msra.mxu0 %v8885_v3  ;;  %6076 = vmatprep.subr.bf16.mxu1 %v8890_v4  ;;  %v8960_v3 = vld [vmem:[%s12619_s7 + $0x208] ss:$20 sps:$4 sm:$0xff]  }
 0x3e2   :  { %6117 = vmatprep.subr.bf16.mxu0 %v8893_v11  ;;  %v8963_v4 = vld [vmem:[%s12619_s7 + $0x488] ss:$20 sps:$4 sm:$0xff]  }
 0x3e3   :  { %v8968_v11 = vld [vmem:[%s12619_s7 + $0x234] ss:$20 sps:$4 sm:$0xff]  }
 0x3e4   :  { %6077 = vmatpush1.bf16.msra.mxu1 %v8888_v6  ;;  %v8971_v6 = vld [vmem:[%s12619_s7 + $0x4b4] ss:$20 sps:$4 sm:$0xff]  }
 0x3e5   :  { %6118 = vmatpush1.bf16.msra.mxu0 %v8891_v20  ;;  %6078 = vmatprep.subr.bf16.mxu1 %v8896_v21  ;;  %v8966_v20 = vld [vmem:[%s12619_s7 + $0x230] ss:$20 sps:$4 sm:$0xff]  }
 0x3e6   :  { %6119 = vmatprep.subr.bf16.mxu0 %v8899_v23  ;;  %v8969_v21 = vld [vmem:[%s12619_s7 + $0x4b0] ss:$20 sps:$4 sm:$0xff]  }
 0x3e7   :  { %v8974_v23 = vld [vmem:[%s12619_s7 + $0x25c] ss:$20 sps:$4 sm:$0xff]  }
 0x3e8   :  { %6079 = vmatpush1.bf16.msra.mxu1 %v8894_v10  ;;  %v8977_v10 = vld [vmem:[%s12619_s7 + $0x4dc] ss:$20 sps:$4 sm:$0xff]  }
 0x3e9   :  { %6120 = vmatpush1.bf16.msra.mxu0 %v8897_v12  ;;  %6080 = vmatprep.subr.bf16.mxu1 %v8902_v13  ;;  %v8972_v12 = vld [vmem:[%s12619_s7 + $0x258] ss:$20 sps:$4 sm:$0xff]  }
 0x3ea   :  { %6121 = vmatprep.subr.bf16.mxu0 %v8905_v57  ;;  %v8975_v13 = vld [vmem:[%s12619_s7 + $0x4d8] ss:$20 sps:$4 sm:$0xff]  }
 0x3eb   :  { %v8980_v57 = vld [vmem:[%s12619_s7 + $0x504] ss:$20 sps:$4 sm:$0xff]  }
 0x3ec   :  { %6081 = vmatpush1.bf16.msra.mxu1 %v8900_v22  ;;  %v8983_v22 = vld [vmem:[%s12619_s7 + $0x784] ss:$20 sps:$4 sm:$0xff]  }
 0x3ed   :  { %6122 = vmatpush1.bf16.msra.mxu0 %v8903_v0  ;;  %6082 = vmatprep.subr.bf16.mxu1 %v8908_v24  ;;  %v11396_v0 = vld [vmem:[%s12618_s6] sm:$0xff] }
 0x3ee   :  { %6123 = vmatprep.subr.bf16.mxu0 %v8911_v16  ;;  %v2011_v24 = vrot.slane %v11396_v0, %v10176_v8  ;;  %v2019_v16 = vrot.slane %v11396_v0, %v10184_v35 }
 0x3f0   :  { %6083 = vmatpush1.bf16.msra.mxu1 %v8906_v25  ;;  %v2015_v25 = vrot.slane %v11396_v0, %v10179_v9 }
 0x3f1   :  { %6124 = vmatpush1.bf16.msra.mxu0 %v8909_v26  ;;  %6084 = vmatprep.subr.bf16.mxu1 %v8914_v28  ;;  %v2023_v26 = vrot.slane %v11396_v0, %v10187_v37 }
 0x3f2   :  { %6125 = vmatprep.subr.bf16.mxu0 %v8917_v29 }
 0x3f4   :  { %6085 = vmatpush1.bf16.msra.mxu1 %v8912_v30 }
 0x3f5   :  { %6126 = vmatpush1.bf16.msra.mxu0 %v8915_v31  ;;  %6086 = vmatprep.subr.bf16.mxu1 %v8920_v32 }
 0x3f6   :  { %6127 = vmatprep.subr.bf16.mxu0 %v8923_v33 }
 0x3f8   :  { %6087 = vmatpush1.bf16.msra.mxu1 %v8918_v34 }
 0x3f9   :  { %6128 = vmatpush1.bf16.msra.mxu0 %v8921_v36  ;;  %6088 = vmatprep.subr.bf16.mxu1 %v8926_v38 }
 0x3fa   :  { %6129 = vmatprep.subr.bf16.mxu0 %v8929_v7 }
 0x3fc   :  { %6089 = vmatpush1.bf16.msra.mxu1 %v8924_v39 }
 0x3fd   :  { %6130 = vmatpush1.bf16.msra.mxu0 %v8927_v48  ;;  %6090 = vmatprep.subr.bf16.mxu1 %v8932_v41 }
 0x3fe   :  { %6131 = vmatprep.subr.bf16.mxu0 %v8935_v42 }
 0x400   :  { %6091 = vmatpush1.bf16.msra.mxu1 %v8930_v43 }
 0x401   :  { %6132 = vmatpush1.bf16.msra.mxu0 %v8933_v44  ;;  %6092 = vmatprep.subr.bf16.mxu1 %v8938_v45 }
 0x402   :  { %6133 = vmatprep.subr.bf16.mxu0 %v8941_v46 }
 0x404   :  { %6093 = vmatpush1.bf16.msra.mxu1 %v8936_v47  ;;  %v8978_v47 = vld [vmem:[%s12619_s7 + $0x500] ss:$20 sps:$4 sm:$0xff]  }
 0x405   :  { %6134 = vmatpush1.bf16.msra.mxu0 %v8939_v49  ;;  %6094 = vmatprep.subr.bf16.mxu1 %v8944_v50  ;;  %v8981_v49 = vld [vmem:[%s12619_s7 + $0x780] ss:$20 sps:$4 sm:$0xff]  }
 0x406   :  { %6135 = vmatprep.subr.bf16.mxu0 %v8947_v51 }
 0x408   :  { %6095 = vmatpush1.bf16.msra.mxu1 %v8942_v14  ;;  %v8986_v14 = vld [vmem:[%s12619_s7 + $0x52c] ss:$20 sps:$4 sm:$0xff]  }
 0x409   :  { %6136 = vmatpush1.bf16.msra.mxu0 %v8945_v40  ;;  %6096 = vmatprep.subr.bf16.mxu1 %v8950_v18  ;;  %v8989_v40 = vld [vmem:[%s12619_s7 + $0x7ac] ss:$20 sps:$4 sm:$0xff]   ;;  %v8984_v18 = vld [vmem:[%s12619_s7 + $0x528] ss:$20 sps:$4 sm:$0xff]  }
 0x40a   :  { %6137 = vmatprep.subr.bf16.mxu0 %v8953_v54  ;;  %v8987_v54 = vld [vmem:[%s12619_s7 + $0x7a8] ss:$20 sps:$4 sm:$0xff]  }
 0x40c   :  { %6097 = vmatpush1.bf16.msra.mxu1 %v8948_v55  ;;  %v8992_v55 = vld [vmem:[%s12619_s7 + $0x554] ss:$20 sps:$4 sm:$0xff]  }
 0x40d   :  { %6138 = vmatpush1.bf16.msra.mxu0 %v8951_v52  ;;  %6098 = vmatprep.subr.bf16.mxu1 %v8956_v59  ;;  %v8995_v52 = vld [vmem:[%s12619_s7 + $0x7d4] ss:$20 sps:$4 sm:$0xff]   ;;  %v8990_v59 = vld [vmem:[%s12619_s7 + $0x550] ss:$20 sps:$4 sm:$0xff]  }
 0x40e   :  { %6139 = vmatprep.subr.bf16.mxu0 %v8959_v60  ;;  %v8993_v60 = vld [vmem:[%s12619_s7 + $0x7d0] ss:$20 sps:$4 sm:$0xff]  }
 0x410   :  { %6099 = vmatpush1.bf16.msra.mxu1 %v8954_v61  ;;  %v8998_v61 = vld [vmem:[%s12619_s7 + $0x57c] ss:$20 sps:$4 sm:$0xff]  }
 0x411   :  { %6140 = vmatpush1.bf16.msra.mxu0 %v8957_v62  ;;  %6100 = vmatprep.subr.bf16.mxu1 %v8962_v63  ;;  %v9001_v62 = vld [vmem:[%s12619_s7 + $0x7fc] ss:$20 sps:$4 sm:$0xff]   ;;  %v8996_v63 = vld [vmem:[%s12619_s7 + $0x578] ss:$20 sps:$4 sm:$0xff]  }
 0x412   :  { %6141 = vmatprep.subr.bf16.mxu0 %v8965_v2  ;;  %v8999_v2 = vld [vmem:[%s12619_s7 + $0x7f8] ss:$20 sps:$4 sm:$0xff]  }
 0x414   :  { %6101 = vmatpush1.bf16.msra.mxu1 %v8960_v3  ;;  %v9004_v3 = vld [vmem:[%s12619_s7 + $0x5a4] ss:$20 sps:$4 sm:$0xff]  }
 0x415   :  { %6142 = vmatpush1.bf16.msra.mxu0 %v8963_v4  ;;  %6102 = vmatprep.subr.bf16.mxu1 %v8968_v11  ;;  %v9007_v4 = vld [vmem:[%s12619_s7 + $0x824] ss:$20 sps:$4 sm:$0xff]   ;;  %v9002_v11 = vld [vmem:[%s12619_s7 + $0x5a0] ss:$20 sps:$4 sm:$0xff]  }
 0x416   :  { %6143 = vmatprep.subr.bf16.mxu0 %v8971_v6  ;;  %v9005_v6 = vld [vmem:[%s12619_s7 + $0x820] ss:$20 sps:$4 sm:$0xff]  }
 0x418   :  { %6103 = vmatpush1.bf16.msra.mxu1 %v8966_v20  ;;  %v9010_v20 = vld [vmem:[%s12619_s7 + $0x5cc] ss:$20 sps:$4 sm:$0xff]  }
 0x419   :  { %6144 = vmatpush1.bf16.msra.mxu0 %v8969_v21  ;;  %6104 = vmatprep.subr.bf16.mxu1 %v8974_v23  ;;  %v9013_v21 = vld [vmem:[%s12619_s7 + $0x84c] ss:$20 sps:$4 sm:$0xff]   ;;  %v9008_v23 = vld [vmem:[%s12619_s7 + $0x5c8] ss:$20 sps:$4 sm:$0xff]  }
 0x41a   :  { %6145 = vmatprep.subr.bf16.mxu0 %v8977_v10  ;;  %v9011_v10 = vld [vmem:[%s12619_s7 + $0x848] ss:$20 sps:$4 sm:$0xff]  }
 0x41c   :  { %6105 = vmatpush1.bf16.msra.mxu1 %v8972_v12  ;;  %v9016_v12 = vld [vmem:[%s12619_s7 + $0x5f4] ss:$20 sps:$4 sm:$0xff]  }
 0x41d   :  { %6146 = vmatpush1.bf16.msra.mxu0 %v8975_v13  ;;  %6156 = vmatprep.subr.bf16.mxu1 %v8980_v57  ;;  %v9019_v13 = vld [vmem:[%s12619_s7 + $0x874] ss:$20 sps:$4 sm:$0xff]   ;;  %v9014_v57 = vld [vmem:[%s12619_s7 + $0x5f0] ss:$20 sps:$4 sm:$0xff]  }
 0x41e   :  { %6197 = vmatprep.subr.bf16.mxu0 %v8983_v22  ;;  %v9017_v22 = vld [vmem:[%s12619_s7 + $0x870] ss:$20 sps:$4 sm:$0xff]  }
 0x422   :  { %v3607_v28 = vpop.f32.mrb[12].mxu1  ;;  %v3730_v29 = vpop.f32.mrb[24].mxu0 }
 0x423   :  { %v8576_v30 = vadd.f32 %v3607_v28, %v2011_v24  ;;  %v8578_v31 = vadd.f32 %v3730_v29, %v2019_v16  ;;  %v3609_v32 = vpop.f32.mrb[13].mxu1  ;;  %v3732_v33 = vpop.f32.mrb[25].mxu0  ;;  %v9022_v24 = vld [vmem:[%s12619_s7 + $0x61c] ss:$20 sps:$4 sm:$0xff]   ;;  %v9028_v28 = vld [vmem:[%s12619_s7 + $0x644] ss:$20 sps:$4 sm:$0xff]  }
 0x424   :  { %v8577_v34 = vadd.f32 %v3609_v32, %v2015_v25  ;;  %v8579_v36 = vadd.f32 %v3732_v33, %v2023_v26  ;;  %v3611_v38 = vpop.f32.mrb[14].mxu1  ;;  %v3734_v7 = vpop.f32.mrb[26].mxu0  ;;  %v9025_v16 = vld [vmem:[%s12619_s7 + $0x89c] ss:$20 sps:$4 sm:$0xff]   ;;  %v9020_v25 = vld [vmem:[%s12619_s7 + $0x618] ss:$20 sps:$4 sm:$0xff]  }
 0x425   :  { %v3983_v39 = vpack.c.bf16 %v8576_v30, %v8576_v30  ;;  %v3985_v48 = vpack.c.bf16 %v8578_v31, %v8578_v31  ;;  %v3612_v41 = vpop.f32.mrb[15].mxu1  ;;  %v3735_v42 = vpop.f32.mrb[27].mxu0  ;;  %v9023_v26 = vld [vmem:[%s12619_s7 + $0x898] ss:$20 sps:$4 sm:$0xff]   ;;  %v9026_v30 = vld [vmem:[%s12619_s7 + $0x640] ss:$20 sps:$4 sm:$0xff]  }
 0x426   :  { %v3984_v43 = vpack.c.bf16 %v8577_v34, %v8577_v34  ;;  %v3986_v44 = vpack.c.bf16 %v8579_v36, %v8579_v36  ;;  %v9031_v29 = vld [vmem:[%s12619_s7 + $0x8c4] ss:$20 sps:$4 sm:$0xff]   ;;  %v9029_v31 = vld [vmem:[%s12619_s7 + $0x8c0] ss:$20 sps:$4 sm:$0xff]   ;;  %v9032_v34 = vld [vmem:[%s12619_s7 + $0x668] ss:$20 sps:$4 sm:$0xff]  }
 0x427   :  { %v11419_v50 = vmax.bf16 %v9495_v15, %v3983_v39  ;;  %v11422_v51 = vmax.bf16 %v9495_v15, %v3985_v48  ;;  %v9034_v32 = vld [vmem:[%s12619_s7 + $0x66c] ss:$20 sps:$4 sm:$0xff]   ;;  %v9035_v36 = vld [vmem:[%s12619_s7 + $0x8e8] ss:$20 sps:$4 sm:$0xff]   ;;  %v9038_v39 = vld [vmem:[%s12619_s7 + $0x690] ss:$20 sps:$4 sm:$0xff]  }
 0x428   :  { %v11407_v45 = vmax.bf16 %v9495_v15, %v3984_v43  ;;  %v11410_v46 = vmax.bf16 %v9495_v15, %v3986_v44  ;;  %v9037_v33 = vld [vmem:[%s12619_s7 + $0x8ec] ss:$20 sps:$4 sm:$0xff]   ;;  %v9040_v38 = vld [vmem:[%s12619_s7 + $0x694] ss:$20 sps:$4 sm:$0xff]   ;;  %v9041_v48 = vld [vmem:[%s12619_s7 + $0x910] ss:$20 sps:$4 sm:$0xff]  }
 0x429   :  { %v9043_v7 = vld [vmem:[%s12619_s7 + $0x914] ss:$20 sps:$4 sm:$0xff]   ;;  %v9046_v41 = vld [vmem:[%s12619_s7 + $0x6bc] ss:$20 sps:$4 sm:$0xff]   ;;  %v9044_v43 = vld [vmem:[%s12619_s7 + $0x6b8] ss:$20 sps:$4 sm:$0xff]  }
 0x42a   :  { %6106 = vmatprep.mubr.bf16.mxu1 %v11407_v45  ;;  %6147 = vmatprep.mubr.bf16.mxu0 %v11410_v46  ;;  %v9049_v42 = vld [vmem:[%s12619_s7 + $0x93c] ss:$20 sps:$4 sm:$0xff]   ;;  %v9047_v44 = vld [vmem:[%s12619_s7 + $0x938] ss:$20 sps:$4 sm:$0xff]  }
 0x42b   :  { %6107 = vmatmul.mubr.bf16.vlgmr.msra.gmra.mrb[20].mxu1 %v11419_v50  ;;  %6148 = vmatmul.mubr.bf16.vlgmr.msra.gmra.mrb[32].mxu0 %v11422_v51 }
 0x42c   :  { %6157 = vmatpush1.bf16.msra.mxu1 %v8978_v47  ;;  %6198 = vmatpush1.bf16.msra.mxu0 %v8981_v49  ;;  %v9052_v47 = vld [vmem:[%s12619_s7 + $0x6e4] ss:$20 sps:$4 sm:$0xff]  }
 0x42d   :  { %6158 = vmatprep.subr.bf16.mxu1 %v8986_v14  ;;  %6199 = vmatprep.subr.bf16.mxu0 %v8989_v40  ;;  %v9055_v49 = vld [vmem:[%s12619_s7 + $0x964] ss:$20 sps:$4 sm:$0xff]   ;;  %v9050_v14 = vld [vmem:[%s12619_s7 + $0x6e0] ss:$20 sps:$4 sm:$0xff]  }
 0x42e   :  { %v9053_v40 = vld [vmem:[%s12619_s7 + $0x960] ss:$20 sps:$4 sm:$0xff]  }
 0x430   :  { %6159 = vmatpush1.bf16.msra.mxu1 %v8984_v18  ;;  %6200 = vmatpush1.bf16.msra.mxu0 %v8987_v54  ;;  %v9058_v18 = vld [vmem:[%s12619_s7 + $0x70c] ss:$20 sps:$4 sm:$0xff]  }
 0x431   :  { %6160 = vmatprep.subr.bf16.mxu1 %v8992_v55  ;;  %6201 = vmatprep.subr.bf16.mxu0 %v8995_v52  ;;  %v9061_v54 = vld [vmem:[%s12619_s7 + $0x98c] ss:$20 sps:$4 sm:$0xff]   ;;  %v9056_v55 = vld [vmem:[%s12619_s7 + $0x708] ss:$20 sps:$4 sm:$0xff]  }
 0x432   :  { %v9059_v52 = vld [vmem:[%s12619_s7 + $0x988] ss:$20 sps:$4 sm:$0xff]  }
 0x434   :  { %6161 = vmatpush1.bf16.msra.mxu1 %v8990_v59  ;;  %6202 = vmatpush1.bf16.msra.mxu0 %v8993_v60  ;;  %v9064_v59 = vld [vmem:[%s12619_s7 + $0x734] ss:$20 sps:$4 sm:$0xff]  }
 0x435   :  { %6162 = vmatprep.subr.bf16.mxu1 %v8998_v61  ;;  %6203 = vmatprep.subr.bf16.mxu0 %v9001_v62  ;;  %v9067_v60 = vld [vmem:[%s12619_s7 + $0x9b4] ss:$20 sps:$4 sm:$0xff]   ;;  %v9062_v61 = vld [vmem:[%s12619_s7 + $0x730] ss:$20 sps:$4 sm:$0xff]  }
 0x436   :  { %v9065_v62 = vld [vmem:[%s12619_s7 + $0x9b0] ss:$20 sps:$4 sm:$0xff]  }
 0x438   :  { %6163 = vmatpush1.bf16.msra.mxu1 %v8996_v63  ;;  %6204 = vmatpush1.bf16.msra.mxu0 %v8999_v2  ;;  %v9070_v63 = vld [vmem:[%s12619_s7 + $0x75c] ss:$20 sps:$4 sm:$0xff]  }
 0x439   :  { %6164 = vmatprep.subr.bf16.mxu1 %v9004_v3  ;;  %6205 = vmatprep.subr.bf16.mxu0 %v9007_v4  ;;  %v9073_v2 = vld [vmem:[%s12619_s7 + $0x9dc] ss:$20 sps:$4 sm:$0xff]   ;;  %v9068_v3 = vld [vmem:[%s12619_s7 + $0x758] ss:$20 sps:$4 sm:$0xff]  }
 0x43a   :  { %v9071_v4 = vld [vmem:[%s12619_s7 + $0x9d8] ss:$20 sps:$4 sm:$0xff]  }
 0x43c   :  { %6165 = vmatpush1.bf16.msra.mxu1 %v9002_v11  ;;  %6206 = vmatpush1.bf16.msra.mxu0 %v9005_v6  ;;  %v9076_v11 = vld [vmem:[%s12619_s7 + $0xc] ss:$20 sps:$4 sm:$0xff]  }
 0x43d   :  { %6166 = vmatprep.subr.bf16.mxu1 %v9010_v20  ;;  %6207 = vmatprep.subr.bf16.mxu0 %v9013_v21  ;;  %v9079_v6 = vld [vmem:[%s12619_s7 + $0x28c] ss:$20 sps:$4 sm:$0xff]   ;;  %v2034_v20 = vsub.s32 6, %v10170_v5  ;;  %v2030_v21 = vsub.s32 5, %v10170_v5 }
 0x440   :  { %6167 = vmatpush1.bf16.msra.mxu1 %v9008_v23  ;;  %6208 = vmatpush1.bf16.msra.mxu0 %v9011_v10  ;;  %v2038_v23 = vsub.s32 7, %v10170_v5  ;;  %v2027_v10 = vrot.slane %v11396_v0, %v10192_v58 }
 0x441   :  { %6168 = vmatprep.subr.bf16.mxu1 %v9016_v12  ;;  %6209 = vmatprep.subr.bf16.mxu0 %v9019_v13  ;;  %v2035_v12 = vrot.slane %v11396_v0, %v2034_v20  ;;  %v2031_v13 = vrot.slane %v11396_v0, %v2030_v21  ;;  %v9107_v20 = vld [vmem:[%s12619_s7 + $0x350] ss:$20 sps:$4 sm:$0xff]  }
 0x442   :  { %v9112_v21 = vld [vmem:[%s12619_s7 + $0xfc] ss:$20 sps:$4 sm:$0xff]  }
 0x444   :  { %6169 = vmatpush1.bf16.msra.mxu1 %v9014_v57  ;;  %6210 = vmatpush1.bf16.msra.mxu0 %v9017_v22  ;;  %v2039_v57 = vrot.slane %v11396_v0, %v2038_v23  ;;  %v9074_v0 = vld [vmem:[%s12619_s7 + $0x8] ss:$20 sps:$4 sm:$0xff]  }
 0x445   :  { %6170 = vmatprep.subr.bf16.mxu1 %v9022_v24  ;;  %6211 = vmatprep.subr.bf16.mxu0 %v9025_v16  ;;  %v9115_v23 = vld [vmem:[%s12619_s7 + $0x37c] ss:$20 sps:$4 sm:$0xff]  }
 0x448   :  { %6171 = vmatpush1.bf16.msra.mxu1 %v9020_v25  ;;  %6212 = vmatpush1.bf16.msra.mxu0 %v9023_v26 }
 0x449   :  { %6172 = vmatprep.subr.bf16.mxu1 %v9028_v28  ;;  %6213 = vmatprep.subr.bf16.mxu0 %v9031_v29 }
 0x44c   :  { %6173 = vmatpush1.bf16.msra.mxu1 %v9026_v30  ;;  %6214 = vmatpush1.bf16.msra.mxu0 %v9029_v31 }
 0x44d   :  { %6174 = vmatprep.subr.bf16.mxu1 %v9034_v32  ;;  %6215 = vmatprep.subr.bf16.mxu0 %v9037_v33 }
 0x450   :  { %6175 = vmatpush1.bf16.msra.mxu1 %v9032_v34  ;;  %6216 = vmatpush1.bf16.msra.mxu0 %v9035_v36 }
 0x451   :  { %6176 = vmatprep.subr.bf16.mxu1 %v9040_v38  ;;  %6217 = vmatprep.subr.bf16.mxu0 %v9043_v7 }
 0x454   :  { %6177 = vmatpush1.bf16.msra.mxu1 %v9038_v39  ;;  %6218 = vmatpush1.bf16.msra.mxu0 %v9041_v48 }
 0x455   :  { %6178 = vmatprep.subr.bf16.mxu1 %v9046_v41  ;;  %6219 = vmatprep.subr.bf16.mxu0 %v9049_v42  ;;  %v9077_v42 = vld [vmem:[%s12619_s7 + $0x288] ss:$20 sps:$4 sm:$0xff]  }
 0x458   :  { %6179 = vmatpush1.bf16.msra.mxu1 %v9044_v43  ;;  %6220 = vmatpush1.bf16.msra.mxu0 %v9047_v44  ;;  %v9082_v44 = vld [vmem:[%s12619_s7 + $0x34] ss:$20 sps:$4 sm:$0xff]  }
 0x459   :  { %6180 = vmatprep.subr.bf16.mxu1 %v9052_v47  ;;  %6221 = vmatprep.subr.bf16.mxu0 %v9055_v49  ;;  %v9085_v47 = vld [vmem:[%s12619_s7 + $0x2b4] ss:$20 sps:$4 sm:$0xff]   ;;  %v9080_v49 = vld [vmem:[%s12619_s7 + $0x30] ss:$20 sps:$4 sm:$0xff]  }
 0x45c   :  { %6181 = vmatpush1.bf16.msra.mxu1 %v9050_v14  ;;  %6222 = vmatpush1.bf16.msra.mxu0 %v9053_v40  ;;  %v9083_v14 = vld [vmem:[%s12619_s7 + $0x2b0] ss:$20 sps:$4 sm:$0xff]  }
 0x45d   :  { %6182 = vmatprep.subr.bf16.mxu1 %v9058_v18  ;;  %6223 = vmatprep.subr.bf16.mxu0 %v9061_v54  ;;  %v9088_v40 = vld [vmem:[%s12619_s7 + $0x5c] ss:$20 sps:$4 sm:$0xff]   ;;  %v9086_v54 = vld [vmem:[%s12619_s7 + $0x58] ss:$20 sps:$4 sm:$0xff]  }
 0x45e   :  { %v9091_v18 = vld [vmem:[%s12619_s7 + $0x2dc] ss:$20 sps:$4 sm:$0xff]  }
 0x460   :  { %6183 = vmatpush1.bf16.msra.mxu1 %v9056_v55  ;;  %6224 = vmatpush1.bf16.msra.mxu0 %v9059_v52  ;;  %v9089_v55 = vld [vmem:[%s12619_s7 + $0x2d8] ss:$20 sps:$4 sm:$0xff]  }
 0x461   :  { %6184 = vmatprep.subr.bf16.mxu1 %v9064_v59  ;;  %6225 = vmatprep.subr.bf16.mxu0 %v9067_v60  ;;  %v9094_v52 = vld [vmem:[%s12619_s7 + $0x84] ss:$20 sps:$4 sm:$0xff]   ;;  %v9092_v60 = vld [vmem:[%s12619_s7 + $0x80] ss:$20 sps:$4 sm:$0xff]  }
 0x462   :  { %v9097_v59 = vld [vmem:[%s12619_s7 + $0x304] ss:$20 sps:$4 sm:$0xff]  }
 0x464   :  { %6185 = vmatpush1.bf16.msra.mxu1 %v9062_v61  ;;  %6226 = vmatpush1.bf16.msra.mxu0 %v9065_v62  ;;  %v9095_v61 = vld [vmem:[%s12619_s7 + $0x300] ss:$20 sps:$4 sm:$0xff]  }
 0x465   :  { %6186 = vmatprep.subr.bf16.mxu1 %v9070_v63  ;;  %6227 = vmatprep.subr.bf16.mxu0 %v9073_v2  ;;  %v9100_v62 = vld [vmem:[%s12619_s7 + $0xac] ss:$20 sps:$4 sm:$0xff]   ;;  %v9098_v2 = vld [vmem:[%s12619_s7 + $0xa8] ss:$20 sps:$4 sm:$0xff]  }
 0x466   :  { %v9103_v63 = vld [vmem:[%s12619_s7 + $0x32c] ss:$20 sps:$4 sm:$0xff]  }
 0x468   :  { %6187 = vmatpush1.bf16.msra.mxu1 %v9068_v3  ;;  %6228 = vmatpush1.bf16.msra.mxu0 %v9071_v4  ;;  %v9101_v3 = vld [vmem:[%s12619_s7 + $0x328] ss:$20 sps:$4 sm:$0xff]  }
 0x469   :  { %6238 = vmatprep.subr.bf16.mxu1 %v9076_v11  ;;  %6279 = vmatprep.subr.bf16.mxu0 %v9079_v6  ;;  %v9106_v4 = vld [vmem:[%s12619_s7 + $0xd4] ss:$20 sps:$4 sm:$0xff]   ;;  %v9104_v6 = vld [vmem:[%s12619_s7 + $0xd0] ss:$20 sps:$4 sm:$0xff]  }
 0x46a   :  { %v9109_v11 = vld [vmem:[%s12619_s7 + $0x354] ss:$20 sps:$4 sm:$0xff]  }
 0x4b2   :  { %v3853_v22 = vpop.f32.mrb[16].mxu1 }
 0x4b3   :  { %v8580_v24 = vadd.f32 %v3853_v22, %v2027_v10  ;;  %v3976_v16 = vpop.f32.mrb[28].mxu0  ;;  %v3855_v25 = vpop.f32.mrb[17].mxu1  ;;  %v9110_v10 = vld [vmem:[%s12619_s7 + $0xf8] ss:$20 sps:$4 sm:$0xff]   ;;  %v9116_v22 = vld [vmem:[%s12619_s7 + $0x120] ss:$20 sps:$4 sm:$0xff]  }
 0x4b4   :  { %v8582_v26 = vadd.f32 %v3976_v16, %v2035_v12  ;;  %v8581_v28 = vadd.f32 %v3855_v25, %v2031_v13  ;;  %v3978_v29 = vpop.f32.mrb[29].mxu0  ;;  %v3857_v30 = vpop.f32.mrb[18].mxu1  ;;  %v9113_v12 = vld [vmem:[%s12619_s7 + $0x378] ss:$20 sps:$4 sm:$0xff]  }
 0x4b5   :  { %v3987_v31 = vpack.c.bf16 %v8580_v24, %v8580_v24  ;;  %v8583_v32 = vadd.f32 %v3978_v29, %v2039_v57  ;;  %v3980_v5 = vpop.f32.mrb[30].mxu0  ;;  %v3858_v33 = vpop.f32.mrb[19].mxu1  ;;  %v9118_v13 = vld [vmem:[%s12619_s7 + $0x124] ss:$20 sps:$4 sm:$0xff]   ;;  %v9119_v24 = vld [vmem:[%s12619_s7 + $0x3a0] ss:$20 sps:$4 sm:$0xff]  }
 0x4b6   :  { %v3989_v34 = vpack.c.bf16 %v8582_v26, %v8582_v26  ;;  %v3988_v36 = vpack.c.bf16 %v8581_v28, %v8581_v28  ;;  %v3981_v38 = vpop.f32.mrb[31].mxu0  ;;  %v9121_v57 = vld [vmem:[%s12619_s7 + $0x3a4] ss:$20 sps:$4 sm:$0xff]   ;;  %v9124_v16 = vld [vmem:[%s12619_s7 + $0x14c] ss:$20 sps:$4 sm:$0xff]  }
 0x4b7   :  { %v3990_v7 = vpack.c.bf16 %v8583_v32, %v8583_v32  ;;  %v11629_v48 = vmax.bf16 %v9495_v15, %v3987_v31  ;;  %v9127_v25 = vld [vmem:[%s12619_s7 + $0x3cc] ss:$20 sps:$4 sm:$0xff]   ;;  %v9122_v26 = vld [vmem:[%s12619_s7 + $0x148] ss:$20 sps:$4 sm:$0xff]   ;;  %v9128_v31 = vld [vmem:[%s12619_s7 + $0x170] ss:$20 sps:$4 sm:$0xff]  }
 0x4b8   :  { %v11623_v39 = vmax.bf16 %v9495_v15, %v3988_v36  ;;  %v11638_v43 = vmax.bf16 %v9495_v15, %v3989_v34  ;;  %v9125_v28 = vld [vmem:[%s12619_s7 + $0x3c8] ss:$20 sps:$4 sm:$0xff]   ;;  %v9131_v32 = vld [vmem:[%s12619_s7 + $0x3f0] ss:$20 sps:$4 sm:$0xff]   ;;  %v9134_v34 = vld [vmem:[%s12619_s7 + $0x198] ss:$20 sps:$4 sm:$0xff]  }
 0x4b9   :  { %v11632_v41 = vmax.bf16 %v9495_v15, %v3990_v7  ;;  %v9130_v29 = vld [vmem:[%s12619_s7 + $0x174] ss:$20 sps:$4 sm:$0xff]   ;;  %v9136_v5 = vld [vmem:[%s12619_s7 + $0x19c] ss:$20 sps:$4 sm:$0xff]   ;;  %v9137_v36 = vld [vmem:[%s12619_s7 + $0x418] ss:$20 sps:$4 sm:$0xff]  }
 0x4ba   :  { %6188 = vmatprep.mubr.bf16.mxu1 %v11623_v39  ;;  %v9133_v30 = vld [vmem:[%s12619_s7 + $0x3f4] ss:$20 sps:$4 sm:$0xff]   ;;  %v9139_v33 = vld [vmem:[%s12619_s7 + $0x41c] ss:$20 sps:$4 sm:$0xff]   ;;  %v9142_v38 = vld [vmem:[%s12619_s7 + $0x1c4] ss:$20 sps:$4 sm:$0xff]  }
 0x4bb   :  { %6229 = vmatprep.mubr.bf16.mxu0 %v11632_v41  ;;  %6189 = vmatmul.mubr.bf16.vlgmr.msra.gmra.mrb[24].mxu1 %v11629_v48  ;;  %v9145_v7 = vld [vmem:[%s12619_s7 + $0x444] ss:$20 sps:$4 sm:$0xff]  }
 0x4bc   :  { %6230 = vmatmul.mubr.bf16.vlgmr.msra.gmra.mrb[36].mxu0 %v11638_v43  ;;  %6239 = vmatpush1.bf16.msra.mxu1 %v9074_v0  ;;  %v9140_v0 = vld [vmem:[%s12619_s7 + $0x1c0] ss:$20 sps:$4 sm:$0xff]  }
 0x4bd   :  { %6280 = vmatpush1.bf16.msra.mxu0 %v9077_v42  ;;  %6270 = vmatprep.mubr.bf16.mxu1 %v11407_v45  ;;  %v9143_v42 = vld [vmem:[%s12619_s7 + $0x440] ss:$20 sps:$4 sm:$0xff]  }
 0x4be   :  { %6311 = vmatprep.mubr.bf16.mxu0 %v11410_v46  ;;  %6240 = vmatprep.subr.bf16.mxu1 %v9082_v44  ;;  %v9148_v44 = vld [vmem:[%s12619_s7 + $0x1ec] ss:$20 sps:$4 sm:$0xff]  }
 0x4bf   :  { %6281 = vmatprep.subr.bf16.mxu0 %v9085_v47  ;;  %v9151_v47 = vld [vmem:[%s12619_s7 + $0x46c] ss:$20 sps:$4 sm:$0xff]  }
 0x4c0   :  { %6241 = vmatpush1.bf16.msra.mxu1 %v9080_v49  ;;  %v9146_v49 = vld [vmem:[%s12619_s7 + $0x1e8] ss:$20 sps:$4 sm:$0xff]  }
 0x4c1   :  { %6282 = vmatpush1.bf16.msra.mxu0 %v9083_v14  ;;  %6242 = vmatprep.subr.bf16.mxu1 %v9088_v40  ;;  %v9149_v14 = vld [vmem:[%s12619_s7 + $0x468] ss:$20 sps:$4 sm:$0xff]  }
 0x4c2   :  { %6283 = vmatprep.subr.bf16.mxu0 %v9091_v18  ;;  %v9154_v40 = vld [vmem:[%s12619_s7 + $0x214] ss:$20 sps:$4 sm:$0xff]  }
 0x4c3   :  { %v9157_v18 = vld [vmem:[%s12619_s7 + $0x494] ss:$20 sps:$4 sm:$0xff]  }
 0x4c4   :  { %6243 = vmatpush1.bf16.msra.mxu1 %v9086_v54  ;;  %v9152_v54 = vld [vmem:[%s12619_s7 + $0x210] ss:$20 sps:$4 sm:$0xff]  }
 0x4c5   :  { %6284 = vmatpush1.bf16.msra.mxu0 %v9089_v55  ;;  %6244 = vmatprep.subr.bf16.mxu1 %v9094_v52  ;;  %v9155_v55 = vld [vmem:[%s12619_s7 + $0x490] ss:$20 sps:$4 sm:$0xff]  }
 0x4c6   :  { %6285 = vmatprep.subr.bf16.mxu0 %v9097_v59  ;;  %v9160_v52 = vld [vmem:[%s12619_s7 + $0x23c] ss:$20 sps:$4 sm:$0xff]  }
 0x4c7   :  { %v9163_v59 = vld [vmem:[%s12619_s7 + $0x4bc] ss:$20 sps:$4 sm:$0xff]  }
 0x4c8   :  { %6245 = vmatpush1.bf16.msra.mxu1 %v9092_v60  ;;  %v9158_v60 = vld [vmem:[%s12619_s7 + $0x238] ss:$20 sps:$4 sm:$0xff]  }
 0x4c9   :  { %6286 = vmatpush1.bf16.msra.mxu0 %v9095_v61  ;;  %6246 = vmatprep.subr.bf16.mxu1 %v9100_v62  ;;  %v9161_v61 = vld [vmem:[%s12619_s7 + $0x4b8] ss:$20 sps:$4 sm:$0xff]  }
 0x4ca   :  { %6287 = vmatprep.subr.bf16.mxu0 %v9103_v63  ;;  %v9166_v62 = vld [vmem:[%s12619_s7 + $0x264] ss:$20 sps:$4 sm:$0xff]  }
 0x4cb   :  { %v9169_v63 = vld [vmem:[%s12619_s7 + $0x4e4] ss:$20 sps:$4 sm:$0xff]  }
 0x4cc   :  { %6247 = vmatpush1.bf16.msra.mxu1 %v9098_v2  ;;  %v9164_v2 = vld [vmem:[%s12619_s7 + $0x260] ss:$20 sps:$4 sm:$0xff]  }
 0x4cd   :  { %6288 = vmatpush1.bf16.msra.mxu0 %v9101_v3  ;;  %6248 = vmatprep.subr.bf16.mxu1 %v9106_v4  ;;  %v9167_v3 = vld [vmem:[%s12619_s7 + $0x4e0] ss:$20 sps:$4 sm:$0xff]  }
 0x4ce   :  { %6289 = vmatprep.subr.bf16.mxu0 %v9109_v11  ;;  %v9172_v4 = vld [vmem:[%s12619_s7 + $0x50c] ss:$20 sps:$4 sm:$0xff]  }
 0x4cf   :  { %v9175_v11 = vld [vmem:[%s12619_s7 + $0x78c] ss:$20 sps:$4 sm:$0xff]  }
 0x4d0   :  { %6249 = vmatpush1.bf16.msra.mxu1 %v9104_v6  ;;  %v9170_v6 = vld [vmem:[%s12619_s7 + $0x508] ss:$20 sps:$4 sm:$0xff]  }
 0x4d1   :  { %6290 = vmatpush1.bf16.msra.mxu0 %v9107_v20  ;;  %6250 = vmatprep.subr.bf16.mxu1 %v9112_v21  ;;  %v11838_v20 = vld [vmem:[%s12620_s8] sm:$0x1f]  ;;  %v9173_v21 = vld [vmem:[%s12619_s7 + $0x788] ss:$20 sps:$4 sm:$0xff]  }
 0x4d2   :  { %6291 = vmatprep.subr.bf16.mxu0 %v9115_v23  ;;  %v9178_v23 = vld [vmem:[%s12619_s7 + $0x534] ss:$20 sps:$4 sm:$0xff]  }
 0x4d4   :  { %6251 = vmatpush1.bf16.msra.mxu1 %v9110_v10  ;;  %v4388_v10 = vrot.slane %v11838_v20, %v10176_v8 }
 0x4d5   :  { %6292 = vmatpush1.bf16.msra.mxu0 %v9113_v12  ;;  %6252 = vmatprep.subr.bf16.mxu1 %v9118_v13  ;;  %v9181_v12 = vld [vmem:[%s12619_s7 + $0x7b4] ss:$20 sps:$4 sm:$0xff]   ;;  %v9176_v13 = vld [vmem:[%s12619_s7 + $0x530] ss:$20 sps:$4 sm:$0xff]  }
 0x4d6   :  { %6293 = vmatprep.subr.bf16.mxu0 %v9121_v57  ;;  %v4392_v57 = vrot.slane %v11838_v20, %v10179_v9 }
 0x4d8   :  { %6253 = vmatpush1.bf16.msra.mxu1 %v9116_v22  ;;  %v9179_v22 = vld [vmem:[%s12619_s7 + $0x7b0] ss:$20 sps:$4 sm:$0xff]  }
 0x4d9   :  { %6294 = vmatpush1.bf16.msra.mxu0 %v9119_v24  ;;  %6254 = vmatprep.subr.bf16.mxu1 %v9124_v16  ;;  %v9184_v24 = vld [vmem:[%s12619_s7 + $0x55c] ss:$20 sps:$4 sm:$0xff]  }
 0x4da   :  { %6295 = vmatprep.subr.bf16.mxu0 %v9127_v25 }
 0x4dc   :  { %6255 = vmatpush1.bf16.msra.mxu1 %v9122_v26  ;;  %v9187_v26 = vld [vmem:[%s12619_s7 + $0x7dc] ss:$20 sps:$4 sm:$0xff]  }
 0x4dd   :  { %6296 = vmatpush1.bf16.msra.mxu0 %v9125_v28  ;;  %6256 = vmatprep.subr.bf16.mxu1 %v9130_v29 }
 0x4de   :  { %6297 = vmatprep.subr.bf16.mxu0 %v9133_v30 }
 0x4e0   :  { %6257 = vmatpush1.bf16.msra.mxu1 %v9128_v31 }
 0x4e1   :  { %6298 = vmatpush1.bf16.msra.mxu0 %v9131_v32  ;;  %6258 = vmatprep.subr.bf16.mxu1 %v9136_v5 }
 0x4e2   :  { %6299 = vmatprep.subr.bf16.mxu0 %v9139_v33  ;;  %v9182_v33 = vld [vmem:[%s12619_s7 + $0x558] ss:$20 sps:$4 sm:$0xff]  }
 0x4e4   :  { %6259 = vmatpush1.bf16.msra.mxu1 %v9134_v34 }
 0x4e5   :  { %6300 = vmatpush1.bf16.msra.mxu0 %v9137_v36  ;;  %6260 = vmatprep.subr.bf16.mxu1 %v9142_v38 }
 0x4e6   :  { %6301 = vmatprep.subr.bf16.mxu0 %v9145_v7  ;;  %v9185_v7 = vld [vmem:[%s12619_s7 + $0x7d8] ss:$20 sps:$4 sm:$0xff]  }
 0x4e8   :  { %6261 = vmatpush1.bf16.msra.mxu1 %v9140_v0  ;;  %v9190_v0 = vld [vmem:[%s12619_s7 + $0x584] ss:$20 sps:$4 sm:$0xff]  }
 0x4e9   :  { %6302 = vmatpush1.bf16.msra.mxu0 %v9143_v42  ;;  %6262 = vmatprep.subr.bf16.mxu1 %v9148_v44  ;;  %v9193_v44 = vld [vmem:[%s12619_s7 + $0x804] ss:$20 sps:$4 sm:$0xff]  }
 0x4ea   :  { %6303 = vmatprep.subr.bf16.mxu0 %v9151_v47  ;;  %v9188_v47 = vld [vmem:[%s12619_s7 + $0x580] ss:$20 sps:$4 sm:$0xff]  }
 0x4ec   :  { %6263 = vmatpush1.bf16.msra.mxu1 %v9146_v49  ;;  %v9191_v49 = vld [vmem:[%s12619_s7 + $0x800] ss:$20 sps:$4 sm:$0xff]  }
 0x4ed   :  { %6304 = vmatpush1.bf16.msra.mxu0 %v9149_v14  ;;  %6264 = vmatprep.subr.bf16.mxu1 %v9154_v40  ;;  %v9196_v14 = vld [vmem:[%s12619_s7 + $0x5ac] ss:$20 sps:$4 sm:$0xff]  }
 0x4ee   :  { %6305 = vmatprep.subr.bf16.mxu0 %v9157_v18  ;;  %v9199_v40 = vld [vmem:[%s12619_s7 + $0x82c] ss:$20 sps:$4 sm:$0xff]   ;;  %v9194_v18 = vld [vmem:[%s12619_s7 + $0x5a8] ss:$20 sps:$4 sm:$0xff]  }
 0x4f0   :  { %6265 = vmatpush1.bf16.msra.mxu1 %v9152_v54  ;;  %v9197_v54 = vld [vmem:[%s12619_s7 + $0x828] ss:$20 sps:$4 sm:$0xff]  }
 0x4f1   :  { %6306 = vmatpush1.bf16.msra.mxu0 %v9155_v55  ;;  %6266 = vmatprep.subr.bf16.mxu1 %v9160_v52  ;;  %v9202_v55 = vld [vmem:[%s12619_s7 + $0x5d4] ss:$20 sps:$4 sm:$0xff]  }
 0x4f2   :  { %6307 = vmatprep.subr.bf16.mxu0 %v9163_v59  ;;  %v9205_v52 = vld [vmem:[%s12619_s7 + $0x854] ss:$20 sps:$4 sm:$0xff]   ;;  %v9200_v59 = vld [vmem:[%s12619_s7 + $0x5d0] ss:$20 sps:$4 sm:$0xff]  }
 0x4f4   :  { %6267 = vmatpush1.bf16.msra.mxu1 %v9158_v60  ;;  %v9203_v60 = vld [vmem:[%s12619_s7 + $0x850] ss:$20 sps:$4 sm:$0xff]  }
 0x4f5   :  { %6308 = vmatpush1.bf16.msra.mxu0 %v9161_v61  ;;  %6268 = vmatprep.subr.bf16.mxu1 %v9166_v62  ;;  %v9208_v61 = vld [vmem:[%s12619_s7 + $0x5fc] ss:$20 sps:$4 sm:$0xff]  }
 0x4f6   :  { %6309 = vmatprep.subr.bf16.mxu0 %v9169_v63  ;;  %v9211_v62 = vld [vmem:[%s12619_s7 + $0x87c] ss:$20 sps:$4 sm:$0xff]   ;;  %v9206_v63 = vld [vmem:[%s12619_s7 + $0x5f8] ss:$20 sps:$4 sm:$0xff]  }
 0x4f8   :  { %6269 = vmatpush1.bf16.msra.mxu1 %v9164_v2  ;;  %v9209_v2 = vld [vmem:[%s12619_s7 + $0x878] ss:$20 sps:$4 sm:$0xff]  }
 0x4f9   :  { %6310 = vmatpush1.bf16.msra.mxu0 %v9167_v3  ;;  %6320 = vmatprep.subr.bf16.mxu1 %v9172_v4  ;;  %v9214_v3 = vld [vmem:[%s12619_s7 + $0x624] ss:$20 sps:$4 sm:$0xff]  }
 0x4fa   :  { %6361 = vmatprep.subr.bf16.mxu0 %v9175_v11  ;;  %v9217_v4 = vld [vmem:[%s12619_s7 + $0x8a4] ss:$20 sps:$4 sm:$0xff]   ;;  %v9212_v11 = vld [vmem:[%s12619_s7 + $0x620] ss:$20 sps:$4 sm:$0xff]  }
 0x4fb   :  { %6271 = vmatmul.mubr.bf16.vlgmr.msra.gmra.mrb[28].mxu1 %v11419_v50 }
 0x4fc   :  { %6312 = vmatmul.mubr.bf16.vlgmr.msra.gmra.mrb[40].mxu0 %v11422_v51  ;;  %6321 = vmatpush1.bf16.msra.mxu1 %v9170_v6  ;;  %v9215_v6 = vld [vmem:[%s12619_s7 + $0x8a0] ss:$20 sps:$4 sm:$0xff]  }
 0x4fd   :  { %6352 = vmatprep.mubr.bf16.mxu1 %v11623_v39  ;;  %6362 = vmatpush1.bf16.msra.mxu0 %v9173_v21  ;;  %v9220_v21 = vld [vmem:[%s12619_s7 + $0x64c] ss:$20 sps:$4 sm:$0xff]  }
 0x4fe   :  { %6393 = vmatprep.mubr.bf16.mxu0 %v11632_v41  ;;  %v6108_v16 = vpop.f32.mrb[20].mxu1  ;;  %v6149_v25 = vpop.f32.mrb[32].mxu0  ;;  %6322 = vmatprep.subr.bf16.mxu1 %v9178_v23  ;;  %v9223_v23 = vld [vmem:[%s12619_s7 + $0x8cc] ss:$20 sps:$4 sm:$0xff]  }
 0x4ff   :  { %v6109_v28 = vadd.f32 %v6108_v16, %v4388_v10  ;;  %6363 = vmatprep.subr.bf16.mxu0 %v9181_v12  ;;  %v6110_v29 = vpop.f32.mrb[21].mxu1  ;;  %v6151_v30 = vpop.f32.mrb[33].mxu0  ;;  %v9218_v10 = vld [vmem:[%s12619_s7 + $0x648] ss:$20 sps:$4 sm:$0xff]  }
 0x500   :  { %v6111_v31 = vadd.f32 %v6110_v29, %v4392_v57  ;;  %6323 = vmatpush1.bf16.msra.mxu1 %v9176_v13  ;;  %v6112_v32 = vpop.f32.mrb[22].mxu1  ;;  %v6153_v5 = vpop.f32.mrb[34].mxu0  ;;  %v9221_v12 = vld [vmem:[%s12619_s7 + $0x8c8] ss:$20 sps:$4 sm:$0xff]   ;;  %v9238_v29 = vld [vmem:[%s12619_s7 + $0x6c4] ss:$20 sps:$4 sm:$0xff]  }
 0x501   :  { %v11872_v34 = vadd.f32 %v6149_v25, %v6109_v28  ;;  %6364 = vmatpush1.bf16.msra.mxu0 %v9179_v22  ;;  %v6113_v36 = vpop.f32.mrb[23].mxu1  ;;  %v6154_v38 = vpop.f32.mrb[35].mxu0  ;;  %6324 = vmatprep.subr.bf16.mxu1 %v9184_v24  ;;  %v9226_v13 = vld [vmem:[%s12619_s7 + $0x674] ss:$20 sps:$4 sm:$0xff]   ;;  %v9224_v22 = vld [vmem:[%s12619_s7 + $0x670] ss:$20 sps:$4 sm:$0xff]  }
 0x502   :  { %v11880_v42 = vadd.f32 %v6151_v30, %v6111_v31  ;;  %6365 = vmatprep.subr.bf16.mxu0 %v9187_v26  ;;  %v9229_v57 = vld [vmem:[%s12619_s7 + $0x8f4] ss:$20 sps:$4 sm:$0xff]   ;;  %v9227_v24 = vld [vmem:[%s12619_s7 + $0x8f0] ss:$20 sps:$4 sm:$0xff]   ;;  %v9230_v26 = vld [vmem:[%s12619_s7 + $0x698] ss:$20 sps:$4 sm:$0xff]  }
 0x503   :  { %v9232_v16 = vld [vmem:[%s12619_s7 + $0x69c] ss:$20 sps:$4 sm:$0xff]   ;;  %v9233_v28 = vld [vmem:[%s12619_s7 + $0x918] ss:$20 sps:$4 sm:$0xff]   ;;  %v9236_v31 = vld [vmem:[%s12619_s7 + $0x6c0] ss:$20 sps:$4 sm:$0xff]  }
 0x504   :  { %6325 = vmatpush1.bf16.msra.mxu1 %v9182_v33  ;;  %v9235_v25 = vld [vmem:[%s12619_s7 + $0x91c] ss:$20 sps:$4 sm:$0xff]   ;;  %v9241_v30 = vld [vmem:[%s12619_s7 + $0x944] ss:$20 sps:$4 sm:$0xff]   ;;  %v9239_v32 = vld [vmem:[%s12619_s7 + $0x940] ss:$20 sps:$4 sm:$0xff]  }
 0x505   :  { %6366 = vmatpush1.bf16.msra.mxu0 %v9185_v7  ;;  %6326 = vmatprep.subr.bf16.mxu1 %v9190_v0  ;;  %v9244_v5 = vld [vmem:[%s12619_s7 + $0x6ec] ss:$20 sps:$4 sm:$0xff]   ;;  %v9242_v36 = vld [vmem:[%s12619_s7 + $0x6e8] ss:$20 sps:$4 sm:$0xff]  }
 0x506   :  { %6367 = vmatprep.subr.bf16.mxu0 %v9193_v44  ;;  %v9247_v33 = vld [vmem:[%s12619_s7 + $0x96c] ss:$20 sps:$4 sm:$0xff]   ;;  %v9245_v38 = vld [vmem:[%s12619_s7 + $0x968] ss:$20 sps:$4 sm:$0xff]   ;;  %v9248_v44 = vld [vmem:[%s12619_s7 + $0x710] ss:$20 sps:$4 sm:$0xff]  }
 0x507   :  { %v9250_v7 = vld [vmem:[%s12619_s7 + $0x714] ss:$20 sps:$4 sm:$0xff]  }
 0x508   :  { %6327 = vmatpush1.bf16.msra.mxu1 %v9188_v47  ;;  %v9253_v0 = vld [vmem:[%s12619_s7 + $0x994] ss:$20 sps:$4 sm:$0xff]   ;;  %v9251_v47 = vld [vmem:[%s12619_s7 + $0x990] ss:$20 sps:$4 sm:$0xff]  }
 0x509   :  { %6368 = vmatpush1.bf16.msra.mxu0 %v9191_v49  ;;  %6328 = vmatprep.subr.bf16.mxu1 %v9196_v14  ;;  %v9256_v49 = vld [vmem:[%s12619_s7 + $0x73c] ss:$20 sps:$4 sm:$0xff]  }
 0x50a   :  { %6369 = vmatprep.subr.bf16.mxu0 %v9199_v40  ;;  %v9259_v14 = vld [vmem:[%s12619_s7 + $0x9bc] ss:$20 sps:$4 sm:$0xff]   ;;  %v9254_v40 = vld [vmem:[%s12619_s7 + $0x738] ss:$20 sps:$4 sm:$0xff]  }
 0x50c   :  { %6329 = vmatpush1.bf16.msra.mxu1 %v9194_v18  ;;  %v9257_v18 = vld [vmem:[%s12619_s7 + $0x9b8] ss:$20 sps:$4 sm:$0xff]  }
 0x50d   :  { %6370 = vmatpush1.bf16.msra.mxu0 %v9197_v54  ;;  %6330 = vmatprep.subr.bf16.mxu1 %v9202_v55  ;;  %v9262_v54 = vld [vmem:[%s12619_s7 + $0x764] ss:$20 sps:$4 sm:$0xff]  }
 0x50e   :  { %6371 = vmatprep.subr.bf16.mxu0 %v9205_v52  ;;  %v9265_v55 = vld [vmem:[%s12619_s7 + $0x9e4] ss:$20 sps:$4 sm:$0xff]   ;;  %v9260_v52 = vld [vmem:[%s12619_s7 + $0x760] ss:$20 sps:$4 sm:$0xff]  }
 0x510   :  { %6331 = vmatpush1.bf16.msra.mxu1 %v9200_v59  ;;  %v9263_v59 = vld [vmem:[%s12619_s7 + $0x9e0] ss:$20 sps:$4 sm:$0xff]  }
 0x511   :  { %6372 = vmatpush1.bf16.msra.mxu0 %v9203_v60  ;;  %6332 = vmatprep.subr.bf16.mxu1 %v9208_v61  ;;  %v9266_v60 = vld [vmem:[%s12619_s7 + $0x150] ss:$20 sps:$4 sm:$0xff]  }
 0x512   :  { %6373 = vmatprep.subr.bf16.mxu0 %v9211_v62  ;;  %v9267_v61 = vld [vmem:[%s12619_s7 + $0x3d0] ss:$20 sps:$4 sm:$0xff]  }
 0x513   :  { %v9268_v62 = vld [vmem:[%s12619_s7 + $0x10] ss:$20 sps:$4 sm:$0xff]  }
 0x514   :  { %6333 = vmatpush1.bf16.msra.mxu1 %v9206_v63  ;;  %v9269_v63 = vld [vmem:[%s12619_s7 + $0x290] ss:$20 sps:$4 sm:$0xff]  }
 0x515   :  { %6374 = vmatpush1.bf16.msra.mxu0 %v9209_v2  ;;  %6334 = vmatprep.subr.bf16.mxu1 %v9214_v3  ;;  %v9270_v2 = vld [vmem:[%s12619_s7 + $0x178] ss:$20 sps:$4 sm:$0xff]  }
 0x516   :  { %6375 = vmatprep.subr.bf16.mxu0 %v9217_v4  ;;  %v9271_v3 = vld [vmem:[%s12619_s7 + $0x3f8] ss:$20 sps:$4 sm:$0xff]  }
 0x517   :  { %v9272_v4 = vld [vmem:[%s12619_s7 + $0x38] ss:$20 sps:$4 sm:$0xff]  }
 0x518   :  { %6335 = vmatpush1.bf16.msra.mxu1 %v9212_v11  ;;  %v9273_v11 = vld [vmem:[%s12619_s7 + $0x2b8] ss:$20 sps:$4 sm:$0xff]  }
 0x519   :  { %6376 = vmatpush1.bf16.msra.mxu0 %v9215_v6  ;;  %6336 = vmatprep.subr.bf16.mxu1 %v9220_v21  ;;  %v9274_v6 = vld [vmem:[%s12619_s7 + $0x1a0] ss:$20 sps:$4 sm:$0xff]  }
 0x51a   :  { %6377 = vmatprep.subr.bf16.mxu0 %v9223_v23  ;;  %v9275_v21 = vld [vmem:[%s12619_s7 + $0x420] ss:$20 sps:$4 sm:$0xff]  }
 0x51b   :  { %v9277_v23 = vld [vmem:[%s12619_s7 + $0x2e0] ss:$20 sps:$4 sm:$0xff]  }
 0x51c   :  { %6337 = vmatpush1.bf16.msra.mxu1 %v9218_v10  ;;  %v9279_v10 = vld [vmem:[%s12619_s7 + $0x448] ss:$20 sps:$4 sm:$0xff]  }
 0x51d   :  { %6378 = vmatpush1.bf16.msra.mxu0 %v9221_v12  ;;  %6338 = vmatprep.subr.bf16.mxu1 %v9226_v13  ;;  %v9280_v12 = vld [vmem:[%s12619_s7 + $0x88] ss:$20 sps:$4 sm:$0xff]  }
 0x51e   :  { %6379 = vmatprep.subr.bf16.mxu0 %v9229_v57  ;;  %v9281_v13 = vld [vmem:[%s12619_s7 + $0x308] ss:$20 sps:$4 sm:$0xff]   ;;  %v9282_v57 = vld [vmem:[%s12619_s7 + $0x1f0] ss:$20 sps:$4 sm:$0xff]  }
 0x520   :  { %6339 = vmatpush1.bf16.msra.mxu1 %v9224_v22  ;;  %v9283_v22 = vld [vmem:[%s12619_s7 + $0x470] ss:$20 sps:$4 sm:$0xff]  }
 0x521   :  { %6380 = vmatpush1.bf16.msra.mxu0 %v9227_v24  ;;  %6340 = vmatprep.subr.bf16.mxu1 %v9232_v16  ;;  %v9284_v24 = vld [vmem:[%s12619_s7 + $0xb0] ss:$20 sps:$4 sm:$0xff]  }
 0x522   :  { %6381 = vmatprep.subr.bf16.mxu0 %v9235_v25  ;;  %v9285_v16 = vld [vmem:[%s12619_s7 + $0x330] ss:$20 sps:$4 sm:$0xff]   ;;  %v9286_v25 = vld [vmem:[%s12619_s7 + $0x218] ss:$20 sps:$4 sm:$0xff]  }
 0x524   :  { %6341 = vmatpush1.bf16.msra.mxu1 %v9230_v26  ;;  %v9287_v26 = vld [vmem:[%s12619_s7 + $0x498] ss:$20 sps:$4 sm:$0xff]  }
 0x525   :  { %6382 = vmatpush1.bf16.msra.mxu0 %v9233_v28  ;;  %6342 = vmatprep.subr.bf16.mxu1 %v9238_v29  ;;  %v9288_v28 = vld [vmem:[%s12619_s7 + $0xd8] ss:$20 sps:$4 sm:$0xff]  }
 0x526   :  { %6383 = vmatprep.subr.bf16.mxu0 %v9241_v30  ;;  %v9289_v29 = vld [vmem:[%s12619_s7 + $0x358] ss:$20 sps:$4 sm:$0xff]   ;;  %v9290_v30 = vld [vmem:[%s12619_s7 + $0x240] ss:$20 sps:$4 sm:$0xff]  }
 0x528   :  { %6343 = vmatpush1.bf16.msra.mxu1 %v9236_v31  ;;  %v9291_v31 = vld [vmem:[%s12619_s7 + $0x4c0] ss:$20 sps:$4 sm:$0xff]  }
 0x529   :  { %6384 = vmatpush1.bf16.msra.mxu0 %v9239_v32  ;;  %6344 = vmatprep.subr.bf16.mxu1 %v9244_v5  ;;  %v9292_v32 = vld [vmem:[%s12619_s7 + $0x100] ss:$20 sps:$4 sm:$0xff]  }
 0x52a   :  { %6385 = vmatprep.subr.bf16.mxu0 %v9247_v33  ;;  %v9293_v5 = vld [vmem:[%s12619_s7 + $0x380] ss:$20 sps:$4 sm:$0xff]   ;;  %v9294_v33 = vld [vmem:[%s12619_s7 + $0x268] ss:$20 sps:$4 sm:$0xff]  }
 0x52c   :  { %6345 = vmatpush1.bf16.msra.mxu1 %v9242_v36  ;;  %v9295_v36 = vld [vmem:[%s12619_s7 + $0x4e8] ss:$20 sps:$4 sm:$0xff]  }
 0x52d   :  { %6386 = vmatpush1.bf16.msra.mxu0 %v9245_v38  ;;  %6346 = vmatprep.subr.bf16.mxu1 %v9250_v7  ;;  %v9296_v38 = vld [vmem:[%s12619_s7 + $0x128] ss:$20 sps:$4 sm:$0xff]  }
 0x52e   :  { %6387 = vmatprep.subr.bf16.mxu0 %v9253_v0  ;;  %v9297_v7 = vld [vmem:[%s12619_s7 + $0x3a8] ss:$20 sps:$4 sm:$0xff]   ;;  %v9298_v0 = vld [vmem:[%s12619_s7 + $0x650] ss:$20 sps:$4 sm:$0xff]  }
 0x530   :  { %6347 = vmatpush1.bf16.msra.mxu1 %v9248_v44  ;;  %v9299_v44 = vld [vmem:[%s12619_s7 + $0x8d0] ss:$20 sps:$4 sm:$0xff]  }
 0x531   :  { %6388 = vmatpush1.bf16.msra.mxu0 %v9251_v47  ;;  %6348 = vmatprep.subr.bf16.mxu1 %v9256_v49  ;;  %v9300_v47 = vld [vmem:[%s12619_s7 + $0x510] ss:$20 sps:$4 sm:$0xff]  }
 0x532   :  { %6389 = vmatprep.subr.bf16.mxu0 %v9259_v14  ;;  %v9301_v49 = vld [vmem:[%s12619_s7 + $0x790] ss:$20 sps:$4 sm:$0xff]   ;;  %v9302_v14 = vld [vmem:[%s12619_s7 + $0x678] ss:$20 sps:$4 sm:$0xff]  }
 0x534   :  { %6349 = vmatpush1.bf16.msra.mxu1 %v9254_v40  ;;  %v9303_v40 = vld [vmem:[%s12619_s7 + $0x8f8] ss:$20 sps:$4 sm:$0xff]  }
 0x535   :  { %6390 = vmatpush1.bf16.msra.mxu0 %v9257_v18  ;;  %6350 = vmatprep.subr.bf16.mxu1 %v9262_v54  ;;  %v9304_v18 = vld [vmem:[%s12619_s7 + $0x538] ss:$20 sps:$4 sm:$0xff]  }
 0x536   :  { %6391 = vmatprep.subr.bf16.mxu0 %v9265_v55  ;;  %v9305_v54 = vld [vmem:[%s12619_s7 + $0x7b8] ss:$20 sps:$4 sm:$0xff]   ;;  %v9309_v55 = vld [vmem:[%s12619_s7 + $0x7e0] ss:$20 sps:$4 sm:$0xff]  }
 0x538   :  { %6351 = vmatpush1.bf16.msra.mxu1 %v9260_v52  ;;  %v9311_v52 = vld [vmem:[%s12619_s7 + $0x948] ss:$20 sps:$4 sm:$0xff]  }
 0x539   :  { %6392 = vmatpush1.bf16.msra.mxu0 %v9263_v59  ;;  %8425 = vmatprep.subr.bf16.mxu1 %v9266_v60  ;;  %v9312_v59 = vld [vmem:[%s12619_s7 + $0x588] ss:$20 sps:$4 sm:$0xff]  }
 0x53a   :  { %8447 = vmatprep.subr.bf16.mxu0 %v9267_v61  ;;  %v9313_v60 = vld [vmem:[%s12619_s7 + $0x808] ss:$20 sps:$4 sm:$0xff]   ;;  %v9314_v61 = vld [vmem:[%s12619_s7 + $0x6f0] ss:$20 sps:$4 sm:$0xff]  }
 0x53b   :  { %6353 = vmatmul.mubr.bf16.vlgmr.msra.gmra.mrb[32].mxu1 %v11629_v48 }
 0x53c   :  { %6394 = vmatmul.mubr.bf16.vlgmr.msra.gmra.mrb[44].mxu0 %v11638_v43  ;;  %8426 = vmatpush3.bf16.msra.mxu1 %v9268_v62  ;;  %v9315_v62 = vld [vmem:[%s12619_s7 + $0x970] ss:$20 sps:$4 sm:$0xff]  }
 0x53d   :  { %6434 = vmatprep.mubr.bf16.mxu1 %v11407_v45  ;;  %8448 = vmatpush3.bf16.msra.mxu0 %v9269_v63  ;;  %v9276_v45 = vld [vmem:[%s12619_s7 + $0x60] ss:$20 sps:$4 sm:$0xff]   ;;  %v9316_v63 = vld [vmem:[%s12619_s7 + $0x5b0] ss:$20 sps:$4 sm:$0xff]  }
 0x53e   :  { %6474 = vmatprep.mubr.bf16.mxu0 %v11410_v46  ;;  %8427 = vmatprep.subr.bf16.mxu1 %v9270_v2  ;;  %v9278_v46 = vld [vmem:[%s12619_s7 + $0x1c8] ss:$20 sps:$4 sm:$0xff]   ;;  %v9317_v2 = vld [vmem:[%s12619_s7 + $0x830] ss:$20 sps:$4 sm:$0xff]  }
 0x53f   :  { %8449 = vmatprep.subr.bf16.mxu0 %v9271_v3  ;;  %v9318_v3 = vld [vmem:[%s12619_s7 + $0x718] ss:$20 sps:$4 sm:$0xff]  }
 0x540   :  { %8428 = vmatpush3.bf16.msra.mxu1 %v9272_v4  ;;  %v9319_v4 = vld [vmem:[%s12619_s7 + $0x998] ss:$20 sps:$4 sm:$0xff]  }
 0x541   :  { %8450 = vmatpush3.bf16.msra.mxu0 %v9273_v11  ;;  %8429 = vmatprep.subr.bf16.mxu1 %v9274_v6  ;;  %v9320_v11 = vld [vmem:[%s12619_s7 + $0x5d8] ss:$20 sps:$4 sm:$0xff]  }
 0x542   :  { %8451 = vmatprep.subr.bf16.mxu0 %v9275_v21  ;;  %v9321_v6 = vld [vmem:[%s12619_s7 + $0x858] ss:$20 sps:$4 sm:$0xff]   ;;  %v9322_v21 = vld [vmem:[%s12619_s7 + $0x740] ss:$20 sps:$4 sm:$0xff]  }
 0x544   :  { %8430 = vmatpush3.bf16.msra.mxu1 %v9276_v45  ;;  %v9323_v45 = vld [vmem:[%s12619_s7 + $0x9c0] ss:$20 sps:$4 sm:$0xff]  }
 0x545   :  { %8452 = vmatpush3.bf16.msra.mxu0 %v9277_v23  ;;  %8431 = vmatprep.subr.bf16.mxu1 %v9278_v46  ;;  %v9324_v23 = vld [vmem:[%s12619_s7 + $0x600] ss:$20 sps:$4 sm:$0xff]  }
 0x546   :  { %8453 = vmatprep.subr.bf16.mxu0 %v9279_v10  ;;  %v9325_v46 = vld [vmem:[%s12619_s7 + $0x880] ss:$20 sps:$4 sm:$0xff]   ;;  %v9326_v10 = vld [vmem:[%s12619_s7 + $0x768] ss:$20 sps:$4 sm:$0xff]  }
 0x548   :  { %8432 = vmatpush3.bf16.msra.mxu1 %v9280_v12  ;;  %v9327_v12 = vld [vmem:[%s12619_s7 + $0x9e8] ss:$20 sps:$4 sm:$0xff]  }
 0x549   :  { %8454 = vmatpush3.bf16.msra.mxu0 %v9281_v13  ;;  %8433 = vmatprep.subr.bf16.mxu1 %v9282_v57  ;;  %v9328_v13 = vld [vmem:[%s12619_s7 + $0x628] ss:$20 sps:$4 sm:$0xff]  }
 0x54a   :  { %8455 = vmatprep.subr.bf16.mxu0 %v9283_v22  ;;  %v9329_v57 = vld [vmem:[%s12619_s7 + $0x8a8] ss:$20 sps:$4 sm:$0xff]  }
 0x54c   :  { %8434 = vmatpush3.bf16.msra.mxu1 %v9284_v24 }
 0x54d   :  { %8456 = vmatpush3.bf16.msra.mxu0 %v9285_v16  ;;  %8435 = vmatprep.subr.bf16.mxu1 %v9286_v25 }
 0x54e   :  { %8457 = vmatprep.subr.bf16.mxu0 %v9287_v26 }
 0x550   :  { %8436 = vmatpush3.bf16.msra.mxu1 %v9288_v28 }
 0x551   :  { %8458 = vmatpush3.bf16.msra.mxu0 %v9289_v29  ;;  %8437 = vmatprep.subr.bf16.mxu1 %v9290_v30 }
 0x552   :  { %8459 = vmatprep.subr.bf16.mxu0 %v9291_v31 }
 0x554   :  { %8438 = vmatpush3.bf16.msra.mxu1 %v9292_v32 }
 0x555   :  { %8460 = vmatpush3.bf16.msra.mxu0 %v9293_v5  ;;  %8439 = vmatprep.subr.bf16.mxu1 %v9294_v33 }
 0x556   :  { %8461 = vmatprep.subr.bf16.mxu0 %v9295_v36  ;;  %v4396_v36 = vrot.slane %v11838_v20, %v10184_v35 }
 0x558   :  { %8440 = vmatpush3.bf16.msra.mxu1 %v9296_v38 }
 0x559   :  { %8462 = vmatpush3.bf16.msra.mxu0 %v9297_v7  ;;  %8469 = vmatprep.subr.bf16.mxu1 %v9298_v0 }
 0x55a   :  { %8491 = vmatprep.subr.bf16.mxu0 %v9299_v44 }
 0x55b   :  { %6435 = vmatmul.mubr.bf16.vlgmr.msra.gmra.mrb[36].mxu1 %v11419_v50  ;;  %v9306_v50 = vld [vmem:[%s12619_s7 + $0x6a0] ss:$20 sps:$4 sm:$0xff]  }
 0x55c   :  { %6475 = vmatmul.mubr.bf16.vlgmr.msra.gmra.mrb[48].mxu0 %v11422_v51  ;;  %8470 = vmatpush3.bf16.msra.mxu1 %v9300_v47  ;;  %v9307_v51 = vld [vmem:[%s12619_s7 + $0x920] ss:$20 sps:$4 sm:$0xff]  }
 0x55d   :  { %6514 = vmatprep.mubr.bf16.mxu1 %v11623_v39  ;;  %8492 = vmatpush3.bf16.msra.mxu0 %v9301_v49  ;;  %v9308_v39 = vld [vmem:[%s12619_s7 + $0x560] ss:$20 sps:$4 sm:$0xff]  }
 0x55e   :  { %6554 = vmatprep.mubr.bf16.mxu0 %v11632_v41  ;;  %8471 = vmatprep.subr.bf16.mxu1 %v9302_v14  ;;  %v9310_v41 = vld [vmem:[%s12619_s7 + $0x6c8] ss:$20 sps:$4 sm:$0xff]  }
 0x55f   :  { %8493 = vmatprep.subr.bf16.mxu0 %v9303_v40 }
 0x560   :  { %8472 = vmatpush3.bf16.msra.mxu1 %v9304_v18 }
 0x561   :  { %8494 = vmatpush3.bf16.msra.mxu0 %v9305_v54  ;;  %8473 = vmatprep.subr.bf16.mxu1 %v9306_v50 }
 0x562   :  { %8495 = vmatprep.subr.bf16.mxu0 %v9307_v51 }
 0x564   :  { %8474 = vmatpush3.bf16.msra.mxu1 %v9308_v39 }
 0x565   :  { %8496 = vmatpush3.bf16.msra.mxu0 %v9309_v55  ;;  %8475 = vmatprep.subr.bf16.mxu1 %v9310_v41 }
 0x566   :  { %8497 = vmatprep.subr.bf16.mxu0 %v9311_v52 }
 0x568   :  { %8476 = vmatpush3.bf16.msra.mxu1 %v9312_v59 }
 0x569   :  { %8498 = vmatpush3.bf16.msra.mxu0 %v9313_v60  ;;  %8477 = vmatprep.subr.bf16.mxu1 %v9314_v61 }
 0x56a   :  { %8499 = vmatprep.subr.bf16.mxu0 %v9315_v62 }
 0x56c   :  { %8478 = vmatpush3.bf16.msra.mxu1 %v9316_v63  ;;  %v4404_v63 = vrot.slane %v11838_v20, %v10192_v58 }
 0x56d   :  { %8500 = vmatpush3.bf16.msra.mxu0 %v9317_v2  ;;  %8479 = vmatprep.subr.bf16.mxu1 %v9318_v3 }
 0x56e   :  { %8501 = vmatprep.subr.bf16.mxu0 %v9319_v4 }
 0x570   :  { %8480 = vmatpush3.bf16.msra.mxu1 %v9320_v11 }
 0x571   :  { %8502 = vmatpush3.bf16.msra.mxu0 %v9321_v6  ;;  %8481 = vmatprep.subr.bf16.mxu1 %v9322_v21 }
 0x572   :  { %8503 = vmatprep.subr.bf16.mxu0 %v9323_v45 }
 0x574   :  { %8482 = vmatpush3.bf16.msra.mxu1 %v9324_v23 }
 0x575   :  { %8504 = vmatpush3.bf16.msra.mxu0 %v9325_v46  ;;  %8483 = vmatprep.subr.bf16.mxu1 %v9326_v10 }
 0x576   :  { %8505 = vmatprep.subr.bf16.mxu0 %v9327_v12 }
 0x578   :  { %8484 = vmatpush3.bf16.msra.mxu1 %v9328_v13 }
 0x579   :  { %8506 = vmatpush3.bf16.msra.mxu0 %v9329_v57 }
 0x57b   :  { %6515 = vmatmul.mubr.bf16.vlgmr.msra.gmra.mrb[40].mxu1 %v11629_v48  ;;  %v4400_v48 = vrot.slane %v11838_v20, %v10187_v37 }
 0x57c   :  { %6555 = vmatmul.mubr.bf16.vlgmr.msra.gmra.mrb[52].mxu0 %v11638_v43 }
 0x58e   :  { %v6190_v22 = vpop.f32.mrb[24].mxu1 }
 0x58f   :  { %v6191_v24 = vadd.f32 %v6190_v22, %v11872_v34  ;;  %v6231_v16 = vpop.f32.mrb[36].mxu0  ;;  %v6192_v25 = vpop.f32.mrb[25].mxu1 }
 0x590   :  { %v6193_v26 = vadd.f32 %v6192_v25, %v11880_v42  ;;  %v6233_v28 = vpop.f32.mrb[37].mxu0  ;;  %v6194_v29 = vpop.f32.mrb[26].mxu1 }
 0x591   :  { %v6232_v30 = vadd.f32 %v6231_v16, %v6191_v24  ;;  %v6235_v31 = vpop.f32.mrb[38].mxu0  ;;  %v6195_v32 = vpop.f32.mrb[27].mxu1 }
 0x592   :  { %v6234_v5 = vadd.f32 %v6233_v28, %v6193_v26  ;;  %v6236_v33 = vpop.f32.mrb[39].mxu0 }
 0x593   :  { %v12246_v13 = vadd.f32 %v6232_v30, %v10479_v27 }
 0x594   :  { %v12249_v57 = vadd.f32 %v6234_v5, %v10477_v53 }
 0x596   :  { %v6567_v28 = vadd.f32 %v12249_v57, %v12246_v13 }
 0x5ce   :  { %v6272_v43 = vpop.f32.mrb[28].mxu1 }
 0x5cf   :  { %v6273_v38 = vadd.f32 %v6272_v43, %v4396_v36  ;;  %v6313_v34 = vpop.f32.mrb[40].mxu0  ;;  %v6274_v7 = vpop.f32.mrb[29].mxu1 }
 0x5d0   :  { %v6275_v0 = vadd.f32 %v6274_v7, %v4400_v48  ;;  %v6315_v44 = vpop.f32.mrb[41].mxu0  ;;  %v6276_v42 = vpop.f32.mrb[30].mxu1  ;;  %v9338_v7 = vld [vmem:[%s12621_s9 + $0x24] ss:$8 sps:$4 sm:$0xff]  }
 0x5d1   :  { %v6314_v47 = vadd.f32 %v6313_v34, %v6273_v38  ;;  %v6317_v49 = vpop.f32.mrb[42].mxu0  ;;  %v6277_v14 = vpop.f32.mrb[31].mxu1  ;;  %v9330_v38 = vld [vmem:[%s12621_s9] ss:$8 sps:$4 sm:$0xff]   ;;  %v9332_v34 = vld [vmem:[%s12621_s9 + $0x4] ss:$8 sps:$4 sm:$0xff]  }
 0x5d2   :  { %v6316_v40 = vadd.f32 %v6315_v44, %v6275_v0  ;;  %v6318_v18 = vpop.f32.mrb[43].mxu0  ;;  %7052 = vmatprep.subr.bf16.mxu1 %v9332_v34  ;;  %v9336_v0 = vld [vmem:[%s12621_s9 + $0x20] ss:$8 sps:$4 sm:$0xff]   ;;  %v9341_v44 = vld [vmem:[%s12621_s9 + $0x34] ss:$8 sps:$4 sm:$0xff]  }
 0x5d3   :  { %7053 = vmatpush1.bf16.msra.mxu1 %v9330_v38  ;;  %v9339_v42 = vld [vmem:[%s12621_s9 + $0x30] ss:$8 sps:$4 sm:$0xff]   ;;  %v9342_v49 = vld [vmem:[%s12621_s9 + $0x40] ss:$8 sps:$4 sm:$0xff]   ;;  %v9347_v14 = vld [vmem:[%s12621_s9 + $0x54] ss:$8 sps:$4 sm:$0xff]  }
 0x5d4   :  { %v9350_v18 = vld [vmem:[%s12621_s9 + $0x64] ss:$8 sps:$4 sm:$0xff]  }
 0x5d5   :  { %v9448_v38 = vld [vmem:[%s12623_s11 + $0x68] sm:$0xff]  }
 0x5d6   :  { %v9449_v34 = vld [vmem:[%s12623_s11 + $0x28] sm:$0xff]  }
 0x60e   :  { %v6354_v54 = vpop.f32.mrb[32].mxu1 }
 0x60f   :  { %v6355_v50 = vadd.f32 %v6354_v54, %v6314_v47  ;;  %v6395_v51 = vpop.f32.mrb[44].mxu0  ;;  %v6356_v39 = vpop.f32.mrb[33].mxu1  ;;  %v9344_v47 = vld [vmem:[%s12621_s9 + $0x44] ss:$8 sps:$4 sm:$0xff]   ;;  %v9348_v54 = vld [vmem:[%s12621_s9 + $0x60] ss:$8 sps:$4 sm:$0xff]  }
 0x610   :  { %v6357_v35 = vadd.f32 %v6356_v39, %v6316_v40  ;;  %v6397_v55 = vpop.f32.mrb[45].mxu0  ;;  %v6358_v41 = vpop.f32.mrb[34].mxu1  ;;  %v9345_v40 = vld [vmem:[%s12621_s9 + $0x50] ss:$8 sps:$4 sm:$0xff]   ;;  %v9356_v39 = vld [vmem:[%s12621_s9 + $0x84] ss:$8 sps:$4 sm:$0xff]  }
 0x611   :  { %v6396_v37 = vadd.f32 %v6395_v51, %v6355_v50  ;;  %v6399_v52 = vpop.f32.mrb[46].mxu0  ;;  %v6359_v59 = vpop.f32.mrb[35].mxu1  ;;  %v9353_v50 = vld [vmem:[%s12621_s9 + $0x74] ss:$8 sps:$4 sm:$0xff]   ;;  %v9351_v51 = vld [vmem:[%s12621_s9 + $0x70] ss:$8 sps:$4 sm:$0xff]  }
 0x612   :  { %v6398_v60 = vadd.f32 %v6397_v55, %v6357_v35  ;;  %v6400_v61 = vpop.f32.mrb[47].mxu0  ;;  %v9354_v35 = vld [vmem:[%s12621_s9 + $0x80] ss:$8 sps:$4 sm:$0xff]   ;;  %v9359_v55 = vld [vmem:[%s12621_s9 + $0x94] ss:$8 sps:$4 sm:$0xff]  }
 0x613   :  { %v12252_v58 = vadd.f32 %v6396_v37, %v10484_v17  ;;  %v9357_v41 = vld [vmem:[%s12621_s9 + $0x90] ss:$8 sps:$4 sm:$0xff]   ;;  %v9362_v37 = vld [vmem:[%s12621_s9 + $0xa4] ss:$8 sps:$4 sm:$0xff]   ;;  %v9360_v52 = vld [vmem:[%s12621_s9 + $0xa0] ss:$8 sps:$4 sm:$0xff]  }
 0x614   :  { %v6565_v53 = vadd.f32 %v6398_v60, %v10486_v19  ;;  %v9335_v19 = vld [vmem:[%s12621_s9 + $0x14] ss:$8 sps:$4 sm:$0xff]   ;;  %v9363_v60 = vld [vmem:[%s12621_s9 + $0xb0] ss:$8 sps:$4 sm:$0xff]  }
 0x615   :  { %v6568_v5 = vadd.f32 %v6567_v28, %v12252_v58  ;;  %7054 = vmatprep.subr.bf16.mxu1 %v9335_v19  ;;  %v9365_v59 = vld [vmem:[%s12621_s9 + $0xb4] ss:$8 sps:$4 sm:$0xff]  }
 0x616   :  { %v9377_v28 = vld [vmem:[%s12621_s9 + $0xf4] ss:$8 sps:$4 sm:$0xff]  }
 0x617   :  { %v6569_v36 = vadd.f32 %v6568_v5, %v6565_v53  ;;  %v9442_v5 = vld [vmem:[%s12623_s11 + $0x50] sm:$0xff]  }
 0x62e   :  { %v8441_v62 = vpop.f32.mrb[36].mxu1 }
 0x62f   :  { %v8463_v2 = vpop.f32.mrb[48].mxu0  ;;  %v8442_v3 = vpop.f32.mrb[37].mxu1 }
 0x630   :  { %v8443_v4 = vadd.f32 %v8442_v3, %v8441_v62  ;;  %v8464_v11 = vpop.f32.mrb[49].mxu0  ;;  %v8444_v6 = vpop.f32.mrb[38].mxu1 }
 0x631   :  { %v8465_v21 = vadd.f32 %v8464_v11, %v8463_v2  ;;  %v8466_v45 = vpop.f32.mrb[50].mxu0  ;;  %v8445_v23 = vpop.f32.mrb[39].mxu1 }
 0x632   :  { %v6437_v46 = vadd.f32 %v8443_v4, %v4404_v63  ;;  %v8467_v10 = vpop.f32.mrb[51].mxu0 }
 0x634   :  { %v6477_v12 = vadd.f32 %v8465_v21, %v6437_v46 }
 0x64e   :  { %v8485_v22 = vpop.f32.mrb[40].mxu1 }
 0x64f   :  { %v8507_v20 = vpop.f32.mrb[52].mxu0  ;;  %v8486_v24 = vpop.f32.mrb[41].mxu1 }
 0x650   :  { %v8487_v16 = vadd.f32 %v8486_v24, %v8485_v22  ;;  %v8508_v25 = vpop.f32.mrb[53].mxu0  ;;  %v8488_v26 = vpop.f32.mrb[42].mxu1  ;;  %v9371_v24 = vld [vmem:[%s12621_s9 + $0xd4] ss:$8 sps:$4 sm:$0xff]  }
 0x651   :  { %v8509_v29 = vadd.f32 %v8508_v25, %v8507_v20  ;;  %v8510_v31 = vpop.f32.mrb[54].mxu0  ;;  %v8489_v32 = vpop.f32.mrb[43].mxu1  ;;  %v9366_v20 = vld [vmem:[%s12621_s9 + $0xc0] ss:$8 sps:$4 sm:$0xff]   ;;  %v9374_v25 = vld [vmem:[%s12621_s9 + $0xe4] ss:$8 sps:$4 sm:$0xff]  }
 0x652   :  { %v6517_v27 = vadd.f32 %v8487_v16, %v6477_v12  ;;  %v8511_v30 = vpop.f32.mrb[55].mxu0  ;;  %v9369_v16 = vld [vmem:[%s12621_s9 + $0xd0] ss:$8 sps:$4 sm:$0xff]   ;;  %v9372_v26 = vld [vmem:[%s12621_s9 + $0xe0] ss:$8 sps:$4 sm:$0xff]  }
 0x653   :  { %v9380_v31 = vld [vmem:[%s12621_s9 + $0x104] ss:$8 sps:$4 sm:$0xff]  }
 0x654   :  { %v6557_v33 = vadd.f32 %v8509_v29, %v6517_v27  ;;  %v9375_v29 = vld [vmem:[%s12621_s9 + $0xf0] ss:$8 sps:$4 sm:$0xff]   ;;  %v9438_v32 = vld [vmem:[%s12623_s11 + $0x40] sm:$0xff]   ;;  %v9440_v30 = vld [vmem:[%s12623_s11 + $0x48] sm:$0xff]  }
 0x655   :  { %v9439_v27 = vld [vmem:[%s12623_s11] sm:$0xff]   ;;  %8513 = vmatprep.subr.bf16.mxu0 %v9438_v32 }
 0x656   :  { %v6566_v17 = vadd.f32 %v6557_v33, %v10497_v56  ;;  %v9333_v56 = vld [vmem:[%s12621_s9 + $0x10] ss:$8 sps:$4 sm:$0xff]   ;;  %8514 = vmatpush3.bf16.msra.mxu0 %v9439_v27  ;;  %v9434_v32 = vld [vmem:[%s12621_s9 + $0x224] ss:$8 sps:$4 sm:$0xff]   ;;  %v9432_v27 = vld [vmem:[%s12621_s9 + $0x220] ss:$8 sps:$4 sm:$0xff]  }
 0x657   :  { %7055 = vmatpush1.bf16.msra.mxu1 %v9333_v56  ;;  %8515 = vmatprep.subr.bf16.mxu0 %v9440_v30  ;;  %v9443_v33 = vld [vmem:[%s12623_s11 + $0x10] sm:$0xff]  }
 0x658   :  { %v6570_v48 = vsel %vm1241_vm0, %v6566_v17, 0.0  ;;  %7056 = vmatprep.subr.bf16.mxu1 %v9338_v7  ;;  %v9437_v30 = vld [vmem:[%s12621_s9 + $0x234] ss:$8 sps:$4 sm:$0xff]  }
 0x659   :  { %v6571_v43 = vadd.f32 %v6570_v48, %v6569_v36  ;;  %v9445_v36 = vld [vmem:[%s12623_s11 + $0x18] sm:$0xff]   ;;  %v9446_v48 = vld [vmem:[%s12623_s11 + $0x60] sm:$0xff]  }
 0x65b   :  { %6572 = vadd.xlane.f32.xlu1 %v6571_v43  ;;  %7057 = vmatpush1.bf16.msra.mxu1 %v9336_v0  ;;  %v9447_v43 = vld [vmem:[%s12623_s11 + $0x20] sm:$0xff]  }
 0x65c   :  { %7058 = vmatprep.subr.bf16.mxu1 %v9341_v44 }
 0x65f   :  { %7059 = vmatpush1.bf16.msra.mxu1 %v9339_v42 }
 0x660   :  { %7060 = vmatprep.subr.bf16.mxu1 %v9344_v47 }
 0x663   :  { %7061 = vmatpush1.bf16.msra.mxu1 %v9342_v49 }
 0x664   :  { %7062 = vmatprep.subr.bf16.mxu1 %v9347_v14  ;;  %v9378_v14 = vld [vmem:[%s12621_s9 + $0x100] ss:$8 sps:$4 sm:$0xff]  }
 0x667   :  { %7063 = vmatpush1.bf16.msra.mxu1 %v9345_v40 }
 0x668   :  { %7064 = vmatprep.subr.bf16.mxu1 %v9350_v18  ;;  %v9383_v18 = vld [vmem:[%s12621_s9 + $0x114] ss:$8 sps:$4 sm:$0xff]  }
 0x66b   :  { %7065 = vmatpush1.bf16.msra.mxu1 %v9348_v54 }
 0x66c   :  { %7066 = vmatprep.subr.bf16.mxu1 %v9353_v50  ;;  %v9381_v50 = vld [vmem:[%s12621_s9 + $0x110] ss:$8 sps:$4 sm:$0xff]  }
 0x66f   :  { %7067 = vmatpush1.bf16.msra.mxu1 %v9351_v51  ;;  %v9386_v51 = vld [vmem:[%s12621_s9 + $0x124] ss:$8 sps:$4 sm:$0xff]  }
 0x670   :  { %7068 = vmatprep.subr.bf16.mxu1 %v9356_v39  ;;  %v9384_v39 = vld [vmem:[%s12621_s9 + $0x120] ss:$8 sps:$4 sm:$0xff]  }
 0x673   :  { %7069 = vmatpush1.bf16.msra.mxu1 %v9354_v35  ;;  %v9389_v35 = vld [vmem:[%s12621_s9 + $0x134] ss:$8 sps:$4 sm:$0xff]  }
 0x674   :  { %7070 = vmatprep.subr.bf16.mxu1 %v9359_v55  ;;  %v9387_v55 = vld [vmem:[%s12621_s9 + $0x130] ss:$8 sps:$4 sm:$0xff]  }
 0x677   :  { %7071 = vmatpush1.bf16.msra.mxu1 %v9357_v41  ;;  %v9392_v41 = vld [vmem:[%s12621_s9 + $0x144] ss:$8 sps:$4 sm:$0xff]  }
 0x678   :  { %7072 = vmatprep.subr.bf16.mxu1 %v9362_v37  ;;  %v9390_v37 = vld [vmem:[%s12621_s9 + $0x140] ss:$8 sps:$4 sm:$0xff]  }
 0x67b   :  { %7073 = vmatpush1.bf16.msra.mxu1 %v9360_v52  ;;  %v9395_v52 = vld [vmem:[%s12621_s9 + $0x154] ss:$8 sps:$4 sm:$0xff]  }
 0x67c   :  { %7074 = vmatprep.subr.bf16.mxu1 %v9365_v59  ;;  %v9393_v59 = vld [vmem:[%s12621_s9 + $0x150] ss:$8 sps:$4 sm:$0xff]  }
 0x67f   :  { %7075 = vmatpush1.bf16.msra.mxu1 %v9363_v60  ;;  %v9398_v60 = vld [vmem:[%s12621_s9 + $0x164] ss:$8 sps:$4 sm:$0xff]  }
 0x6e8   :  { %v6573_v61 = vpop.xlane.xlu1 %6572 }
 0x6e9   :  { %v6574_v62 = vmul.f32 0.0017361111, %v6573_v61  ;;  %v9396_v61 = vld [vmem:[%s12621_s9 + $0x160] ss:$8 sps:$4 sm:$0xff]  }
 0x6eb   :  { %v12333_v63 = vsub.f32 %v12246_v13, %v6574_v62  ;;  %v6576_v2 = vsub.f32 %v12249_v57, %v6574_v62  ;;  %v12337_v3 = vsub.f32 %v12252_v58, %v6574_v62  ;;  %v12339_v4 = vsub.f32 %v6566_v17, %v6574_v62  ;;  %v9368_v58 = vld [vmem:[%s12621_s9 + $0xc4] ss:$8 sps:$4 sm:$0xff]   ;;  %v9444_v17 = vld [vmem:[%s12623_s11 + $0x58] sm:$0xff]  }
 0x6ec   :  { %v6578_v11 = vsub.f32 %v6565_v53, %v6574_v62  ;;  %7076 = vmatprep.subr.bf16.mxu1 %v9368_v58  ;;  %v9441_v53 = vld [vmem:[%s12623_s11 + $0x8] sm:$0xff]   ;;  %v9401_v62 = vld [vmem:[%s12621_s9 + $0x174] ss:$8 sps:$4 sm:$0xff]  }
 0x6ed   :  { %v6580_v6 = vmul.f32 %v12333_v63, %v12333_v63  ;;  %v6581_v21 = vmul.f32 %v6576_v2, %v6576_v2  ;;  %v6582_v45 = vmul.f32 %v12337_v3, %v12337_v3  ;;  %v6584_v46 = vmul.f32 %v12339_v4, %v12339_v4  ;;  %7077 = vmatpush1.bf16.msra.mxu1 %v9366_v20  ;;  %v9422_v58 = vld [vmem:[%s12621_s9 + $0x1e4] ss:$8 sps:$4 sm:$0xff]   ;;  %v9420_v20 = vld [vmem:[%s12621_s9 + $0x1e0] ss:$8 sps:$4 sm:$0xff]  }
 0x6ee   :  { %v6583_v10 = vmul.f32 %v6578_v11, %v6578_v11  ;;  %7078 = vmatprep.subr.bf16.mxu1 %v9371_v24  ;;  %8516 = vmatpush3.bf16.msra.mxu0 %v9441_v53  ;;  %v9425_v24 = vld [vmem:[%s12621_s9 + $0x1f4] ss:$8 sps:$4 sm:$0xff]   ;;  %v9435_v53 = vld [vmem:[%s12621_s9 + $0x230] ss:$8 sps:$4 sm:$0xff]  }
 0x6ef   :  { %v6585_v23 = vadd.f32 %v6581_v21, %v6580_v6  ;;  %v6588_v57 = vsel %vm1241_vm0, %v6584_v46, 0.0  ;;  %8517 = vmatprep.subr.bf16.mxu0 %v9442_v5  ;;  %v9407_v6 = vld [vmem:[%s12621_s9 + $0x194] ss:$8 sps:$4 sm:$0xff]   ;;  %v9405_v21 = vld [vmem:[%s12621_s9 + $0x190] ss:$8 sps:$4 sm:$0xff]  }
 0x6f0   :  { %v9413_v46 = vld [vmem:[%s12621_s9 + $0x1b4] ss:$8 sps:$4 sm:$0xff]  }
 0x6f1   :  { %v6586_v12 = vadd.f32 %v6585_v23, %v6582_v45  ;;  %7079 = vmatpush1.bf16.msra.mxu1 %v9369_v16  ;;  %v9410_v45 = vld [vmem:[%s12621_s9 + $0x1a4] ss:$8 sps:$4 sm:$0xff]   ;;  %v9408_v23 = vld [vmem:[%s12621_s9 + $0x1a0] ss:$8 sps:$4 sm:$0xff]   ;;  %v9423_v16 = vld [vmem:[%s12621_s9 + $0x1f0] ss:$8 sps:$4 sm:$0xff]  }
 0x6f2   :  { %7080 = vmatprep.subr.bf16.mxu1 %v9374_v25  ;;  %8518 = vmatpush3.bf16.msra.mxu0 %v9443_v33 }
 0x6f3   :  { %v6587_v13 = vadd.f32 %v6586_v12, %v6583_v10  ;;  %8519 = vmatprep.subr.bf16.mxu0 %v9444_v17  ;;  %v9411_v10 = vld [vmem:[%s12621_s9 + $0x1b0] ss:$8 sps:$4 sm:$0xff]   ;;  %v9416_v12 = vld [vmem:[%s12621_s9 + $0x1c4] ss:$8 sps:$4 sm:$0xff]  }
 0x6f4   :  { %v9450_v17 = vld [vmem:[%s12623_s11 + $0x70] sm:$0xff]  }
 0x6f5   :  { %v6589_v22 = vadd.f32 %v6588_v57, %v6587_v13  ;;  %7081 = vmatpush1.bf16.msra.mxu1 %v9372_v26  ;;  %v9414_v13 = vld [vmem:[%s12621_s9 + $0x1c0] ss:$8 sps:$4 sm:$0xff]   ;;  %v9419_v57 = vld [vmem:[%s12621_s9 + $0x1d4] ss:$8 sps:$4 sm:$0xff]   ;;  %v9428_v26 = vld [vmem:[%s12621_s9 + $0x204] ss:$8 sps:$4 sm:$0xff]  }
 0x6f6   :  { %7082 = vmatprep.subr.bf16.mxu1 %v9377_v28  ;;  %8520 = vmatpush3.bf16.msra.mxu0 %v9445_v36  ;;  %v9426_v28 = vld [vmem:[%s12621_s9 + $0x200] ss:$8 sps:$4 sm:$0xff]   ;;  %v9451_v36 = vld [vmem:[%s12623_s11 + $0x30] sm:$0xff]  }
 0x6f7   :  { %6590 = vadd.xlane.f32.xlu1 %v6589_v22  ;;  %8521 = vmatprep.subr.bf16.mxu0 %v9446_v48  ;;  %v9417_v22 = vld [vmem:[%s12621_s9 + $0x1d0] ss:$8 sps:$4 sm:$0xff]  }
 0x6f8   :  { %v9452_v48 = vld [vmem:[%s12623_s11 + $0x78] sm:$0xff]  }
 0x6f9   :  { %7083 = vmatpush1.bf16.msra.mxu1 %v9375_v29 }
 0x6fa   :  { %7093 = vmatprep.subr.bf16.mxu1 %v9380_v31  ;;  %8522 = vmatpush3.bf16.msra.mxu0 %v9447_v43  ;;  %v9431_v31 = vld [vmem:[%s12621_s9 + $0x214] ss:$8 sps:$4 sm:$0xff]   ;;  %v6677_v43 = vld [vmem:[%s12622_s10] sm:$0x3] }
 0x6fb   :  { %8523 = vmatprep.subr.bf16.mxu0 %v9448_v38  ;;  %v6682_v38 = vrot.slane %v6677_v43, %v10176_v8  ;;  %v9455_v8 = vld [vmem:[%s12625_s13 + $0x8] sm:$0xff]  }
 0x6fe   :  { %8524 = vmatpush3.bf16.msra.mxu0 %v9449_v34  ;;  %v6686_v34 = vrot.slane %v6677_v43, %v10179_v9  ;;  %v9456_v9 = vld [vmem:[%s12625_s13 + $0x10] sm:$0xff]  }
 0x6ff   :  { %8525 = vmatprep.subr.bf16.mxu0 %v9450_v17 }
 0x702   :  { %8526 = vmatpush3.bf16.msra.mxu0 %v9451_v36 }
 0x703   :  { %8527 = vmatprep.subr.bf16.mxu0 %v9452_v48 }
 0x784   :  { %v6591_v19 = vpop.xlane.xlu1 %6590 }
 0x785   :  { %v6592_v56 = vmul.f32 0.0017361111, %v6591_v19 }
 0x787   :  { %v6593_v7 = vadd.f32 1e-05, %v6592_v56 }
 0x789   :  { %9464 = vrsqrt.f32 %v6593_v7 }
 0x793   :  { %v12411_v0 = vpop.eup %9464 }
 0x794   :  { %v6596_v44 = vmul.f32 %v12411_v0, %v6576_v2  ;;  %v6595_v42 = vmul.f32 %v12411_v0, %v12333_v63  ;;  %v6598_v47 = vmul.f32 %v12411_v0, %v6578_v11  ;;  %v9399_v63 = vld [vmem:[%s12621_s9 + $0x170] ss:$8 sps:$4 sm:$0xff]   ;;  %v9404_v2 = vld [vmem:[%s12621_s9 + $0x184] ss:$8 sps:$4 sm:$0xff]   ;;  %v9402_v11 = vld [vmem:[%s12621_s9 + $0x180] ss:$8 sps:$4 sm:$0xff]   ;;  %v6597_v25 = vmul.f32 %v12411_v0, %v12337_v3 }
 0x795   :  { %v9429_v3 = vld [vmem:[%s12621_s9 + $0x210] ss:$8 sps:$4 sm:$0xff]   ;;  %v6599_v5 = vmul.f32 %v12411_v0, %v12339_v4 }
 0x796   :  { %v6601_v49 = vpack.c.bf16 %v6596_v44, %v6596_v44  ;;  %v6600_v40 = vpack.c.bf16 %v6595_v42, %v6595_v42  ;;  %v6603_v54 = vpack.c.bf16 %v6598_v47, %v6598_v47  ;;  %v6602_v29 = vpack.c.bf16 %v6597_v25, %v6597_v25  ;;  %v9453_v4 = vld [vmem:[%s12623_s11 + $0x38] sm:$0xff]  }
 0x797   :  { %v6604_v33 = vpack.c.bf16 %v6599_v5, %v6599_v5  ;;  %8528 = vmatpush3.bf16.msra.mxu0 %v9453_v4 }
 0x798   :  { %7084 = vmatprep.mubr.bf16.mxu1 %v6601_v49  ;;  %8556 = vmatprep.subr.bf16.mxu0 %v9496_v1 }
 0x799   :  { %7085 = vmatmul.mubr.bf16.vlgmr.msra.gmra.mrb[44].mxu1 %v6600_v40  ;;  %v9454_v40 = vld [vmem:[%s12625_s13] sm:$0xff]  }
 0x79a   :  { %7094 = vmatpush1.bf16.msra.mxu1 %v9378_v14  ;;  %7125 = vmatprep.mubr.bf16.mxu1 %v6603_v54  ;;  %v9457_v54 = vld [vmem:[%s12625_s13 + $0x18] sm:$0xff]  }
 0x79b   :  { %7095 = vmatprep.subr.bf16.mxu1 %v9383_v18 }
 0x79e   :  { %7096 = vmatpush1.bf16.msra.mxu1 %v9381_v50  ;;  %v9458_v50 = vld [vmem:[%s12625_s13 + $0x20] sm:$0xff]  }
 0x79f   :  { %7097 = vmatprep.subr.bf16.mxu1 %v9386_v51  ;;  %v9459_v51 = vld [vmem:[%s12625_s13 + $0x28] sm:$0xff]  }
 0x7a2   :  { %7098 = vmatpush1.bf16.msra.mxu1 %v9384_v39  ;;  %v9460_v39 = vld [vmem:[%s12625_s13 + $0x30] sm:$0xff]  }
 0x7a3   :  { %7099 = vmatprep.subr.bf16.mxu1 %v9389_v35  ;;  %v9461_v35 = vld [vmem:[%s12625_s13 + $0x38] sm:$0xff]   ;;  %s9498_s13 = smov [#allocation2]  }
 0x7a4   :  { %s7474_s19 = sshll.u32 %s9498_s13, 4  ;;  %s7475_s19 = int_to_ptr.vmem [resolvable:$true] %s7474_s19 }
 0x7a5   :  { %p9476_p1 = scmp.lt.s32.totalorder %s7475_s19, %s7475_s19 }
 0x7a6   :  { %7100 = vmatpush1.bf16.msra.mxu1 %v9387_v55 }
 0x7a7   :  { %7101 = vmatprep.subr.bf16.mxu1 %v9392_v41  ;;  %v8350_v41 = vld [vmem:[%s12624_s12] ss:$0 sm:$0xff]  ;;  %s9471_s12 = scalar_lea.vmem %s7475_s19, 128 }
 0x7a8   :  { %p9472_p0 = scmp.ne.s32.totalorder %s7475_s19, %s9471_s12  ;;  %p9477_p2 = scmp.lt.s32.totalorder %s9471_s12, %s9471_s12 }
 0x7aa   :  { %7102 = vmatpush1.bf16.msra.mxu1 %v9390_v37  ;;  %p9478_p3 = por %p9477_p2, %p9476_p1 }
 0x7ab   :  { %7103 = vmatprep.subr.bf16.mxu1 %v9395_v52 }
 0x7ac   :  { %p9479_p4 = pnand %p9478_p3, %p9472_p0 }
 0x7ae   :  { %7104 = vmatpush1.bf16.msra.mxu1 %v9393_v59 }
 0x7af   :  { %7105 = vmatprep.subr.bf16.mxu1 %v9398_v60 }
 0x7b2   :  { %7106 = vmatpush1.bf16.msra.mxu1 %v9396_v61 }
 0x7b3   :  { %7107 = vmatprep.subr.bf16.mxu1 %v9401_v62 }
 0x7b6   :  { %7108 = vmatpush1.bf16.msra.mxu1 %v9399_v63 }
 0x7b7   :  { %7109 = vmatprep.subr.bf16.mxu1 %v9404_v2 }
 0x7ba   :  { %7110 = vmatpush1.bf16.msra.mxu1 %v9402_v11 }
 0x7bb   :  { %7111 = vmatprep.subr.bf16.mxu1 %v9407_v6 }
 0x7be   :  { %7112 = vmatpush1.bf16.msra.mxu1 %v9405_v21 }
 0x7bf   :  { %7113 = vmatprep.subr.bf16.mxu1 %v9410_v45 }
 0x7c2   :  { %7114 = vmatpush1.bf16.msra.mxu1 %v9408_v23 }
 0x7c3   :  { %7115 = vmatprep.subr.bf16.mxu1 %v9413_v46 }
 0x7c6   :  { %7116 = vmatpush1.bf16.msra.mxu1 %v9411_v10 }
 0x7c7   :  { %7117 = vmatprep.subr.bf16.mxu1 %v9416_v12 }
 0x7ca   :  { %7118 = vmatpush1.bf16.msra.mxu1 %v9414_v13 }
 0x7cb   :  { %7119 = vmatprep.subr.bf16.mxu1 %v9419_v57 }
 0x7ce   :  { %7120 = vmatpush1.bf16.msra.mxu1 %v9417_v22 }
 0x7cf   :  { %7121 = vmatprep.subr.bf16.mxu1 %v9422_v58 }
 0x7d2   :  { %7122 = vmatpush1.bf16.msra.mxu1 %v9420_v20 }
 0x7d3   :  { %7123 = vmatprep.subr.bf16.mxu1 %v9425_v24 }
 0x7d6   :  { %7124 = vmatpush1.bf16.msra.mxu1 %v9423_v16 }
 0x7d7   :  { %7134 = vmatprep.subr.bf16.mxu1 %v9428_v26 }
 0x7d9   :  { %7126 = vmatmul.mubr.bf16.vlgmr.msra.gmra.mrb[44].mxu1 %v6602_v29 }
 0x7da   :  { %7135 = vmatpush1.bf16.msra.mxu1 %v9426_v28  ;;  %7166 = vmatprep.mubr.bf16.mxu1 %v9495_v15 }
 0x7db   :  { %7136 = vmatprep.subr.bf16.mxu1 %v9431_v31 }
 0x7de   :  { %7137 = vmatpush1.bf16.msra.mxu1 %v9429_v3 }
 0x7df   :  { %7138 = vmatprep.subr.bf16.mxu1 %v9434_v32 }
 0x7e2   :  { %7139 = vmatpush1.bf16.msra.mxu1 %v9432_v27 }
 0x7e3   :  { %7140 = vmatprep.subr.bf16.mxu1 %v9437_v30 }
 0x7e6   :  { %7141 = vmatpush1.bf16.msra.mxu1 %v9435_v53 }
 0x7e9   :  { %8349 = vmatmul.mubr.msk.bf16.vlgmr.msra.gmra.mrb[44].mxu1 %vm1241_vm0, %v6604_v33 }
 0x8bc   :  { %v7168_v19 = vpop.f32.mrb[44].mxu1 }
 0x8bd   :  { %v8584_v56 = vadd.f32 %v7168_v19, %v6682_v38  ;;  %v7170_v7 = vpop.f32.mrb[45].mxu1 }
 0x8be   :  { %v8585_v0 = vadd.f32 %v7170_v7, %v6686_v34  ;;  %v7172_v44 = vpop.f32.mrb[46].mxu1 }
 0x8bf   :  { %v7175_v42 = vpack.c.bf16 %v8584_v56, %v8584_v56  ;;  %v7173_v47 = vpop.f32.mrb[47].mxu1 }
 0x8c0   :  { %v7176_v49 = vpack.c.bf16 %v8585_v0, %v8585_v0 }
 0x8c1   :  { %v7177_v18 = vmax.bf16 %v9495_v15, %v7175_v42 }
 0x8c2   :  { %v7178_v14 = vmax.bf16 %v9495_v15, %v7176_v49 }
 0x8c4   :  { %7346 = vmatprep.mubr.bf16.mxu0 %v7178_v14 }
 0x8c5   :  { %7347 = vmatmul.mubr.bf16.vlgmr.msra.gmra.mrb[56].mxu0 %v7177_v18 }
 0x8c6   :  { %8557 = vmatpush3.bf16.msra.mxu0 %v9454_v40  ;;  %8572 = vmatprep.mubr.msk.bf16.mxu0 %vm9497_vm1, %v9496_v1 }
 0x8c7   :  { %8558 = vmatprep.subr.bf16.mxu0 %v9496_v1 }
 0x8ca   :  { %8559 = vmatpush3.bf16.msra.mxu0 %v9455_v8 }
 0x8cb   :  { %8560 = vmatprep.subr.bf16.mxu0 %v9496_v1 }
 0x8ce   :  { %8561 = vmatpush3.bf16.msra.mxu0 %v9456_v9 }
 0x8cf   :  { %8562 = vmatprep.subr.bf16.mxu0 %v9496_v1 }
 0x8d2   :  { %8563 = vmatpush3.bf16.msra.mxu0 %v9457_v54 }
 0x8d3   :  { %8564 = vmatprep.subr.bf16.mxu0 %v9496_v1 }
 0x8d6   :  { %8565 = vmatpush3.bf16.msra.mxu0 %v9458_v50 }
 0x8d7   :  { %8566 = vmatprep.subr.bf16.mxu0 %v9496_v1 }
 0x8da   :  { %8567 = vmatpush3.bf16.msra.mxu0 %v9459_v51 }
 0x8db   :  { %8568 = vmatprep.subr.bf16.mxu0 %v9496_v1 }
 0x8de   :  { %8569 = vmatpush3.bf16.msra.mxu0 %v9460_v39 }
 0x8df   :  { %8570 = vmatprep.subr.bf16.mxu0 %v9496_v1  ;;  %v8367_v1 = vld [vmem:[%s12626_s14] ss:$0 sm:$0xff] }
 0x8e2   :  { %8571 = vmatpush3.bf16.msra.mxu0 %v9461_v35 }
 0x998   :  { %v8529_v55 = vpop.f32.mrb[56].mxu0 }
 0x999   :  { %v8530_v37 = vpop.f32.mrb[57].mxu0 }
 0x99a   :  { %v8531_v52 = vadd.f32 %v8530_v37, %v8529_v55  ;;  %v8532_v59 = vpop.f32.mrb[58].mxu0 }
 0x99b   :  { %v8533_v60 = vpop.f32.mrb[59].mxu0 }
 0x99c   :  { %v7349_v61 = vadd.f32 %v8531_v52, %v8350_v41 }
 0x99e   :  { %v7354_v62 = vpack.c.bf16 %v7349_v61, %v7349_v61 }
 0x9a0   :  { %v7355_v63 = vmax.bf16 %v9495_v15, %v7354_v62 }
 0x9a2   :  { %8573 = vmatmul.mubr.bf16.vlgmr.msra.gmra.mrb[60].mxu0 %v7355_v63 }
 0xa75   :  { %v7461_v2 = vpop.f32.mrb[60].mxu0 }
 0xa76   :  { %v7462_v11 = vadd.f32 %v8367_v1, %v7461_v2  ;;  %v8574_v6 = vpop.f32.mrb[61].mxu0 }
 0xa77   :  { %v7464_v21 = vpop.f32.mrb[62].mxu0 }
 0xa78   :  { %7467 = vst [vmem:[#allocation2] sm:$0xff] %v7462_v11  ;;  %v8575_v45 = vpop.f32.mrb[63].mxu0 }
 0xa79   :  { %9482 = shalt.err (!%p9479_p4)
}
 0xa7a   :  { %s9483_s14 = scalar_lea.hbm %s12627_s15, 128 }
 0xa7b   :  { %p9484_p5 = scmp.ne.s32.totalorder %s12627_s15, %s9483_s14  ;;  %p9487_p6 = scmp.lt.u32.totalorder %s9483_s14, %s12627_s15 }
 0xa7d   :  { %p9489_p7 = pnand %p9487_p6, %p9484_p5 }
 0xa7f   :  { %9492 = shalt.err (!%p9489_p7)
}
 0xa80   :  { %7477 = dma.vmem_to_hbm [thread:$0]  %s7475_s19, 128, %s12627_s15, [#allocation3]  }
 0xa81   :  { %9493 = dma.done.wait [#allocation3], 128  }
 0xa82   :  { %9494 = vsyncadd [#allocation3], 4294967168 }
 0xa83   :  { %7481 = vsyncpa [#allocation3], 1 }

</bundles_post_ra>
